<compile_context>
chip_gen: v7x
topology: tpu7x:2x2x1
jax: 0.10.0
libtpu: 0.0.40
codegen_flags: <defaults>
</compile_context>

<pallas_src>
import numpy as np
import jax
import jax.numpy as jnp
from jax import lax
from jax.experimental import pallas as pl
from jax.experimental.pallas import tpu as pltpu

EPS = 1e-12                      # matches torch.nn.functional.normalize eps
HP = jax.lax.Precision.HIGHEST   # wrapper-level matmuls in full f32


# ---------------------------------------------------------------------------
# Fused kernel: LSTM controller + hidden projections + NAM tape recurrence
# (OnlyJump variant) + outlayer.  Batch/tape axes are collapsed as
# bt = tape_index * B + batch_index ("tape-major") everywhere.
# ---------------------------------------------------------------------------
def _nam_fused_kernel(gx_ref, whh_ref, vals_ref, keys_ref, whid_ref, bhid_ref,
                      wout_ref, bout_ref, out_ref, tape_ref,
                      qn_scr, gates_scr, ro_scr, tkey_scr, rpos_scr, wpos_scr):
    S, B, _ = gx_ref.shape
    D = whh_ref.shape[0]
    TB, H = vals_ref.shape[1], vals_ref.shape[2]
    L = tape_ref.shape[0]
    T = TB // B
    GT = 5 * T * H                     # gate columns in the fused hidden weight
    f32 = jnp.float32
    eps2 = EPS * EPS

    # ---- 1. LSTM controller recurrence (unrolled; tiny state) ----
    w_hh = whh_ref[...]
    h = jnp.zeros((B, D), f32)
    c = jnp.zeros((B, D), f32)
    hs = []
    for s in range(S):
        gates = gx_ref[s] + jnp.dot(h, w_hh, preferred_element_type=f32)
        sg = jax.nn.sigmoid(gates)     # one full-width EUP pass
        tg = jnp.tanh(gates)           # one full-width EUP pass
        i_g = sg[:, 0:D]
        f_g = sg[:, D:2 * D]
        o_g = sg[:, 3 * D:4 * D]
        g_g = tg[:, 2 * D:3 * D]
        c = f_g * c + i_g * g_g
        h = o_g * jnp.tanh(c)
        hs.append(h)
    hid = jnp.concatenate(hs, axis=0)              # (S*B, D), written once

    # ---- 2. fused hidden projection on the MXU (gates + queries) ----
    hp = jnp.dot(hid, whid_ref[...], preferred_element_type=f32) + bhid_ref[...]
    gate_all = jax.nn.sigmoid(hp[:, :GT])          # (S*B, 5*T*H), gate probs
    q_all = hp[:, GT:]                             # (S*B, T*H), raw queries

    # ---- 3. pre-loop: normalize queries, scatter per-tape slabs to scratch ---
    # (all relayout work is hoisted off the serial tape loop)
    for tt in range(T):
        q_t = q_all[:, tt * H:(tt + 1) * H]
        q_t = q_t * lax.rsqrt(
            jnp.maximum(jnp.sum(q_t * q_t, axis=-1, keepdims=True), eps2))
        qn_scr[:, tt * B:(tt + 1) * B, :] = q_t.reshape(S, B, H)
        for j in range(5):
            g = gate_all[:, (j * T + tt) * H:(j * T + tt + 1) * H]
            gates_scr[j, :, tt * B:(tt + 1) * B, :] = g.reshape(S, B, H)

    # ---- 4. tape state init (state lives in VMEM scratch, not vregs) ----
    zeros_state = jnp.zeros((L, TB, H), f32)
    tape_ref[...] = zeros_state
    tkey_scr[...] = zeros_state
    pos0 = (lax.broadcasted_iota(jnp.int32, (L, TB, H), 0) == 0).astype(f32)
    rpos_scr[...] = pos0
    wpos_scr[...] = pos0

    # ---- 5. NAM tape recurrence (OnlyJump), rolled over S ----
    def step(i, carry):
        v = vals_ref[i]                            # (TB, H)
        k = keys_ref[i]                            # (TB, H), unit-normalized
        q = qn_scr[i]                              # (TB, H), unit-normalized
        rd0 = gates_scr[0, i]                      # (TB, H) pre-broadcast gates
        wd0 = gates_scr[1, i]
        rwe0 = gates_scr[2, i]
        rwe1 = gates_scr[3, i]
        rwe2 = gates_scr[4, i]

        # F.normalize(pos, dim=0) is folded in as a scalar factor (per bt, h),
        # so the normalized positions are never materialized.
        wpos = wpos_scr[...]                       # (L, TB, H), H-replicated
        inv_w = lax.rsqrt(jnp.maximum(jnp.sum(wpos * wpos, axis=0), eps2))
        tape = tape_ref[...]
        oldval = jnp.sum(tape * wpos, axis=0) * inv_w            # (TB, H)
        delta = (v * rwe1 - oldval * rwe2) * inv_w
        tape = tape + wpos * delta[None]
        tape_ref[...] = tape

        rpos = rpos_scr[...]
        inv_r = lax.rsqrt(jnp.maximum(jnp.sum(rpos * rpos, axis=0), eps2))
        read_out = jnp.sum(tape * rpos, axis=0) * inv_r          # (TB, H)
        ro_scr[i] = read_out * rwe0

        tkey = tkey_scr[...]
        oldpos = jnp.sum(tkey * k[None], axis=-1, keepdims=True)  # (L, TB, 1)
        tkey = tkey + (wpos * rwe1[None] - oldpos * rwe2[None]) * k[None]
        tkey_scr[...] = tkey
        jpos = jnp.sum(tkey * q[None], axis=-1, keepdims=True)    # (L, TB, 1)

        # onlyjump: new = dir0 * pos + dir1 * jpos, with dir1 = 1 - dir0
        wpos_scr[...] = wd0[None] * (wpos - jpos) + jpos
        rpos_scr[...] = rd0[None] * (rpos - jpos) + jpos
        return carry

    lax.fori_loop(0, S, step, 0)

    # ---- 6. outlayer on the MXU ----
    ro_blocks = []
    for tt in range(T):
        ro_blocks.append(ro_scr[:, tt * B:(tt + 1) * B, :].reshape(S * B, H))
    ro_all = jnp.concatenate(ro_blocks, axis=1)    # (S*B, T*H), lane-dense
    out_ref[...] = (jnp.dot(ro_all, wout_ref[...], preferred_element_type=f32)
                    + bout_ref[...])


# ---------------------------------------------------------------------------
# NAMTuringOnlyJump wrapper: one fused matmul for the x-only projections in
# XLA, then a single pallas_call for everything that touches the recurrences.
# ---------------------------------------------------------------------------
def nam_turing_only_jump(x, params, tapelen):
    S, B, D = x.shape
    T = int(params["n_tapes"])
    H = int(params["head_dim"])
    TH = T * H
    TB = T * B
    L = int(tapelen)
    f32 = jnp.float32

    # -- hoisted x-only projections: single fused matmul --
    # (precision=HIGHEST kept for strict comparison; safe to drop in production)
    w_x = jnp.concatenate([params["w_ih"], params["w_val"], params["w_key"]], axis=1)
    b_x = jnp.concatenate([params["b_lstm"], params["b_val"], params["b_key"]], axis=1)
    xproj = jnp.dot(x.reshape(S * B, D), w_x, precision=HP) + b_x     # (S*B, 4D+2TH)
    gx = xproj[:, :4 * D].reshape(S, B, 4 * D)
    vals4 = xproj[:, 4 * D:4 * D + TH].reshape(S, B, T, H)
    keys4 = xproj[:, 4 * D + TH:].reshape(S, B, T, H)
    keys4 = keys4 * lax.rsqrt(
        jnp.maximum(jnp.sum(keys4 * keys4, axis=-1, keepdims=True), EPS * EPS))
    # tape-major batch collapse: row index = t*B + b
    vals = jnp.transpose(vals4, (0, 2, 1, 3)).reshape(S, TB, H)
    keys = jnp.transpose(keys4, (0, 2, 1, 3)).reshape(S, TB, H)

    # -- fused hidden-projection weights with the gate activations folded in --
    # softmax over 2 logits == sigmoid of their difference, and the per-head
    # broadcast over H is linear, so both fold into the weight matrix.
    wa = params["w_act"].reshape(D, T, 7)
    ba = params["b_act"].reshape(1, T, 7)
    combos = [(0, 1), (2, 3), (4, None), (5, None), (6, None)]  # rd0, wd0, rwe0/1/2
    gw, gb = [], []
    for p, m in combos:
        w_col = wa[:, :, p] - (wa[:, :, m] if m is not None else 0.0)   # (D, T)
        b_col = ba[:, :, p] - (ba[:, :, m] if m is not None else 0.0)   # (1, T)
        gw.append(jnp.broadcast_to(w_col[:, :, None], (D, T, H)).reshape(D, TH))
        gb.append(jnp.broadcast_to(b_col[:, :, None], (1, T, H)).reshape(1, TH))
    w_hid = jnp.concatenate(gw + [params["w_q"]], axis=1)    # (D, 5*TH + TH)
    b_hid = jnp.concatenate(gb + [params["b_q"]], axis=1)    # (1, 5*TH + TH)

    out_flat, tape_tb = pl.pallas_call(
        _nam_fused_kernel,
        grid=(1,),
        in_specs=[
            pl.BlockSpec((S, B, 4 * D), lambda i: (0, 0, 0)),   # gx
            pl.BlockSpec((D, 4 * D), lambda i: (0, 0)),          # w_hh
            pl.BlockSpec((S, TB, H), lambda i: (0, 0, 0)),        # values
            pl.BlockSpec((S, TB, H), lambda i: (0, 0, 0)),        # keys (normed)
            pl.BlockSpec((D, 6 * TH), lambda i: (0, 0)),          # fused hidden W
            pl.BlockSpec((1, 6 * TH), lambda i: (0, 0)),          # fused hidden b
            pl.BlockSpec((TH, D), lambda i: (0, 0)),              # w_out
            pl.BlockSpec((1, D), lambda i: (0, 0)),               # b_out
        ],
        out_specs=[
            pl.BlockSpec((S * B, D), lambda i: (0, 0)),
            pl.BlockSpec((L, TB, H), lambda i: (0, 0, 0)),
        ],
        out_shape=[
            jax.ShapeDtypeStruct((S * B, D), f32),
            jax.ShapeDtypeStruct((L, TB, H), f32),
        ],
        scratch_shapes=[
            pltpu.VMEM((S, TB, H), f32),       # normalized queries
            pltpu.VMEM((5, S, TB, H), f32),    # gate probs, pre-broadcast over H
            pltpu.VMEM((S, TB, H), f32),       # per-step read-outs
            pltpu.VMEM((L, TB, H), f32),       # tape_key state
            pltpu.VMEM((L, TB, H), f32),       # rpos state (H-replicated)
            pltpu.VMEM((L, TB, H), f32),       # wpos state (H-replicated)
        ],
        compiler_params=pltpu.CompilerParams(dimension_semantics=("arbitrary",)),
    )(gx, params["w_hh"], vals, keys, w_hid, b_hid,
      params["w_out"], params["b_out"])

    outputs = out_flat.reshape(S, B, D)
    tape = tape_tb.reshape(L, T, B, H).transpose(0, 2, 1, 3).reshape(L, B, TH)
    return outputs, tape


# ---------------------------------------------------------------------------
# NAMTMAE forward (eval mode): embedding + LayerNorm + TM + classifier head.
# ---------------------------------------------------------------------------
def _layer_norm(x, gamma, beta, eps=1e-5):
    mu = jnp.mean(x, axis=-1, keepdims=True)
    var = jnp.mean(jnp.square(x - mu), axis=-1, keepdims=True)
    return (x - mu) * lax.rsqrt(var + eps) * gamma + beta


def namtmae_forward(tokens, params, tapelen):
    tok_t = tokens.T                                         # (S, B)
    src = jnp.take(params["emb"], tok_t, axis=0)             # (S, B, D)
    src = jnp.dot(src, params["w_emb"], precision=HP) + params["b_emb"]
    # TODO(synk): Dropout(0.2)/Dropout(0.1) are identity here (eval mode).
    src = _layer_norm(src, params["g_enc"], params["bt_enc"])
    outputs, tape = nam_turing_only_jump(src, params, tapelen)
    y = _layer_norm(outputs, params["g_fc"], params["bt_fc"])
    y = jax.nn.relu(y)
    logits = jnp.dot(y, params["w_fc"], precision=HP) + params["b_fc"]
    return jnp.transpose(logits, (1, 2, 0)), tape            # (B, V, S), (L, B, TH)


# ---------------------------------------------------------------------------
# Pure-JAX reference (faithful translation of the PyTorch forward)
# ---------------------------------------------------------------------------
def reference_tm(x, params, tapelen):
    S, B, D = x.shape
    T = int(params["n_tapes"])
    H = int(params["head_dim"])

    def lstm_step(carry, xt):
        h, c = carry
        gates = xt @ params["w_ih"] + h @ params["w_hh"] + params["b_lstm"][0]
        i_g = jax.nn.sigmoid(gates[:, :D])
        f_g = jax.nn.sigmoid(gates[:, D:2 * D])
        g_g = jnp.tanh(gates[:, 2 * D:3 * D])
        o_g = jax.nn.sigmoid(gates[:, 3 * D:])
        c = f_g * c + i_g * g_g
        h = o_g * jnp.tanh(c)
        return (h, c), h

    zeros = jnp.zeros((B, D), jnp.float32)
    _, hidden = lax.scan(lstm_step, (zeros, zeros), x)

    values = (x @ params["w_val"] + params["b_val"][0]).reshape(S, B, T, H)
    keys = (x @ params["w_key"] + params["b_key"][0]).reshape(S, B, T, H)
    keys = keys / jnp.maximum(jnp.linalg.norm(keys, axis=-1, keepdims=True), EPS)
    actions = (hidden @ params["w_act"] + params["b_act"][0]).reshape(S, B, T, 7)
    dir_r = jax.nn.softmax(actions[..., 0:2], axis=-1)
    dir_w = jax.nn.softmax(actions[..., 2:4], axis=-1)
    rweprobs = jax.nn.sigmoid(actions[..., 4:7])
    queries = (hidden @ params["w_q"] + params["b_q"][0]).reshape(S, B, T, H)
    queries = queries / jnp.maximum(jnp.linalg.norm(queries, axis=-1, keepdims=True), EPS)

    L = tapelen
    tape = jnp.zeros((L, B, T, H), jnp.float32)
    tape_key = jnp.zeros((L, B, T, H), jnp.float32)
    rpos = jnp.zeros((L, B, T), jnp.float32).at[0].set(1.0)
    wpos = jnp.zeros((L, B, T), jnp.float32).at[0].set(1.0)
    read_outs = []
    for i in range(S):
        rwe = rweprobs[i]
        rd = dir_r[i]
        wd = dir_w[i]
        nrpos = rpos / jnp.maximum(jnp.linalg.norm(rpos, axis=0, keepdims=True), EPS)
        nwpos = wpos / jnp.maximum(jnp.linalg.norm(wpos, axis=0, keepdims=True), EPS)
        oldval = jnp.einsum('lntc,lnt->ntc', tape, nwpos)
        newmem = jnp.einsum('lnt,ntc->lntc', nwpos,
                            values[i] * rwe[:, :, 1:2] - oldval * rwe[:, :, 2:3])
        tape = tape + newmem
        read_out = jnp.einsum('lntc,lnt->ntc', tape, nrpos)
        oldpos = jnp.einsum('lntc,ntc->lnt', tape_key, keys[i])
        newkey = jnp.einsum('lnt,ntc->lntc',
                            wpos * rwe[:, :, 1] - oldpos * rwe[:, :, 2], keys[i])
        tape_key = tape_key + newkey
        jpos = jnp.einsum('lntc,ntc->lnt', tape_key, queries[i])
        wpos = wpos * wd[None, :, :, 0] + jpos * wd[None, :, :, 1]
        read_outs.append(read_out * rwe[:, :, 0:1])
        rpos = rpos * rd[None, :, :, 0] + jpos * rd[None, :, :, 1]
    outputs = jnp.stack(read_outs).reshape(S, B, T * H)
    outputs = outputs @ params["w_out"] + params["b_out"][0]
    return outputs, tape.reshape(L, B, T * H)


def reference_namtmae(tokens, params, tapelen):
    tok_t = tokens.T
    src = jnp.take(params["emb"], tok_t, axis=0)
    src = src @ params["w_emb"] + params["b_emb"]
    src = _layer_norm(src, params["g_enc"], params["bt_enc"])
    outputs, tape = reference_tm(src, params, tapelen)
    y = _layer_norm(outputs, params["g_fc"], params["bt_fc"])
    y = jax.nn.relu(y)
    logits = y @ params["w_fc"] + params["b_fc"]
    return jnp.transpose(logits, (1, 2, 0)), tape


# ---------------------------------------------------------------------------
# Deterministic synthetic parameters (PyTorch-style uniform ranges)
# ---------------------------------------------------------------------------
def init_params(key, dim, vocab, n_tapes, head_dim):
    TH = n_tapes * head_dim
    ks = jax.random.split(key, 18)

    def u(k, shape, fan_in):
        bound = 1.0 / np.sqrt(fan_in)
        return jax.random.uniform(k, shape, jnp.float32, -bound, bound)

    return dict(
        n_tapes=n_tapes, head_dim=head_dim,
        emb=jax.random.normal(ks[0], (vocab, dim), jnp.float32),
        w_emb=u(ks[1], (dim, dim), dim), b_emb=u(ks[2], (1, dim), dim),
        g_enc=jnp.ones((dim,), jnp.float32), bt_enc=jnp.zeros((dim,), jnp.float32),
        w_ih=u(ks[3], (dim, 4 * dim), dim),
        w_hh=u(ks[4], (dim, 4 * dim), dim),
        b_lstm=u(ks[5], (1, 4 * dim), dim),          # bias_ih + bias_hh combined
        w_act=u(ks[6], (dim, 7 * n_tapes), dim), b_act=u(ks[7], (1, 7 * n_tapes), dim),
        w_val=u(ks[8], (dim, TH), dim), b_val=u(ks[9], (1, TH), dim),
        w_key=u(ks[10], (dim, TH), dim), b_key=u(ks[11], (1, TH), dim),
        w_q=u(ks[12], (dim, TH), dim), b_q=u(ks[13], (1, TH), dim),
        w_out=u(ks[14], (TH, dim), TH), b_out=u(ks[15], (1, dim), TH),
        g_fc=jnp.ones((dim,), jnp.float32), bt_fc=jnp.zeros((dim,), jnp.float32),
        w_fc=u(ks[16], (dim, vocab), dim), b_fc=u(ks[17], (1, vocab), dim),
    )


if __name__ == "__main__":
    dim, vocab, n_tapes, head_dim = 32, 50, 4, 64   # dim % n_tapes == 0; mem_size=64
    seqlen, batch, tapelen = 8, 2, 16

    key = jax.random.PRNGKey(0)
    kt, kp = jax.random.split(key)
    tokens = jax.random.randint(kt, (batch, seqlen), 0, vocab, dtype=jnp.int32)
    params = init_params(kp, dim, vocab, n_tapes, head_dim)

    out, tape = jax.block_until_ready(namtmae_forward(tokens, params, tapelen))

    with jax.default_matmul_precision("highest"):
        ref_out, ref_tape = reference_namtmae(tokens, params, tapelen)
    ref_out, ref_tape = jax.block_until_ready((ref_out, ref_tape))

    np.testing.assert_allclose(np.asarray(out), np.asarray(ref_out),
                               rtol=2e-2, atol=2e-3)
    np.testing.assert_allclose(np.asarray(tape), np.asarray(ref_tape),
                               rtol=2e-2, atol=2e-3)
    print("KERNEL_OK")
</pallas_src>

<mosaic_0001>
module attributes {stable_mosaic.version = 11 : i64} {
  func.func @_nam_fused_kernel(%arg0: i32, %arg1: memref<8x2x128xf32, #tpu.memory_space<vmem>>, %arg2: memref<32x128xf32, #tpu.memory_space<vmem>>, %arg3: memref<8x8x64xf32, #tpu.memory_space<vmem>>, %arg4: memref<8x8x64xf32, #tpu.memory_space<vmem>>, %arg5: memref<32x1536xf32, #tpu.memory_space<vmem>>, %arg6: memref<1x1536xf32, #tpu.memory_space<vmem>>, %arg7: memref<256x32xf32, #tpu.memory_space<vmem>>, %arg8: memref<1x32xf32, #tpu.memory_space<vmem>>, %arg9: memref<16x32xf32, #tpu.memory_space<vmem>>, %arg10: memref<16x8x64xf32, #tpu.memory_space<vmem>>, %arg11: memref<8x8x64xf32, #tpu.memory_space<vmem>>, %arg12: memref<5x8x8x64xf32, #tpu.memory_space<vmem>>, %arg13: memref<8x8x64xf32, #tpu.memory_space<vmem>>, %arg14: memref<16x8x64xf32, #tpu.memory_space<vmem>>, %arg15: memref<16x8x64xf32, #tpu.memory_space<vmem>>, %arg16: memref<16x8x64xf32, #tpu.memory_space<vmem>>) attributes {dimension_semantics = [#tpu.dimension_semantics<arbitrary>], iteration_bounds = array<i64: 1>, scalar_prefetch = 0 : i64, scratch_operands = 6 : i64, tpu.core_type = #tpu.core_type<tc>, window_params = [{pipeline_mode = #tpu.pipeline_mode<synchronous>, transform_indices = @transform_0, window_bounds = array<i64: 8, 2, 128>}, {pipeline_mode = #tpu.pipeline_mode<synchronous>, transform_indices = @transform_1, window_bounds = array<i64: 32, 128>}, {pipeline_mode = #tpu.pipeline_mode<synchronous>, transform_indices = @transform_2, window_bounds = array<i64: 8, 8, 64>}, {pipeline_mode = #tpu.pipeline_mode<synchronous>, transform_indices = @transform_3, window_bounds = array<i64: 8, 8, 64>}, {pipeline_mode = #tpu.pipeline_mode<synchronous>, transform_indices = @transform_4, window_bounds = array<i64: 32, 1536>}, {pipeline_mode = #tpu.pipeline_mode<synchronous>, transform_indices = @transform_5, window_bounds = array<i64: 1, 1536>}, {pipeline_mode = #tpu.pipeline_mode<synchronous>, transform_indices = @transform_6, window_bounds = array<i64: 256, 32>}, {pipeline_mode = #tpu.pipeline_mode<synchronous>, transform_indices = @transform_7, window_bounds = array<i64: 1, 32>}, {pipeline_mode = #tpu.pipeline_mode<synchronous>, transform_indices = @transform_8, window_bounds = array<i64: 16, 32>}, {pipeline_mode = #tpu.pipeline_mode<synchronous>, transform_indices = @transform_9, window_bounds = array<i64: 16, 8, 64>}]} {
    %c0 = arith.constant 0 : index
    %c0_0 = arith.constant 0 : index
    %0 = vector.load %arg2[%c0, %c0_0] : memref<32x128xf32, #tpu.memory_space<vmem>>, vector<32x128xf32>
    %cst = arith.constant 0.000000e+00 : f32
    %1 = vector.broadcast %cst : f32 to vector<2x32xf32>
    %cst_1 = arith.constant 0.000000e+00 : f32
    %2 = vector.broadcast %cst_1 : f32 to vector<2x32xf32>
    %c0_2 = arith.constant 0 : index
    %c0_3 = arith.constant 0 : index
    %c0_4 = arith.constant 0 : index
    %3 = vector.load %arg1[%c0_2, %c0_3, %c0_4] : memref<8x2x128xf32, #tpu.memory_space<vmem>>, vector<1x2x128xf32>
    %4 = vector.shape_cast %3 : vector<1x2x128xf32> to vector<2x128xf32>
    %cst_5 = arith.constant dense<0.000000e+00> : vector<2x128xf32>
    %5 = tpu.matmul %1, %0, %cst_5 {dimension_numbers = #tpu.dot_dimension_numbers<[1], [0], [0], [1], [0, 0, 1, 1], [], []>} : vector<2x32xf32>, vector<32x128xf32>, vector<2x128xf32> -> vector<2x128xf32>
    %6 = arith.addf %4, %5 : vector<2x128xf32>
    %7 = arith.negf %6 : vector<2x128xf32>
    %8 = math.exp %7 : vector<2x128xf32>
    %cst_6 = arith.constant 1.000000e+00 : f32
    %9 = vector.broadcast %cst_6 : f32 to vector<2x128xf32>
    %10 = arith.addf %9, %8 : vector<2x128xf32>
    %11 = arith.divf %9, %10 : vector<2x128xf32>
    %12 = math.tanh %6 : vector<2x128xf32>
    %13 = vector.extract_strided_slice %11 {offsets = [0, 0], sizes = [2, 32], strides = [1, 1]} : vector<2x128xf32> to vector<2x32xf32>
    %14 = vector.extract_strided_slice %11 {offsets = [0, 32], sizes = [2, 32], strides = [1, 1]} : vector<2x128xf32> to vector<2x32xf32>
    %15 = vector.extract_strided_slice %11 {offsets = [0, 96], sizes = [2, 32], strides = [1, 1]} : vector<2x128xf32> to vector<2x32xf32>
    %16 = vector.extract_strided_slice %12 {offsets = [0, 64], sizes = [2, 32], strides = [1, 1]} : vector<2x128xf32> to vector<2x32xf32>
    %17 = arith.mulf %14, %2 : vector<2x32xf32>
    %18 = arith.mulf %13, %16 : vector<2x32xf32>
    %19 = arith.addf %17, %18 : vector<2x32xf32>
    %20 = math.tanh %19 : vector<2x32xf32>
    %21 = arith.mulf %15, %20 : vector<2x32xf32>
    %c1 = arith.constant 1 : index
    %c0_7 = arith.constant 0 : index
    %c0_8 = arith.constant 0 : index
    %22 = vector.load %arg1[%c1, %c0_7, %c0_8] : memref<8x2x128xf32, #tpu.memory_space<vmem>>, vector<1x2x128xf32>
    %23 = vector.shape_cast %22 : vector<1x2x128xf32> to vector<2x128xf32>
    %cst_9 = arith.constant dense<0.000000e+00> : vector<2x128xf32>
    %24 = tpu.matmul %21, %0, %cst_9 {dimension_numbers = #tpu.dot_dimension_numbers<[1], [0], [0], [1], [0, 0, 1, 1], [], []>} : vector<2x32xf32>, vector<32x128xf32>, vector<2x128xf32> -> vector<2x128xf32>
    %25 = arith.addf %23, %24 : vector<2x128xf32>
    %26 = arith.negf %25 : vector<2x128xf32>
    %27 = math.exp %26 : vector<2x128xf32>
    %cst_10 = arith.constant 1.000000e+00 : f32
    %28 = vector.broadcast %cst_10 : f32 to vector<2x128xf32>
    %29 = arith.addf %28, %27 : vector<2x128xf32>
    %30 = arith.divf %28, %29 : vector<2x128xf32>
    %31 = math.tanh %25 : vector<2x128xf32>
    %32 = vector.extract_strided_slice %30 {offsets = [0, 0], sizes = [2, 32], strides = [1, 1]} : vector<2x128xf32> to vector<2x32xf32>
    %33 = vector.extract_strided_slice %30 {offsets = [0, 32], sizes = [2, 32], strides = [1, 1]} : vector<2x128xf32> to vector<2x32xf32>
    %34 = vector.extract_strided_slice %30 {offsets = [0, 96], sizes = [2, 32], strides = [1, 1]} : vector<2x128xf32> to vector<2x32xf32>
    %35 = vector.extract_strided_slice %31 {offsets = [0, 64], sizes = [2, 32], strides = [1, 1]} : vector<2x128xf32> to vector<2x32xf32>
    %36 = arith.mulf %33, %19 : vector<2x32xf32>
    %37 = arith.mulf %32, %35 : vector<2x32xf32>
    %38 = arith.addf %36, %37 : vector<2x32xf32>
    %39 = math.tanh %38 : vector<2x32xf32>
    %40 = arith.mulf %34, %39 : vector<2x32xf32>
    %c2 = arith.constant 2 : index
    %c0_11 = arith.constant 0 : index
    %c0_12 = arith.constant 0 : index
    %41 = vector.load %arg1[%c2, %c0_11, %c0_12] : memref<8x2x128xf32, #tpu.memory_space<vmem>>, vector<1x2x128xf32>
    %42 = vector.shape_cast %41 : vector<1x2x128xf32> to vector<2x128xf32>
    %cst_13 = arith.constant dense<0.000000e+00> : vector<2x128xf32>
    %43 = tpu.matmul %40, %0, %cst_13 {dimension_numbers = #tpu.dot_dimension_numbers<[1], [0], [0], [1], [0, 0, 1, 1], [], []>} : vector<2x32xf32>, vector<32x128xf32>, vector<2x128xf32> -> vector<2x128xf32>
    %44 = arith.addf %42, %43 : vector<2x128xf32>
    %45 = arith.negf %44 : vector<2x128xf32>
    %46 = math.exp %45 : vector<2x128xf32>
    %cst_14 = arith.constant 1.000000e+00 : f32
    %47 = vector.broadcast %cst_14 : f32 to vector<2x128xf32>
    %48 = arith.addf %47, %46 : vector<2x128xf32>
    %49 = arith.divf %47, %48 : vector<2x128xf32>
    %50 = math.tanh %44 : vector<2x128xf32>
    %51 = vector.extract_strided_slice %49 {offsets = [0, 0], sizes = [2, 32], strides = [1, 1]} : vector<2x128xf32> to vector<2x32xf32>
    %52 = vector.extract_strided_slice %49 {offsets = [0, 32], sizes = [2, 32], strides = [1, 1]} : vector<2x128xf32> to vector<2x32xf32>
    %53 = vector.extract_strided_slice %49 {offsets = [0, 96], sizes = [2, 32], strides = [1, 1]} : vector<2x128xf32> to vector<2x32xf32>
    %54 = vector.extract_strided_slice %50 {offsets = [0, 64], sizes = [2, 32], strides = [1, 1]} : vector<2x128xf32> to vector<2x32xf32>
    %55 = arith.mulf %52, %38 : vector<2x32xf32>
    %56 = arith.mulf %51, %54 : vector<2x32xf32>
    %57 = arith.addf %55, %56 : vector<2x32xf32>
    %58 = math.tanh %57 : vector<2x32xf32>
    %59 = arith.mulf %53, %58 : vector<2x32xf32>
    %c3 = arith.constant 3 : index
    %c0_15 = arith.constant 0 : index
    %c0_16 = arith.constant 0 : index
    %60 = vector.load %arg1[%c3, %c0_15, %c0_16] : memref<8x2x128xf32, #tpu.memory_space<vmem>>, vector<1x2x128xf32>
    %61 = vector.shape_cast %60 : vector<1x2x128xf32> to vector<2x128xf32>
    %cst_17 = arith.constant dense<0.000000e+00> : vector<2x128xf32>
    %62 = tpu.matmul %59, %0, %cst_17 {dimension_numbers = #tpu.dot_dimension_numbers<[1], [0], [0], [1], [0, 0, 1, 1], [], []>} : vector<2x32xf32>, vector<32x128xf32>, vector<2x128xf32> -> vector<2x128xf32>
    %63 = arith.addf %61, %62 : vector<2x128xf32>
    %64 = arith.negf %63 : vector<2x128xf32>
    %65 = math.exp %64 : vector<2x128xf32>
    %cst_18 = arith.constant 1.000000e+00 : f32
    %66 = vector.broadcast %cst_18 : f32 to vector<2x128xf32>
    %67 = arith.addf %66, %65 : vector<2x128xf32>
    %68 = arith.divf %66, %67 : vector<2x128xf32>
    %69 = math.tanh %63 : vector<2x128xf32>
    %70 = vector.extract_strided_slice %68 {offsets = [0, 0], sizes = [2, 32], strides = [1, 1]} : vector<2x128xf32> to vector<2x32xf32>
    %71 = vector.extract_strided_slice %68 {offsets = [0, 32], sizes = [2, 32], strides = [1, 1]} : vector<2x128xf32> to vector<2x32xf32>
    %72 = vector.extract_strided_slice %68 {offsets = [0, 96], sizes = [2, 32], strides = [1, 1]} : vector<2x128xf32> to vector<2x32xf32>
    %73 = vector.extract_strided_slice %69 {offsets = [0, 64], sizes = [2, 32], strides = [1, 1]} : vector<2x128xf32> to vector<2x32xf32>
    %74 = arith.mulf %71, %57 : vector<2x32xf32>
    %75 = arith.mulf %70, %73 : vector<2x32xf32>
    %76 = arith.addf %74, %75 : vector<2x32xf32>
    %77 = math.tanh %76 : vector<2x32xf32>
    %78 = arith.mulf %72, %77 : vector<2x32xf32>
    %c4 = arith.constant 4 : index
    %c0_19 = arith.constant 0 : index
    %c0_20 = arith.constant 0 : index
    %79 = vector.load %arg1[%c4, %c0_19, %c0_20] : memref<8x2x128xf32, #tpu.memory_space<vmem>>, vector<1x2x128xf32>
    %80 = vector.shape_cast %79 : vector<1x2x128xf32> to vector<2x128xf32>
    %cst_21 = arith.constant dense<0.000000e+00> : vector<2x128xf32>
    %81 = tpu.matmul %78, %0, %cst_21 {dimension_numbers = #tpu.dot_dimension_numbers<[1], [0], [0], [1], [0, 0, 1, 1], [], []>} : vector<2x32xf32>, vector<32x128xf32>, vector<2x128xf32> -> vector<2x128xf32>
    %82 = arith.addf %80, %81 : vector<2x128xf32>
    %83 = arith.negf %82 : vector<2x128xf32>
    %84 = math.exp %83 : vector<2x128xf32>
    %cst_22 = arith.constant 1.000000e+00 : f32
    %85 = vector.broadcast %cst_22 : f32 to vector<2x128xf32>
    %86 = arith.addf %85, %84 : vector<2x128xf32>
    %87 = arith.divf %85, %86 : vector<2x128xf32>
    %88 = math.tanh %82 : vector<2x128xf32>
    %89 = vector.extract_strided_slice %87 {offsets = [0, 0], sizes = [2, 32], strides = [1, 1]} : vector<2x128xf32> to vector<2x32xf32>
    %90 = vector.extract_strided_slice %87 {offsets = [0, 32], sizes = [2, 32], strides = [1, 1]} : vector<2x128xf32> to vector<2x32xf32>
    %91 = vector.extract_strided_slice %87 {offsets = [0, 96], sizes = [2, 32], strides = [1, 1]} : vector<2x128xf32> to vector<2x32xf32>
    %92 = vector.extract_strided_slice %88 {offsets = [0, 64], sizes = [2, 32], strides = [1, 1]} : vector<2x128xf32> to vector<2x32xf32>
    %93 = arith.mulf %90, %76 : vector<2x32xf32>
    %94 = arith.mulf %89, %92 : vector<2x32xf32>
    %95 = arith.addf %93, %94 : vector<2x32xf32>
    %96 = math.tanh %95 : vector<2x32xf32>
    %97 = arith.mulf %91, %96 : vector<2x32xf32>
    %c5 = arith.constant 5 : index
    %c0_23 = arith.constant 0 : index
    %c0_24 = arith.constant 0 : index
    %98 = vector.load %arg1[%c5, %c0_23, %c0_24] : memref<8x2x128xf32, #tpu.memory_space<vmem>>, vector<1x2x128xf32>
    %99 = vector.shape_cast %98 : vector<1x2x128xf32> to vector<2x128xf32>
    %cst_25 = arith.constant dense<0.000000e+00> : vector<2x128xf32>
    %100 = tpu.matmul %97, %0, %cst_25 {dimension_numbers = #tpu.dot_dimension_numbers<[1], [0], [0], [1], [0, 0, 1, 1], [], []>} : vector<2x32xf32>, vector<32x128xf32>, vector<2x128xf32> -> vector<2x128xf32>
    %101 = arith.addf %99, %100 : vector<2x128xf32>
    %102 = arith.negf %101 : vector<2x128xf32>
    %103 = math.exp %102 : vector<2x128xf32>
    %cst_26 = arith.constant 1.000000e+00 : f32
    %104 = vector.broadcast %cst_26 : f32 to vector<2x128xf32>
    %105 = arith.addf %104, %103 : vector<2x128xf32>
    %106 = arith.divf %104, %105 : vector<2x128xf32>
    %107 = math.tanh %101 : vector<2x128xf32>
    %108 = vector.extract_strided_slice %106 {offsets = [0, 0], sizes = [2, 32], strides = [1, 1]} : vector<2x128xf32> to vector<2x32xf32>
    %109 = vector.extract_strided_slice %106 {offsets = [0, 32], sizes = [2, 32], strides = [1, 1]} : vector<2x128xf32> to vector<2x32xf32>
    %110 = vector.extract_strided_slice %106 {offsets = [0, 96], sizes = [2, 32], strides = [1, 1]} : vector<2x128xf32> to vector<2x32xf32>
    %111 = vector.extract_strided_slice %107 {offsets = [0, 64], sizes = [2, 32], strides = [1, 1]} : vector<2x128xf32> to vector<2x32xf32>
    %112 = arith.mulf %109, %95 : vector<2x32xf32>
    %113 = arith.mulf %108, %111 : vector<2x32xf32>
    %114 = arith.addf %112, %113 : vector<2x32xf32>
    %115 = math.tanh %114 : vector<2x32xf32>
    %116 = arith.mulf %110, %115 : vector<2x32xf32>
    %c6 = arith.constant 6 : index
    %c0_27 = arith.constant 0 : index
    %c0_28 = arith.constant 0 : index
    %117 = vector.load %arg1[%c6, %c0_27, %c0_28] : memref<8x2x128xf32, #tpu.memory_space<vmem>>, vector<1x2x128xf32>
    %118 = vector.shape_cast %117 : vector<1x2x128xf32> to vector<2x128xf32>
    %cst_29 = arith.constant dense<0.000000e+00> : vector<2x128xf32>
    %119 = tpu.matmul %116, %0, %cst_29 {dimension_numbers = #tpu.dot_dimension_numbers<[1], [0], [0], [1], [0, 0, 1, 1], [], []>} : vector<2x32xf32>, vector<32x128xf32>, vector<2x128xf32> -> vector<2x128xf32>
    %120 = arith.addf %118, %119 : vector<2x128xf32>
    %121 = arith.negf %120 : vector<2x128xf32>
    %122 = math.exp %121 : vector<2x128xf32>
    %cst_30 = arith.constant 1.000000e+00 : f32
    %123 = vector.broadcast %cst_30 : f32 to vector<2x128xf32>
    %124 = arith.addf %123, %122 : vector<2x128xf32>
    %125 = arith.divf %123, %124 : vector<2x128xf32>
    %126 = math.tanh %120 : vector<2x128xf32>
    %127 = vector.extract_strided_slice %125 {offsets = [0, 0], sizes = [2, 32], strides = [1, 1]} : vector<2x128xf32> to vector<2x32xf32>
    %128 = vector.extract_strided_slice %125 {offsets = [0, 32], sizes = [2, 32], strides = [1, 1]} : vector<2x128xf32> to vector<2x32xf32>
    %129 = vector.extract_strided_slice %125 {offsets = [0, 96], sizes = [2, 32], strides = [1, 1]} : vector<2x128xf32> to vector<2x32xf32>
    %130 = vector.extract_strided_slice %126 {offsets = [0, 64], sizes = [2, 32], strides = [1, 1]} : vector<2x128xf32> to vector<2x32xf32>
    %131 = arith.mulf %128, %114 : vector<2x32xf32>
    %132 = arith.mulf %127, %130 : vector<2x32xf32>
    %133 = arith.addf %131, %132 : vector<2x32xf32>
    %134 = math.tanh %133 : vector<2x32xf32>
    %135 = arith.mulf %129, %134 : vector<2x32xf32>
    %c7 = arith.constant 7 : index
    %c0_31 = arith.constant 0 : index
    %c0_32 = arith.constant 0 : index
    %136 = vector.load %arg1[%c7, %c0_31, %c0_32] : memref<8x2x128xf32, #tpu.memory_space<vmem>>, vector<1x2x128xf32>
    %137 = vector.shape_cast %136 : vector<1x2x128xf32> to vector<2x128xf32>
    %cst_33 = arith.constant dense<0.000000e+00> : vector<2x128xf32>
    %138 = tpu.matmul %135, %0, %cst_33 {dimension_numbers = #tpu.dot_dimension_numbers<[1], [0], [0], [1], [0, 0, 1, 1], [], []>} : vector<2x32xf32>, vector<32x128xf32>, vector<2x128xf32> -> vector<2x128xf32>
    %139 = arith.addf %137, %138 : vector<2x128xf32>
    %140 = arith.negf %139 : vector<2x128xf32>
    %141 = math.exp %140 : vector<2x128xf32>
    %cst_34 = arith.constant 1.000000e+00 : f32
    %142 = vector.broadcast %cst_34 : f32 to vector<2x128xf32>
    %143 = arith.addf %142, %141 : vector<2x128xf32>
    %144 = arith.divf %142, %143 : vector<2x128xf32>
    %145 = math.tanh %139 : vector<2x128xf32>
    %146 = vector.extract_strided_slice %144 {offsets = [0, 0], sizes = [2, 32], strides = [1, 1]} : vector<2x128xf32> to vector<2x32xf32>
    %147 = vector.extract_strided_slice %144 {offsets = [0, 32], sizes = [2, 32], strides = [1, 1]} : vector<2x128xf32> to vector<2x32xf32>
    %148 = vector.extract_strided_slice %144 {offsets = [0, 96], sizes = [2, 32], strides = [1, 1]} : vector<2x128xf32> to vector<2x32xf32>
    %149 = vector.extract_strided_slice %145 {offsets = [0, 64], sizes = [2, 32], strides = [1, 1]} : vector<2x128xf32> to vector<2x32xf32>
    %150 = arith.mulf %147, %133 : vector<2x32xf32>
    %151 = arith.mulf %146, %149 : vector<2x32xf32>
    %152 = arith.addf %150, %151 : vector<2x32xf32>
    %153 = math.tanh %152 : vector<2x32xf32>
    %154 = arith.mulf %148, %153 : vector<2x32xf32>
    %155 = tpu.concatenate %21, %40, %59, %78, %97, %116, %135, %154 in 0 : vector<2x32xf32>, vector<2x32xf32>, vector<2x32xf32>, vector<2x32xf32>, vector<2x32xf32>, vector<2x32xf32>, vector<2x32xf32>, vector<2x32xf32> -> vector<16x32xf32>
    %c0_35 = arith.constant 0 : index
    %c0_36 = arith.constant 0 : index
    %156 = vector.load %arg5[%c0_35, %c0_36] : memref<32x1536xf32, #tpu.memory_space<vmem>>, vector<32x1536xf32>
    %cst_37 = arith.constant dense<0.000000e+00> : vector<16x1536xf32>
    %157 = tpu.matmul %155, %156, %cst_37 {dimension_numbers = #tpu.dot_dimension_numbers<[1], [0], [0], [1], [0, 0, 1, 1], [], []>} : vector<16x32xf32>, vector<32x1536xf32>, vector<16x1536xf32> -> vector<16x1536xf32>
    %c0_38 = arith.constant 0 : index
    %c0_39 = arith.constant 0 : index
    %158 = vector.load %arg6[%c0_38, %c0_39] : memref<1x1536xf32, #tpu.memory_space<vmem>>, vector<1x1536xf32>
    %159 = vector.broadcast %158 : vector<1x1536xf32> to vector<16x1536xf32>
    %160 = arith.addf %157, %159 : vector<16x1536xf32>
    %161 = vector.extract_strided_slice %160 {offsets = [0, 0], sizes = [16, 1280], strides = [1, 1]} : vector<16x1536xf32> to vector<16x1280xf32>
    %162 = arith.negf %161 : vector<16x1280xf32>
    %163 = math.exp %162 : vector<16x1280xf32>
    %cst_40 = arith.constant 1.000000e+00 : f32
    %164 = vector.broadcast %cst_40 : f32 to vector<16x1280xf32>
    %165 = arith.addf %164, %163 : vector<16x1280xf32>
    %166 = arith.divf %164, %165 : vector<16x1280xf32>
    %167 = vector.extract_strided_slice %160 {offsets = [0, 1280], sizes = [16, 256], strides = [1, 1]} : vector<16x1536xf32> to vector<16x256xf32>
    %168 = vector.extract_strided_slice %167 {offsets = [0, 0], sizes = [16, 64], strides = [1, 1]} : vector<16x256xf32> to vector<16x64xf32>
    %169 = arith.mulf %168, %168 : vector<16x64xf32>
    %cst_41 = arith.constant dense<0.000000e+00> : vector<16xf32>
    %170 = vector.multi_reduction <add>, %169, %cst_41 [1] : vector<16x64xf32> to vector<16xf32>
    %171 = vector.shape_cast %170 : vector<16xf32> to vector<16x1xf32>
    %cst_42 = arith.constant 1.000000e-24 : f32
    %172 = vector.broadcast %cst_42 : f32 to vector<16x1xf32>
    %173 = arith.maximumf %171, %172 : vector<16x1xf32>
    %174 = math.rsqrt %173 : vector<16x1xf32>
    %175 = vector.broadcast %174 : vector<16x1xf32> to vector<16x64xf32>
    %176 = arith.mulf %168, %175 : vector<16x64xf32>
    %177 = vector.shape_cast %176 : vector<16x64xf32> to vector<8x2x64xf32>
    %c0_43 = arith.constant 0 : index
    %c0_44 = arith.constant 0 : index
    %c0_45 = arith.constant 0 : index
    %178 = vector.load %arg11[%c0_43, %c0_44, %c0_45] : memref<8x8x64xf32, #tpu.memory_space<vmem>>, vector<8x2x64xf32>
    tpu.vector_store %arg11[%c0_43, %c0_44, %c0_45], %177 {strides = array<i32>} : memref<8x8x64xf32, #tpu.memory_space<vmem>>, vector<8x2x64xf32>,
    %179 = vector.extract_strided_slice %166 {offsets = [0, 0], sizes = [16, 64], strides = [1, 1]} : vector<16x1280xf32> to vector<16x64xf32>
    %180 = vector.shape_cast %179 : vector<16x64xf32> to vector<8x2x64xf32>
    %c0_46 = arith.constant 0 : index
    %c0_47 = arith.constant 0 : index
    %c0_48 = arith.constant 0 : index
    %c0_49 = arith.constant 0 : index
    %181 = vector.load %arg12[%c0_46, %c0_47, %c0_48, %c0_49] : memref<5x8x8x64xf32, #tpu.memory_space<vmem>>, vector<1x8x2x64xf32>
    %182 = vector.shape_cast %181 : vector<1x8x2x64xf32> to vector<8x2x64xf32>
    %183 = vector.shape_cast %180 : vector<8x2x64xf32> to vector<1x8x2x64xf32>
    tpu.vector_store %arg12[%c0_46, %c0_47, %c0_48, %c0_49], %183 {strides = array<i32>} : memref<5x8x8x64xf32, #tpu.memory_space<vmem>>, vector<1x8x2x64xf32>,
    %184 = vector.extract_strided_slice %166 {offsets = [0, 256], sizes = [16, 64], strides = [1, 1]} : vector<16x1280xf32> to vector<16x64xf32>
    %185 = vector.shape_cast %184 : vector<16x64xf32> to vector<8x2x64xf32>
    %c1_50 = arith.constant 1 : index
    %c0_51 = arith.constant 0 : index
    %c0_52 = arith.constant 0 : index
    %c0_53 = arith.constant 0 : index
    %186 = vector.load %arg12[%c1_50, %c0_51, %c0_52, %c0_53] : memref<5x8x8x64xf32, #tpu.memory_space<vmem>>, vector<1x8x2x64xf32>
    %187 = vector.shape_cast %186 : vector<1x8x2x64xf32> to vector<8x2x64xf32>
    %188 = vector.shape_cast %185 : vector<8x2x64xf32> to vector<1x8x2x64xf32>
    tpu.vector_store %arg12[%c1_50, %c0_51, %c0_52, %c0_53], %188 {strides = array<i32>} : memref<5x8x8x64xf32, #tpu.memory_space<vmem>>, vector<1x8x2x64xf32>,
    %189 = vector.extract_strided_slice %166 {offsets = [0, 512], sizes = [16, 64], strides = [1, 1]} : vector<16x1280xf32> to vector<16x64xf32>
    %190 = vector.shape_cast %189 : vector<16x64xf32> to vector<8x2x64xf32>
    %c2_54 = arith.constant 2 : index
    %c0_55 = arith.constant 0 : index
    %c0_56 = arith.constant 0 : index
    %c0_57 = arith.constant 0 : index
    %191 = vector.load %arg12[%c2_54, %c0_55, %c0_56, %c0_57] : memref<5x8x8x64xf32, #tpu.memory_space<vmem>>, vector<1x8x2x64xf32>
    %192 = vector.shape_cast %191 : vector<1x8x2x64xf32> to vector<8x2x64xf32>
    %193 = vector.shape_cast %190 : vector<8x2x64xf32> to vector<1x8x2x64xf32>
    tpu.vector_store %arg12[%c2_54, %c0_55, %c0_56, %c0_57], %193 {strides = array<i32>} : memref<5x8x8x64xf32, #tpu.memory_space<vmem>>, vector<1x8x2x64xf32>,
    %194 = vector.extract_strided_slice %166 {offsets = [0, 768], sizes = [16, 64], strides = [1, 1]} : vector<16x1280xf32> to vector<16x64xf32>
    %195 = vector.shape_cast %194 : vector<16x64xf32> to vector<8x2x64xf32>
    %c3_58 = arith.constant 3 : index
    %c0_59 = arith.constant 0 : index
    %c0_60 = arith.constant 0 : index
    %c0_61 = arith.constant 0 : index
    %196 = vector.load %arg12[%c3_58, %c0_59, %c0_60, %c0_61] : memref<5x8x8x64xf32, #tpu.memory_space<vmem>>, vector<1x8x2x64xf32>
    %197 = vector.shape_cast %196 : vector<1x8x2x64xf32> to vector<8x2x64xf32>
    %198 = vector.shape_cast %195 : vector<8x2x64xf32> to vector<1x8x2x64xf32>
    tpu.vector_store %arg12[%c3_58, %c0_59, %c0_60, %c0_61], %198 {strides = array<i32>} : memref<5x8x8x64xf32, #tpu.memory_space<vmem>>, vector<1x8x2x64xf32>,
    %199 = vector.extract_strided_slice %166 {offsets = [0, 1024], sizes = [16, 64], strides = [1, 1]} : vector<16x1280xf32> to vector<16x64xf32>
    %200 = vector.shape_cast %199 : vector<16x64xf32> to vector<8x2x64xf32>
    %c4_62 = arith.constant 4 : index
    %c0_63 = arith.constant 0 : index
    %c0_64 = arith.constant 0 : index
    %c0_65 = arith.constant 0 : index
    %201 = vector.load %arg12[%c4_62, %c0_63, %c0_64, %c0_65] : memref<5x8x8x64xf32, #tpu.memory_space<vmem>>, vector<1x8x2x64xf32>
    %202 = vector.shape_cast %201 : vector<1x8x2x64xf32> to vector<8x2x64xf32>
    %203 = vector.shape_cast %200 : vector<8x2x64xf32> to vector<1x8x2x64xf32>
    tpu.vector_store %arg12[%c4_62, %c0_63, %c0_64, %c0_65], %203 {strides = array<i32>} : memref<5x8x8x64xf32, #tpu.memory_space<vmem>>, vector<1x8x2x64xf32>,
    %204 = vector.extract_strided_slice %167 {offsets = [0, 64], sizes = [16, 64], strides = [1, 1]} : vector<16x256xf32> to vector<16x64xf32>
    %205 = arith.mulf %204, %204 : vector<16x64xf32>
    %cst_66 = arith.constant dense<0.000000e+00> : vector<16xf32>
    %206 = vector.multi_reduction <add>, %205, %cst_66 [1] : vector<16x64xf32> to vector<16xf32>
    %207 = vector.shape_cast %206 : vector<16xf32> to vector<16x1xf32>
    %cst_67 = arith.constant 1.000000e-24 : f32
    %208 = vector.broadcast %cst_67 : f32 to vector<16x1xf32>
    %209 = arith.maximumf %207, %208 : vector<16x1xf32>
    %210 = math.rsqrt %209 : vector<16x1xf32>
    %211 = vector.broadcast %210 : vector<16x1xf32> to vector<16x64xf32>
    %212 = arith.mulf %204, %211 : vector<16x64xf32>
    %213 = vector.shape_cast %212 : vector<16x64xf32> to vector<8x2x64xf32>
    %c0_68 = arith.constant 0 : index
    %c2_69 = arith.constant 2 : index
    %c0_70 = arith.constant 0 : index
    %214 = vector.load %arg11[%c0_68, %c2_69, %c0_70] : memref<8x8x64xf32, #tpu.memory_space<vmem>>, vector<8x2x64xf32>
    tpu.vector_store %arg11[%c0_68, %c2_69, %c0_70], %213 {strides = array<i32>} : memref<8x8x64xf32, #tpu.memory_space<vmem>>, vector<8x2x64xf32>,
    %215 = vector.extract_strided_slice %166 {offsets = [0, 64], sizes = [16, 64], strides = [1, 1]} : vector<16x1280xf32> to vector<16x64xf32>
    %216 = vector.shape_cast %215 : vector<16x64xf32> to vector<8x2x64xf32>
    %c0_71 = arith.constant 0 : index
    %c0_72 = arith.constant 0 : index
    %c2_73 = arith.constant 2 : index
    %c0_74 = arith.constant 0 : index
    %217 = vector.load %arg12[%c0_71, %c0_72, %c2_73, %c0_74] : memref<5x8x8x64xf32, #tpu.memory_space<vmem>>, vector<1x8x2x64xf32>
    %218 = vector.shape_cast %217 : vector<1x8x2x64xf32> to vector<8x2x64xf32>
    %219 = vector.shape_cast %216 : vector<8x2x64xf32> to vector<1x8x2x64xf32>
    tpu.vector_store %arg12[%c0_71, %c0_72, %c2_73, %c0_74], %219 {strides = array<i32>} : memref<5x8x8x64xf32, #tpu.memory_space<vmem>>, vector<1x8x2x64xf32>,
    %220 = vector.extract_strided_slice %166 {offsets = [0, 320], sizes = [16, 64], strides = [1, 1]} : vector<16x1280xf32> to vector<16x64xf32>
    %221 = vector.shape_cast %220 : vector<16x64xf32> to vector<8x2x64xf32>
    %c1_75 = arith.constant 1 : index
    %c0_76 = arith.constant 0 : index
    %c2_77 = arith.constant 2 : index
    %c0_78 = arith.constant 0 : index
    %222 = vector.load %arg12[%c1_75, %c0_76, %c2_77, %c0_78] : memref<5x8x8x64xf32, #tpu.memory_space<vmem>>, vector<1x8x2x64xf32>
    %223 = vector.shape_cast %222 : vector<1x8x2x64xf32> to vector<8x2x64xf32>
    %224 = vector.shape_cast %221 : vector<8x2x64xf32> to vector<1x8x2x64xf32>
    tpu.vector_store %arg12[%c1_75, %c0_76, %c2_77, %c0_78], %224 {strides = array<i32>} : memref<5x8x8x64xf32, #tpu.memory_space<vmem>>, vector<1x8x2x64xf32>,
    %225 = vector.extract_strided_slice %166 {offsets = [0, 576], sizes = [16, 64], strides = [1, 1]} : vector<16x1280xf32> to vector<16x64xf32>
    %226 = vector.shape_cast %225 : vector<16x64xf32> to vector<8x2x64xf32>
    %c2_79 = arith.constant 2 : index
    %c0_80 = arith.constant 0 : index
    %c2_81 = arith.constant 2 : index
    %c0_82 = arith.constant 0 : index
    %227 = vector.load %arg12[%c2_79, %c0_80, %c2_81, %c0_82] : memref<5x8x8x64xf32, #tpu.memory_space<vmem>>, vector<1x8x2x64xf32>
    %228 = vector.shape_cast %227 : vector<1x8x2x64xf32> to vector<8x2x64xf32>
    %229 = vector.shape_cast %226 : vector<8x2x64xf32> to vector<1x8x2x64xf32>
    tpu.vector_store %arg12[%c2_79, %c0_80, %c2_81, %c0_82], %229 {strides = array<i32>} : memref<5x8x8x64xf32, #tpu.memory_space<vmem>>, vector<1x8x2x64xf32>,
    %230 = vector.extract_strided_slice %166 {offsets = [0, 832], sizes = [16, 64], strides = [1, 1]} : vector<16x1280xf32> to vector<16x64xf32>
    %231 = vector.shape_cast %230 : vector<16x64xf32> to vector<8x2x64xf32>
    %c3_83 = arith.constant 3 : index
    %c0_84 = arith.constant 0 : index
    %c2_85 = arith.constant 2 : index
    %c0_86 = arith.constant 0 : index
    %232 = vector.load %arg12[%c3_83, %c0_84, %c2_85, %c0_86] : memref<5x8x8x64xf32, #tpu.memory_space<vmem>>, vector<1x8x2x64xf32>
    %233 = vector.shape_cast %232 : vector<1x8x2x64xf32> to vector<8x2x64xf32>
    %234 = vector.shape_cast %231 : vector<8x2x64xf32> to vector<1x8x2x64xf32>
    tpu.vector_store %arg12[%c3_83, %c0_84, %c2_85, %c0_86], %234 {strides = array<i32>} : memref<5x8x8x64xf32, #tpu.memory_space<vmem>>, vector<1x8x2x64xf32>,
    %235 = vector.extract_strided_slice %166 {offsets = [0, 1088], sizes = [16, 64], strides = [1, 1]} : vector<16x1280xf32> to vector<16x64xf32>
    %236 = vector.shape_cast %235 : vector<16x64xf32> to vector<8x2x64xf32>
    %c4_87 = arith.constant 4 : index
    %c0_88 = arith.constant 0 : index
    %c2_89 = arith.constant 2 : index
    %c0_90 = arith.constant 0 : index
    %237 = vector.load %arg12[%c4_87, %c0_88, %c2_89, %c0_90] : memref<5x8x8x64xf32, #tpu.memory_space<vmem>>, vector<1x8x2x64xf32>
    %238 = vector.shape_cast %237 : vector<1x8x2x64xf32> to vector<8x2x64xf32>
    %239 = vector.shape_cast %236 : vector<8x2x64xf32> to vector<1x8x2x64xf32>
    tpu.vector_store %arg12[%c4_87, %c0_88, %c2_89, %c0_90], %239 {strides = array<i32>} : memref<5x8x8x64xf32, #tpu.memory_space<vmem>>, vector<1x8x2x64xf32>,
    %240 = vector.extract_strided_slice %167 {offsets = [0, 128], sizes = [16, 64], strides = [1, 1]} : vector<16x256xf32> to vector<16x64xf32>
    %241 = arith.mulf %240, %240 : vector<16x64xf32>
    %cst_91 = arith.constant dense<0.000000e+00> : vector<16xf32>
    %242 = vector.multi_reduction <add>, %241, %cst_91 [1] : vector<16x64xf32> to vector<16xf32>
    %243 = vector.shape_cast %242 : vector<16xf32> to vector<16x1xf32>
    %cst_92 = arith.constant 1.000000e-24 : f32
    %244 = vector.broadcast %cst_92 : f32 to vector<16x1xf32>
    %245 = arith.maximumf %243, %244 : vector<16x1xf32>
    %246 = math.rsqrt %245 : vector<16x1xf32>
    %247 = vector.broadcast %246 : vector<16x1xf32> to vector<16x64xf32>
    %248 = arith.mulf %240, %247 : vector<16x64xf32>
    %249 = vector.shape_cast %248 : vector<16x64xf32> to vector<8x2x64xf32>
    %c0_93 = arith.constant 0 : index
    %c4_94 = arith.constant 4 : index
    %c0_95 = arith.constant 0 : index
    %250 = vector.load %arg11[%c0_93, %c4_94, %c0_95] : memref<8x8x64xf32, #tpu.memory_space<vmem>>, vector<8x2x64xf32>
    tpu.vector_store %arg11[%c0_93, %c4_94, %c0_95], %249 {strides = array<i32>} : memref<8x8x64xf32, #tpu.memory_space<vmem>>, vector<8x2x64xf32>,
    %251 = vector.extract_strided_slice %166 {offsets = [0, 128], sizes = [16, 64], strides = [1, 1]} : vector<16x1280xf32> to vector<16x64xf32>
    %252 = vector.shape_cast %251 : vector<16x64xf32> to vector<8x2x64xf32>
    %c0_96 = arith.constant 0 : index
    %c0_97 = arith.constant 0 : index
    %c4_98 = arith.constant 4 : index
    %c0_99 = arith.constant 0 : index
    %253 = vector.load %arg12[%c0_96, %c0_97, %c4_98, %c0_99] : memref<5x8x8x64xf32, #tpu.memory_space<vmem>>, vector<1x8x2x64xf32>
    %254 = vector.shape_cast %253 : vector<1x8x2x64xf32> to vector<8x2x64xf32>
    %255 = vector.shape_cast %252 : vector<8x2x64xf32> to vector<1x8x2x64xf32>
    tpu.vector_store %arg12[%c0_96, %c0_97, %c4_98, %c0_99], %255 {strides = array<i32>} : memref<5x8x8x64xf32, #tpu.memory_space<vmem>>, vector<1x8x2x64xf32>,
    %256 = vector.extract_strided_slice %166 {offsets = [0, 384], sizes = [16, 64], strides = [1, 1]} : vector<16x1280xf32> to vector<16x64xf32>
    %257 = vector.shape_cast %256 : vector<16x64xf32> to vector<8x2x64xf32>
    %c1_100 = arith.constant 1 : index
    %c0_101 = arith.constant 0 : index
    %c4_102 = arith.constant 4 : index
    %c0_103 = arith.constant 0 : index
    %258 = vector.load %arg12[%c1_100, %c0_101, %c4_102, %c0_103] : memref<5x8x8x64xf32, #tpu.memory_space<vmem>>, vector<1x8x2x64xf32>
    %259 = vector.shape_cast %258 : vector<1x8x2x64xf32> to vector<8x2x64xf32>
    %260 = vector.shape_cast %257 : vector<8x2x64xf32> to vector<1x8x2x64xf32>
    tpu.vector_store %arg12[%c1_100, %c0_101, %c4_102, %c0_103], %260 {strides = array<i32>} : memref<5x8x8x64xf32, #tpu.memory_space<vmem>>, vector<1x8x2x64xf32>,
    %261 = vector.extract_strided_slice %166 {offsets = [0, 640], sizes = [16, 64], strides = [1, 1]} : vector<16x1280xf32> to vector<16x64xf32>
    %262 = vector.shape_cast %261 : vector<16x64xf32> to vector<8x2x64xf32>
    %c2_104 = arith.constant 2 : index
    %c0_105 = arith.constant 0 : index
    %c4_106 = arith.constant 4 : index
    %c0_107 = arith.constant 0 : index
    %263 = vector.load %arg12[%c2_104, %c0_105, %c4_106, %c0_107] : memref<5x8x8x64xf32, #tpu.memory_space<vmem>>, vector<1x8x2x64xf32>
    %264 = vector.shape_cast %263 : vector<1x8x2x64xf32> to vector<8x2x64xf32>
    %265 = vector.shape_cast %262 : vector<8x2x64xf32> to vector<1x8x2x64xf32>
    tpu.vector_store %arg12[%c2_104, %c0_105, %c4_106, %c0_107], %265 {strides = array<i32>} : memref<5x8x8x64xf32, #tpu.memory_space<vmem>>, vector<1x8x2x64xf32>,
    %266 = vector.extract_strided_slice %166 {offsets = [0, 896], sizes = [16, 64], strides = [1, 1]} : vector<16x1280xf32> to vector<16x64xf32>
    %267 = vector.shape_cast %266 : vector<16x64xf32> to vector<8x2x64xf32>
    %c3_108 = arith.constant 3 : index
    %c0_109 = arith.constant 0 : index
    %c4_110 = arith.constant 4 : index
    %c0_111 = arith.constant 0 : index
    %268 = vector.load %arg12[%c3_108, %c0_109, %c4_110, %c0_111] : memref<5x8x8x64xf32, #tpu.memory_space<vmem>>, vector<1x8x2x64xf32>
    %269 = vector.shape_cast %268 : vector<1x8x2x64xf32> to vector<8x2x64xf32>
    %270 = vector.shape_cast %267 : vector<8x2x64xf32> to vector<1x8x2x64xf32>
    tpu.vector_store %arg12[%c3_108, %c0_109, %c4_110, %c0_111], %270 {strides = array<i32>} : memref<5x8x8x64xf32, #tpu.memory_space<vmem>>, vector<1x8x2x64xf32>,
    %271 = vector.extract_strided_slice %166 {offsets = [0, 1152], sizes = [16, 64], strides = [1, 1]} : vector<16x1280xf32> to vector<16x64xf32>
    %272 = vector.shape_cast %271 : vector<16x64xf32> to vector<8x2x64xf32>
    %c4_112 = arith.constant 4 : index
    %c0_113 = arith.constant 0 : index
    %c4_114 = arith.constant 4 : index
    %c0_115 = arith.constant 0 : index
    %273 = vector.load %arg12[%c4_112, %c0_113, %c4_114, %c0_115] : memref<5x8x8x64xf32, #tpu.memory_space<vmem>>, vector<1x8x2x64xf32>
    %274 = vector.shape_cast %273 : vector<1x8x2x64xf32> to vector<8x2x64xf32>
    %275 = vector.shape_cast %272 : vector<8x2x64xf32> to vector<1x8x2x64xf32>
    tpu.vector_store %arg12[%c4_112, %c0_113, %c4_114, %c0_115], %275 {strides = array<i32>} : memref<5x8x8x64xf32, #tpu.memory_space<vmem>>, vector<1x8x2x64xf32>,
    %276 = vector.extract_strided_slice %167 {offsets = [0, 192], sizes = [16, 64], strides = [1, 1]} : vector<16x256xf32> to vector<16x64xf32>
    %277 = arith.mulf %276, %276 : vector<16x64xf32>
    %cst_116 = arith.constant dense<0.000000e+00> : vector<16xf32>
    %278 = vector.multi_reduction <add>, %277, %cst_116 [1] : vector<16x64xf32> to vector<16xf32>
    %279 = vector.shape_cast %278 : vector<16xf32> to vector<16x1xf32>
    %cst_117 = arith.constant 1.000000e-24 : f32
    %280 = vector.broadcast %cst_117 : f32 to vector<16x1xf32>
    %281 = arith.maximumf %279, %280 : vector<16x1xf32>
    %282 = math.rsqrt %281 : vector<16x1xf32>
    %283 = vector.broadcast %282 : vector<16x1xf32> to vector<16x64xf32>
    %284 = arith.mulf %276, %283 : vector<16x64xf32>
    %285 = vector.shape_cast %284 : vector<16x64xf32> to vector<8x2x64xf32>
    %c0_118 = arith.constant 0 : index
    %c6_119 = arith.constant 6 : index
    %c0_120 = arith.constant 0 : index
    %286 = vector.load %arg11[%c0_118, %c6_119, %c0_120] : memref<8x8x64xf32, #tpu.memory_space<vmem>>, vector<8x2x64xf32>
    tpu.vector_store %arg11[%c0_118, %c6_119, %c0_120], %285 {strides = array<i32>} : memref<8x8x64xf32, #tpu.memory_space<vmem>>, vector<8x2x64xf32>,
    %287 = vector.extract_strided_slice %166 {offsets = [0, 192], sizes = [16, 64], strides = [1, 1]} : vector<16x1280xf32> to vector<16x64xf32>
    %288 = vector.shape_cast %287 : vector<16x64xf32> to vector<8x2x64xf32>
    %c0_121 = arith.constant 0 : index
    %c0_122 = arith.constant 0 : index
    %c6_123 = arith.constant 6 : index
    %c0_124 = arith.constant 0 : index
    %289 = vector.load %arg12[%c0_121, %c0_122, %c6_123, %c0_124] : memref<5x8x8x64xf32, #tpu.memory_space<vmem>>, vector<1x8x2x64xf32>
    %290 = vector.shape_cast %289 : vector<1x8x2x64xf32> to vector<8x2x64xf32>
    %291 = vector.shape_cast %288 : vector<8x2x64xf32> to vector<1x8x2x64xf32>
    tpu.vector_store %arg12[%c0_121, %c0_122, %c6_123, %c0_124], %291 {strides = array<i32>} : memref<5x8x8x64xf32, #tpu.memory_space<vmem>>, vector<1x8x2x64xf32>,
    %292 = vector.extract_strided_slice %166 {offsets = [0, 448], sizes = [16, 64], strides = [1, 1]} : vector<16x1280xf32> to vector<16x64xf32>
    %293 = vector.shape_cast %292 : vector<16x64xf32> to vector<8x2x64xf32>
    %c1_125 = arith.constant 1 : index
    %c0_126 = arith.constant 0 : index
    %c6_127 = arith.constant 6 : index
    %c0_128 = arith.constant 0 : index
    %294 = vector.load %arg12[%c1_125, %c0_126, %c6_127, %c0_128] : memref<5x8x8x64xf32, #tpu.memory_space<vmem>>, vector<1x8x2x64xf32>
    %295 = vector.shape_cast %294 : vector<1x8x2x64xf32> to vector<8x2x64xf32>
    %296 = vector.shape_cast %293 : vector<8x2x64xf32> to vector<1x8x2x64xf32>
    tpu.vector_store %arg12[%c1_125, %c0_126, %c6_127, %c0_128], %296 {strides = array<i32>} : memref<5x8x8x64xf32, #tpu.memory_space<vmem>>, vector<1x8x2x64xf32>,
    %297 = vector.extract_strided_slice %166 {offsets = [0, 704], sizes = [16, 64], strides = [1, 1]} : vector<16x1280xf32> to vector<16x64xf32>
    %298 = vector.shape_cast %297 : vector<16x64xf32> to vector<8x2x64xf32>
    %c2_129 = arith.constant 2 : index
    %c0_130 = arith.constant 0 : index
    %c6_131 = arith.constant 6 : index
    %c0_132 = arith.constant 0 : index
    %299 = vector.load %arg12[%c2_129, %c0_130, %c6_131, %c0_132] : memref<5x8x8x64xf32, #tpu.memory_space<vmem>>, vector<1x8x2x64xf32>
    %300 = vector.shape_cast %299 : vector<1x8x2x64xf32> to vector<8x2x64xf32>
    %301 = vector.shape_cast %298 : vector<8x2x64xf32> to vector<1x8x2x64xf32>
    tpu.vector_store %arg12[%c2_129, %c0_130, %c6_131, %c0_132], %301 {strides = array<i32>} : memref<5x8x8x64xf32, #tpu.memory_space<vmem>>, vector<1x8x2x64xf32>,
    %302 = vector.extract_strided_slice %166 {offsets = [0, 960], sizes = [16, 64], strides = [1, 1]} : vector<16x1280xf32> to vector<16x64xf32>
    %303 = vector.shape_cast %302 : vector<16x64xf32> to vector<8x2x64xf32>
    %c3_133 = arith.constant 3 : index
    %c0_134 = arith.constant 0 : index
    %c6_135 = arith.constant 6 : index
    %c0_136 = arith.constant 0 : index
    %304 = vector.load %arg12[%c3_133, %c0_134, %c6_135, %c0_136] : memref<5x8x8x64xf32, #tpu.memory_space<vmem>>, vector<1x8x2x64xf32>
    %305 = vector.shape_cast %304 : vector<1x8x2x64xf32> to vector<8x2x64xf32>
    %306 = vector.shape_cast %303 : vector<8x2x64xf32> to vector<1x8x2x64xf32>
    tpu.vector_store %arg12[%c3_133, %c0_134, %c6_135, %c0_136], %306 {strides = array<i32>} : memref<5x8x8x64xf32, #tpu.memory_space<vmem>>, vector<1x8x2x64xf32>,
    %307 = vector.extract_strided_slice %166 {offsets = [0, 1216], sizes = [16, 64], strides = [1, 1]} : vector<16x1280xf32> to vector<16x64xf32>
    %308 = vector.shape_cast %307 : vector<16x64xf32> to vector<8x2x64xf32>
    %c4_137 = arith.constant 4 : index
    %c0_138 = arith.constant 0 : index
    %c6_139 = arith.constant 6 : index
    %c0_140 = arith.constant 0 : index
    %309 = vector.load %arg12[%c4_137, %c0_138, %c6_139, %c0_140] : memref<5x8x8x64xf32, #tpu.memory_space<vmem>>, vector<1x8x2x64xf32>
    %310 = vector.shape_cast %309 : vector<1x8x2x64xf32> to vector<8x2x64xf32>
    %311 = vector.shape_cast %308 : vector<8x2x64xf32> to vector<1x8x2x64xf32>
    tpu.vector_store %arg12[%c4_137, %c0_138, %c6_139, %c0_140], %311 {strides = array<i32>} : memref<5x8x8x64xf32, #tpu.memory_space<vmem>>, vector<1x8x2x64xf32>,
    %cst_141 = arith.constant 0.000000e+00 : f32
    %312 = vector.broadcast %cst_141 : f32 to vector<16x8x64xf32>
    %c0_142 = arith.constant 0 : index
    %c0_143 = arith.constant 0 : index
    %c0_144 = arith.constant 0 : index
    %313 = vector.load %arg10[%c0_142, %c0_143, %c0_144] : memref<16x8x64xf32, #tpu.memory_space<vmem>>, vector<16x8x64xf32>
    tpu.vector_store %arg10[%c0_142, %c0_143, %c0_144], %312 {strides = array<i32>} : memref<16x8x64xf32, #tpu.memory_space<vmem>>, vector<16x8x64xf32>,
    %c0_145 = arith.constant 0 : index
    %c0_146 = arith.constant 0 : index
    %c0_147 = arith.constant 0 : index
    %314 = vector.load %arg14[%c0_145, %c0_146, %c0_147] : memref<16x8x64xf32, #tpu.memory_space<vmem>>, vector<16x8x64xf32>
    tpu.vector_store %arg14[%c0_145, %c0_146, %c0_147], %312 {strides = array<i32>} : memref<16x8x64xf32, #tpu.memory_space<vmem>>, vector<16x8x64xf32>,
    %315 = tpu.iota {dimensions = array<i32: 0>} : vector<16x8x64xi32>
    %c0_i32 = arith.constant 0 : i32
    %316 = vector.broadcast %c0_i32 : i32 to vector<16x8x64xi32>
    %317 = arith.cmpi eq, %315, %316 : vector<16x8x64xi32>
    %318 = arith.extui %317 : vector<16x8x64xi1> to vector<16x8x64xi32>
    %319 = arith.sitofp %318 : vector<16x8x64xi32> to vector<16x8x64xf32>
    %c0_148 = arith.constant 0 : index
    %c0_149 = arith.constant 0 : index
    %c0_150 = arith.constant 0 : index
    %320 = vector.load %arg15[%c0_148, %c0_149, %c0_150] : memref<16x8x64xf32, #tpu.memory_space<vmem>>, vector<16x8x64xf32>
    tpu.vector_store %arg15[%c0_148, %c0_149, %c0_150], %319 {strides = array<i32>} : memref<16x8x64xf32, #tpu.memory_space<vmem>>, vector<16x8x64xf32>,
    %c0_151 = arith.constant 0 : index
    %c0_152 = arith.constant 0 : index
    %c0_153 = arith.constant 0 : index
    %321 = vector.load %arg16[%c0_151, %c0_152, %c0_153] : memref<16x8x64xf32, #tpu.memory_space<vmem>>, vector<16x8x64xf32>
    tpu.vector_store %arg16[%c0_151, %c0_152, %c0_153], %319 {strides = array<i32>} : memref<16x8x64xf32, #tpu.memory_space<vmem>>, vector<16x8x64xf32>,
    %c0_i32_154 = arith.constant 0 : i32
    %c8_i32 = arith.constant 8 : i32
    %322 = arith.addi %c0_i32_154, %c8_i32 : i32
    %c1_i32 = arith.constant 1 : i32
    scf.for %arg17 = %c0_i32_154 to %322 step %c1_i32  : i32 {
      %338 = arith.index_cast %arg17 : i32 to index
      %c0_175 = arith.constant 0 : index
      %c0_176 = arith.constant 0 : index
      %339 = vector.load %arg3[%338, %c0_175, %c0_176] : memref<8x8x64xf32, #tpu.memory_space<vmem>>, vector<1x8x64xf32>
      %340 = vector.shape_cast %339 : vector<1x8x64xf32> to vector<8x64xf32>
      %341 = arith.index_cast %arg17 : i32 to index
      %c0_177 = arith.constant 0 : index
      %c0_178 = arith.constant 0 : index
      %342 = vector.load %arg4[%341, %c0_177, %c0_178] : memref<8x8x64xf32, #tpu.memory_space<vmem>>, vector<1x8x64xf32>
      %343 = vector.shape_cast %342 : vector<1x8x64xf32> to vector<8x64xf32>
      %344 = arith.index_cast %arg17 : i32 to index
      %c0_179 = arith.constant 0 : index
      %c0_180 = arith.constant 0 : index
      %345 = vector.load %arg11[%344, %c0_179, %c0_180] : memref<8x8x64xf32, #tpu.memory_space<vmem>>, vector<1x8x64xf32>
      %346 = vector.shape_cast %345 : vector<1x8x64xf32> to vector<8x64xf32>
      %c0_181 = arith.constant 0 : index
      %347 = arith.index_cast %arg17 : i32 to index
      %c0_182 = arith.constant 0 : index
      %c0_183 = arith.constant 0 : index
      %348 = vector.load %arg12[%c0_181, %347, %c0_182, %c0_183] : memref<5x8x8x64xf32, #tpu.memory_space<vmem>>, vector<1x1x8x64xf32>
      %349 = vector.shape_cast %348 : vector<1x1x8x64xf32> to vector<8x64xf32>
      %c1_184 = arith.constant 1 : index
      %350 = arith.index_cast %arg17 : i32 to index
      %c0_185 = arith.constant 0 : index
      %c0_186 = arith.constant 0 : index
      %351 = vector.load %arg12[%c1_184, %350, %c0_185, %c0_186] : memref<5x8x8x64xf32, #tpu.memory_space<vmem>>, vector<1x1x8x64xf32>
      %352 = vector.shape_cast %351 : vector<1x1x8x64xf32> to vector<8x64xf32>
      %c2_187 = arith.constant 2 : index
      %353 = arith.index_cast %arg17 : i32 to index
      %c0_188 = arith.constant 0 : index
      %c0_189 = arith.constant 0 : index
      %354 = vector.load %arg12[%c2_187, %353, %c0_188, %c0_189] : memref<5x8x8x64xf32, #tpu.memory_space<vmem>>, vector<1x1x8x64xf32>
      %355 = vector.shape_cast %354 : vector<1x1x8x64xf32> to vector<8x64xf32>
      %c3_190 = arith.constant 3 : index
      %356 = arith.index_cast %arg17 : i32 to index
      %c0_191 = arith.constant 0 : index
      %c0_192 = arith.constant 0 : index
      %357 = vector.load %arg12[%c3_190, %356, %c0_191, %c0_192] : memref<5x8x8x64xf32, #tpu.memory_space<vmem>>, vector<1x1x8x64xf32>
      %358 = vector.shape_cast %357 : vector<1x1x8x64xf32> to vector<8x64xf32>
      %c4_193 = arith.constant 4 : index
      %359 = arith.index_cast %arg17 : i32 to index
      %c0_194 = arith.constant 0 : index
      %c0_195 = arith.constant 0 : index
      %360 = vector.load %arg12[%c4_193, %359, %c0_194, %c0_195] : memref<5x8x8x64xf32, #tpu.memory_space<vmem>>, vector<1x1x8x64xf32>
      %361 = vector.shape_cast %360 : vector<1x1x8x64xf32> to vector<8x64xf32>
      %c0_196 = arith.constant 0 : index
      %c0_197 = arith.constant 0 : index
      %c0_198 = arith.constant 0 : index
      %362 = vector.load %arg16[%c0_196, %c0_197, %c0_198] : memref<16x8x64xf32, #tpu.memory_space<vmem>>, vector<16x8x64xf32>
      %363 = arith.mulf %362, %362 : vector<16x8x64xf32>
      %cst_199 = arith.constant dense<0.000000e+00> : vector<8x64xf32>
      %364 = vector.multi_reduction <add>, %363, %cst_199 [0] : vector<16x8x64xf32> to vector<8x64xf32>
      %cst_200 = arith.constant 1.000000e-24 : f32
      %365 = vector.broadcast %cst_200 : f32 to vector<8x64xf32>
      %366 = arith.maximumf %364, %365 : vector<8x64xf32>
      %367 = math.rsqrt %366 : vector<8x64xf32>
      %c0_201 = arith.constant 0 : index
      %c0_202 = arith.constant 0 : index
      %c0_203 = arith.constant 0 : index
      %368 = vector.load %arg10[%c0_201, %c0_202, %c0_203] : memref<16x8x64xf32, #tpu.memory_space<vmem>>, vector<16x8x64xf32>
      %369 = arith.mulf %368, %362 : vector<16x8x64xf32>
      %cst_204 = arith.constant dense<0.000000e+00> : vector<8x64xf32>
      %370 = vector.multi_reduction <add>, %369, %cst_204 [0] : vector<16x8x64xf32> to vector<8x64xf32>
      %371 = arith.mulf %370, %367 : vector<8x64xf32>
      %372 = arith.mulf %340, %358 : vector<8x64xf32>
      %373 = arith.mulf %371, %361 : vector<8x64xf32>
      %374 = arith.subf %372, %373 : vector<8x64xf32>
      %375 = arith.mulf %374, %367 : vector<8x64xf32>
      %376 = vector.shape_cast %375 : vector<8x64xf32> to vector<1x8x64xf32>
      %377 = vector.broadcast %376 : vector<1x8x64xf32> to vector<16x8x64xf32>
      %378 = arith.mulf %362, %377 : vector<16x8x64xf32>
      %379 = arith.addf %368, %378 : vector<16x8x64xf32>
      %c0_205 = arith.constant 0 : index
      %c0_206 = arith.constant 0 : index
      %c0_207 = arith.constant 0 : index
      %380 = vector.load %arg10[%c0_205, %c0_206, %c0_207] : memref<16x8x64xf32, #tpu.memory_space<vmem>>, vector<16x8x64xf32>
      tpu.vector_store %arg10[%c0_205, %c0_206, %c0_207], %379 {strides = array<i32>} : memref<16x8x64xf32, #tpu.memory_space<vmem>>, vector<16x8x64xf32>,
      %c0_208 = arith.constant 0 : index
      %c0_209 = arith.constant 0 : index
      %c0_210 = arith.constant 0 : index
      %381 = vector.load %arg15[%c0_208, %c0_209, %c0_210] : memref<16x8x64xf32, #tpu.memory_space<vmem>>, vector<16x8x64xf32>
      %382 = arith.mulf %381, %381 : vector<16x8x64xf32>
      %cst_211 = arith.constant dense<0.000000e+00> : vector<8x64xf32>
      %383 = vector.multi_reduction <add>, %382, %cst_211 [0] : vector<16x8x64xf32> to vector<8x64xf32>
      %cst_212 = arith.constant 1.000000e-24 : f32
      %384 = vector.broadcast %cst_212 : f32 to vector<8x64xf32>
      %385 = arith.maximumf %383, %384 : vector<8x64xf32>
      %386 = math.rsqrt %385 : vector<8x64xf32>
      %387 = arith.mulf %379, %381 : vector<16x8x64xf32>
      %cst_213 = arith.constant dense<0.000000e+00> : vector<8x64xf32>
      %388 = vector.multi_reduction <add>, %387, %cst_213 [0] : vector<16x8x64xf32> to vector<8x64xf32>
      %389 = arith.mulf %388, %386 : vector<8x64xf32>
      %390 = arith.mulf %389, %355 : vector<8x64xf32>
      %391 = arith.index_cast %arg17 : i32 to index
      %c0_214 = arith.constant 0 : index
      %c0_215 = arith.constant 0 : index
      %392 = vector.load %arg13[%391, %c0_214, %c0_215] : memref<8x8x64xf32, #tpu.memory_space<vmem>>, vector<1x8x64xf32>
      %393 = vector.shape_cast %392 : vector<1x8x64xf32> to vector<8x64xf32>
      %394 = vector.shape_cast %390 : vector<8x64xf32> to vector<1x8x64xf32>
      tpu.vector_store %arg13[%391, %c0_214, %c0_215], %394 {strides = array<i32>} : memref<8x8x64xf32, #tpu.memory_space<vmem>>, vector<1x8x64xf32>,
      %c0_216 = arith.constant 0 : index
      %c0_217 = arith.constant 0 : index
      %c0_218 = arith.constant 0 : index
      %395 = vector.load %arg14[%c0_216, %c0_217, %c0_218] : memref<16x8x64xf32, #tpu.memory_space<vmem>>, vector<16x8x64xf32>
      %396 = vector.shape_cast %343 : vector<8x64xf32> to vector<1x8x64xf32>
      %397 = vector.broadcast %396 : vector<1x8x64xf32> to vector<16x8x64xf32>
      %398 = arith.mulf %395, %397 : vector<16x8x64xf32>
      %cst_219 = arith.constant dense<0.000000e+00> : vector<16x8xf32>
      %399 = vector.multi_reduction <add>, %398, %cst_219 [2] : vector<16x8x64xf32> to vector<16x8xf32>
      %400 = vector.shape_cast %399 : vector<16x8xf32> to vector<16x8x1xf32>
      %401 = vector.shape_cast %358 : vector<8x64xf32> to vector<1x8x64xf32>
      %402 = vector.broadcast %401 : vector<1x8x64xf32> to vector<16x8x64xf32>
      %403 = arith.mulf %362, %402 : vector<16x8x64xf32>
      %404 = vector.shape_cast %361 : vector<8x64xf32> to vector<1x8x64xf32>
      %405 = vector.broadcast %400 : vector<16x8x1xf32> to vector<16x8x64xf32>
      %406 = vector.broadcast %404 : vector<1x8x64xf32> to vector<16x8x64xf32>
      %407 = arith.mulf %405, %406 : vector<16x8x64xf32>
      %408 = arith.subf %403, %407 : vector<16x8x64xf32>
      %409 = vector.shape_cast %343 : vector<8x64xf32> to vector<1x8x64xf32>
      %410 = vector.broadcast %409 : vector<1x8x64xf32> to vector<16x8x64xf32>
      %411 = arith.mulf %408, %410 : vector<16x8x64xf32>
      %412 = arith.addf %395, %411 : vector<16x8x64xf32>
      %c0_220 = arith.constant 0 : index
      %c0_221 = arith.constant 0 : index
      %c0_222 = arith.constant 0 : index
      %413 = vector.load %arg14[%c0_220, %c0_221, %c0_222] : memref<16x8x64xf32, #tpu.memory_space<vmem>>, vector<16x8x64xf32>
      tpu.vector_store %arg14[%c0_220, %c0_221, %c0_222], %412 {strides = array<i32>} : memref<16x8x64xf32, #tpu.memory_space<vmem>>, vector<16x8x64xf32>,
      %414 = vector.shape_cast %346 : vector<8x64xf32> to vector<1x8x64xf32>
      %415 = vector.broadcast %414 : vector<1x8x64xf32> to vector<16x8x64xf32>
      %416 = arith.mulf %412, %415 : vector<16x8x64xf32>
      %cst_223 = arith.constant dense<0.000000e+00> : vector<16x8xf32>
      %417 = vector.multi_reduction <add>, %416, %cst_223 [2] : vector<16x8x64xf32> to vector<16x8xf32>
      %418 = vector.shape_cast %417 : vector<16x8xf32> to vector<16x8x1xf32>
      %419 = vector.shape_cast %352 : vector<8x64xf32> to vector<1x8x64xf32>
      %420 = vector.broadcast %418 : vector<16x8x1xf32> to vector<16x8x64xf32>
      %421 = arith.subf %362, %420 : vector<16x8x64xf32>
      %422 = vector.broadcast %419 : vector<1x8x64xf32> to vector<16x8x64xf32>
      %423 = arith.mulf %422, %421 : vector<16x8x64xf32>
      %424 = vector.broadcast %418 : vector<16x8x1xf32> to vector<16x8x64xf32>
      %425 = arith.addf %423, %424 : vector<16x8x64xf32>
      %c0_224 = arith.constant 0 : index
      %c0_225 = arith.constant 0 : index
      %c0_226 = arith.constant 0 : index
      %426 = vector.load %arg16[%c0_224, %c0_225, %c0_226] : memref<16x8x64xf32, #tpu.memory_space<vmem>>, vector<16x8x64xf32>
      tpu.vector_store %arg16[%c0_224, %c0_225, %c0_226], %425 {strides = array<i32>} : memref<16x8x64xf32, #tpu.memory_space<vmem>>, vector<16x8x64xf32>,
      %427 = vector.shape_cast %349 : vector<8x64xf32> to vector<1x8x64xf32>
      %428 = vector.broadcast %418 : vector<16x8x1xf32> to vector<16x8x64xf32>
      %429 = arith.subf %381, %428 : vector<16x8x64xf32>
      %430 = vector.broadcast %427 : vector<1x8x64xf32> to vector<16x8x64xf32>
      %431 = arith.mulf %430, %429 : vector<16x8x64xf32>
      %432 = vector.broadcast %418 : vector<16x8x1xf32> to vector<16x8x64xf32>
      %433 = arith.addf %431, %432 : vector<16x8x64xf32>
      %c0_227 = arith.constant 0 : index
      %c0_228 = arith.constant 0 : index
      %c0_229 = arith.constant 0 : index
      %434 = vector.load %arg15[%c0_227, %c0_228, %c0_229] : memref<16x8x64xf32, #tpu.memory_space<vmem>>, vector<16x8x64xf32>
      tpu.vector_store %arg15[%c0_227, %c0_228, %c0_229], %433 {strides = array<i32>} : memref<16x8x64xf32, #tpu.memory_space<vmem>>, vector<16x8x64xf32>,
    }
    %c8_i32_155 = arith.constant 8 : i32
    %c0_156 = arith.constant 0 : index
    %c0_157 = arith.constant 0 : index
    %c0_158 = arith.constant 0 : index
    %323 = vector.load %arg13[%c0_156, %c0_157, %c0_158] : memref<8x8x64xf32, #tpu.memory_space<vmem>>, vector<8x2x64xf32>
    %324 = vector.shape_cast %323 : vector<8x2x64xf32> to vector<16x64xf32>
    %c0_159 = arith.constant 0 : index
    %c2_160 = arith.constant 2 : index
    %c0_161 = arith.constant 0 : index
    %325 = vector.load %arg13[%c0_159, %c2_160, %c0_161] : memref<8x8x64xf32, #tpu.memory_space<vmem>>, vector<8x2x64xf32>
    %326 = vector.shape_cast %325 : vector<8x2x64xf32> to vector<16x64xf32>
    %c0_162 = arith.constant 0 : index
    %c4_163 = arith.constant 4 : index
    %c0_164 = arith.constant 0 : index
    %327 = vector.load %arg13[%c0_162, %c4_163, %c0_164] : memref<8x8x64xf32, #tpu.memory_space<vmem>>, vector<8x2x64xf32>
    %328 = vector.shape_cast %327 : vector<8x2x64xf32> to vector<16x64xf32>
    %c0_165 = arith.constant 0 : index
    %c6_166 = arith.constant 6 : index
    %c0_167 = arith.constant 0 : index
    %329 = vector.load %arg13[%c0_165, %c6_166, %c0_167] : memref<8x8x64xf32, #tpu.memory_space<vmem>>, vector<8x2x64xf32>
    %330 = vector.shape_cast %329 : vector<8x2x64xf32> to vector<16x64xf32>
    %331 = tpu.concatenate %324, %326, %328, %330 in 1 : vector<16x64xf32>, vector<16x64xf32>, vector<16x64xf32>, vector<16x64xf32> -> vector<16x256xf32>
    %c0_168 = arith.constant 0 : index
    %c0_169 = arith.constant 0 : index
    %332 = vector.load %arg7[%c0_168, %c0_169] : memref<256x32xf32, #tpu.memory_space<vmem>>, vector<256x32xf32>
    %cst_170 = arith.constant dense<0.000000e+00> : vector<16x32xf32>
    %333 = tpu.matmul %331, %332, %cst_170 {dimension_numbers = #tpu.dot_dimension_numbers<[1], [0], [0], [1], [0, 0, 1, 1], [], []>} : vector<16x256xf32>, vector<256x32xf32>, vector<16x32xf32> -> vector<16x32xf32>
    %c0_171 = arith.constant 0 : index
    %c0_172 = arith.constant 0 : index
    %334 = vector.load %arg8[%c0_171, %c0_172] : memref<1x32xf32, #tpu.memory_space<vmem>>, vector<1x32xf32>
    %335 = vector.broadcast %334 : vector<1x32xf32> to vector<16x32xf32>
    %336 = arith.addf %333, %335 : vector<16x32xf32>
    %c0_173 = arith.constant 0 : index
    %c0_174 = arith.constant 0 : index
    %337 = vector.load %arg9[%c0_173, %c0_174] : memref<16x32xf32, #tpu.memory_space<vmem>>, vector<16x32xf32>
    tpu.vector_store %arg9[%c0_173, %c0_174], %336 {strides = array<i32>} : memref<16x32xf32, #tpu.memory_space<vmem>>, vector<16x32xf32>,
    return
  }
  func.func @transform_0(%arg0: i32) -> (i32, i32, i32) {
    %c0_i32 = arith.constant 0 : i32
    %c0_i32_0 = arith.constant 0 : i32
    %c0_i32_1 = arith.constant 0 : i32
    %c0_i32_2 = arith.constant 0 : i32
    return %c0_i32, %c0_i32_0, %c0_i32_1 : i32, i32, i32
  }
  func.func @transform_1(%arg0: i32) -> (i32, i32) {
    %c0_i32 = arith.constant 0 : i32
    %c0_i32_0 = arith.constant 0 : i32
    %c0_i32_1 = arith.constant 0 : i32
    return %c0_i32, %c0_i32_0 : i32, i32
  }
  func.func @transform_2(%arg0: i32) -> (i32, i32, i32) {
    %c0_i32 = arith.constant 0 : i32
    %c0_i32_0 = arith.constant 0 : i32
    %c0_i32_1 = arith.constant 0 : i32
    %c0_i32_2 = arith.constant 0 : i32
    return %c0_i32, %c0_i32_0, %c0_i32_1 : i32, i32, i32
  }
  func.func @transform_3(%arg0: i32) -> (i32, i32, i32) {
    %c0_i32 = arith.constant 0 : i32
    %c0_i32_0 = arith.constant 0 : i32
    %c0_i32_1 = arith.constant 0 : i32
    %c0_i32_2 = arith.constant 0 : i32
    return %c0_i32, %c0_i32_0, %c0_i32_1 : i32, i32, i32
  }
  func.func @transform_4(%arg0: i32) -> (i32, i32) {
    %c0_i32 = arith.constant 0 : i32
    %c0_i32_0 = arith.constant 0 : i32
    %c0_i32_1 = arith.constant 0 : i32
    return %c0_i32, %c0_i32_0 : i32, i32
  }
  func.func @transform_5(%arg0: i32) -> (i32, i32) {
    %c0_i32 = arith.constant 0 : i32
    %c0_i32_0 = arith.constant 0 : i32
    %c0_i32_1 = arith.constant 0 : i32
    return %c0_i32, %c0_i32_0 : i32, i32
  }
  func.func @transform_6(%arg0: i32) -> (i32, i32) {
    %c0_i32 = arith.constant 0 : i32
    %c0_i32_0 = arith.constant 0 : i32
    %c0_i32_1 = arith.constant 0 : i32
    return %c0_i32, %c0_i32_0 : i32, i32
  }
  func.func @transform_7(%arg0: i32) -> (i32, i32) {
    %c0_i32 = arith.constant 0 : i32
    %c0_i32_0 = arith.constant 0 : i32
    %c0_i32_1 = arith.constant 0 : i32
    return %c0_i32, %c0_i32_0 : i32, i32
  }
  func.func @transform_8(%arg0: i32) -> (i32, i32) {
    %c0_i32 = arith.constant 0 : i32
    %c0_i32_0 = arith.constant 0 : i32
    %c0_i32_1 = arith.constant 0 : i32
    return %c0_i32, %c0_i32_0 : i32, i32
  }
  func.func @transform_9(%arg0: i32) -> (i32, i32, i32) {
    %c0_i32 = arith.constant 0 : i32
    %c0_i32_0 = arith.constant 0 : i32
    %c0_i32_1 = arith.constant 0 : i32
    %c0_i32_2 = arith.constant 0 : i32
    return %c0_i32, %c0_i32_0, %c0_i32_1 : i32, i32, i32
  }
}

</mosaic_0001>

<bundles_post_ra>
// kernel: tpu_custom_call.1
= control target key start
LH: loop header
LB: loop body
LE: loop exit
PB: predicated region body
PF: predicated region fallthrough
CT: control target
= control target key end

     0   :  { %15 = vsyncpa [#allocation9], 0  ;;  %s7390_s0 = inlined_call_operand.vmem [shape: f32[8,2,128], index: 0, kind: input, shape index: {}]   ;;  %s7391_s1 = inlined_call_operand.vmem [shape: f32[32,128], index: 1, kind: input, shape index: {}]   ;;  %s7392_s2 = inlined_call_operand.vmem [shape: f32[8,8,64], index: 2, kind: input, shape index: {}]   ;;  %s7393_s3 = inlined_call_operand.vmem [shape: f32[8,8,64], index: 3, kind: input, shape index: {}]   ;;  %s7394_s4 = inlined_call_operand.hbm [shape: f32[32,1536], index: 4, kind: input, shape index: {}]   ;;  %s7395_s5 = inlined_call_operand.vmem [shape: f32[1,1536], index: 5, kind: input, shape index: {}]   ;;  %s7396_s6 = inlined_call_operand.vmem [shape: f32[256,32], index: 6, kind: input, shape index: {}]   ;;  %s7397_s7 = inlined_call_operand.vmem [shape: f32[1,32], index: 7, kind: input, shape index: {}]   ;;  %s7398_s8 = inlined_call_operand.hbm [shape: f32[16,32], index: 8, kind: output, shape index: {0}]   ;;  %s7399_s9 = inlined_call_operand.hbm [shape: f32[16,8,64], index: 9, kind: output, shape index: {1}]  }
   0x1   :  { %16 = vsyncpa [#allocation10], 0 }
   0x2   :  { %17 = vsyncpa [#allocation13], 0  ;;  %s5221_s30 = smov [#allocation8]   ;;  %s5141_s13 = scalar_lea.hbm %s7394_s4, 6144 }
   0x3   :  { %s31_s10 = sshll.u32 %s5221_s30, 4  ;;  %p5142_p0 = scmp.ne.s32.totalorder %s7394_s4, %s5141_s13  ;;  %s32_s10 = int_to_ptr.vmem [resolvable:$true] %s31_s10 }
   0x4   :  { %p5145_p1 = scmp.lt.u32.totalorder %s5141_s13, %s7394_s4 }
   0x6   :  { %p5147_p2 = pnand %p5145_p1, %p5142_p0 }
   0x8   :  { %5150 = shalt.err (!%p5147_p2)
}
   0x9   :  { %s5151_s18 = scalar_lea.vmem %s32_s10, 6144  ;;  %p5156_p4 = scmp.lt.s32.totalorder %s32_s10, %s32_s10 }
   0xa   :  { %p5152_p3 = scmp.ne.s32.totalorder %s32_s10, %s5151_s18  ;;  %p5157_p5 = scmp.lt.s32.totalorder %s5151_s18, %s5151_s18 }
   0xc   :  { %p5158_p6 = por %p5157_p5, %p5156_p4 }
   0xe   :  { %p5159_p7 = pnand %p5158_p6, %p5152_p3 }
  0x10   :  { %5162 = shalt.err (!%p5159_p7)
}
  0x11   :  { %s5222_s19 = smov 1536   ;;  %s5223_s20 = smov 96  }
  0x12   :  { %37 = dma.hbm_to_vmem [thread:$0]  %s7394_s4, 6144, %s32_s10, [#allocation9], %s5222_s19, %s5222_s19, %s5223_s20  }
  0x13   :  { %5211 = dma.done.wait [#allocation9], 6144  }
  0x14   :  { %5212 = vsyncadd [#allocation9], 4294961152  ;;  %v5224_v0 = vmov 0.0|0.0   ;;  %vm5225_vm0 = vmmov 0   ;;  %v5226_v1 = vmov 0.0   ;;  %v47_v2 = vld [vmem:[%s7391_s1] sm:$0xff] }
  0x15   :  { %4801 = vmatprep.subr.bf16.mxu1 %v5224_v0  ;;  %4721 = vmatprep.mubr.msk.f32.mxu1 %vm5225_vm0, %v5226_v1  ;;  %v48_v3 = vld [vmem:[%s7391_s1 + $0x8] sm:$0xff]  ;;  %v49_v4 = vld [vmem:[%s7391_s1 + $0x10] sm:$0xff]  ;;  %v50_v6 = vld [vmem:[%s7391_s1 + $0x18] sm:$0xff]  ;;  %s5227_s10 = smov 64   ;;  %s5228_s11 = smov 32   ;;  %vm52_vm1 = vcmask 261120  }
  0x16   :  { %4825 = vmatprep.subr.bf16.mxu0 %v5224_v0  ;;  %4765 = vmatprep.mubr.msk.f32.mxu0 %vm5225_vm0, %v5226_v1  ;;  %v5312_v5 = vpack.c.bf16 %v48_v3, %v47_v2  ;;  %v5318_v7 = vpack.c.bf16 %v50_v6, %v49_v4  ;;  %v51_v8 = vld [vmem:[%s7390_s0] sm:$0x3]  ;;  %v4572_v26 = vld [vmem:[%s7390_s0 + $0x2] sm:$0x3]  ;;  %v4575_v44 = vld [vmem:[%s7390_s0 + $0x4] sm:$0x3] }
  0x17   :  { %vm878_vm2 = vcmask 1041408   ;;  %vm880_vm3 = vcmask 1043456   ;;  %v4578_v4 = vld [vmem:[%s7390_s0 + $0x6] sm:$0x3]  ;;  %vm882_vm4 = vcmask 1045504   ;;  %vm1650_vm5 = vcmask 517120  }
  0x18   :  { %4803 = vmatpush3.bf16.msra.mxu1 %v5312_v5  ;;  %4827 = vmatpush3.bf16.msra.mxu0 %v5312_v5  ;;  %vm1593_vm6 = vcmask 523264  }
  0x19   :  { %4804 = vmatprep.subr.bf16.mxu1 %v5224_v0  ;;  %4828 = vmatprep.subr.bf16.mxu0 %v5224_v0  ;;  %3417 = vst.msk [vmem:[#allocation12] sm:$0xff] %vm1593_vm6, %v5226_v1  ;;  %3418 = vst.msk [vmem:[#allocation12 + $0x8] sm:$0xff] %vm1593_vm6, %v5226_v1 }
  0x1a   :  { %3419 = vst.msk [vmem:[#allocation12 + $0x10] sm:$0xff] %vm1593_vm6, %v5226_v1  ;;  %3420 = vst.msk [vmem:[#allocation12 + $0x18] sm:$0xff] %vm1593_vm6, %v5226_v1 }
  0x1b   :  { %3421 = vst.msk [vmem:[#allocation12 + $0x20] sm:$0xff] %vm1593_vm6, %v5226_v1  ;;  %3422 = vst.msk [vmem:[#allocation12 + $0x28] sm:$0xff] %vm1593_vm6, %v5226_v1 }
  0x1c   :  { %4806 = vmatpush3.bf16.msra.mxu1 %v5318_v7  ;;  %4830 = vmatpush3.bf16.msra.mxu0 %v5318_v7  ;;  %3423 = vst.msk [vmem:[#allocation12 + $0x30] sm:$0xff] %vm1593_vm6, %v5226_v1  ;;  %3424 = vst.msk [vmem:[#allocation12 + $0x38] sm:$0xff] %vm1593_vm6, %v5226_v1 }
  0x1d   :  { %4807 = vmatprep.subr.bf16.mxu1 %v5224_v0  ;;  %4837 = vmatprep.subr.bf16.mxu0 %v5224_v0  ;;  %3425 = vst.msk [vmem:[#allocation12 + $0x40] sm:$0xff] %vm1593_vm6, %v5226_v1  ;;  %3426 = vst.msk [vmem:[#allocation12 + $0x48] sm:$0xff] %vm1593_vm6, %v5226_v1 }
  0x1e   :  { %3427 = vst.msk [vmem:[#allocation12 + $0x50] sm:$0xff] %vm1593_vm6, %v5226_v1  ;;  %3428 = vst.msk [vmem:[#allocation12 + $0x58] sm:$0xff] %vm1593_vm6, %v5226_v1 }
  0x1f   :  { %4722 = vmatmul.mubr.f32.vlgmr.msra.gmra.mrb[0].mxu1 %v5226_v1  ;;  %3429 = vst.msk [vmem:[#allocation12 + $0x60] sm:$0xff] %vm1593_vm6, %v5226_v1  ;;  %3430 = vst.msk [vmem:[#allocation12 + $0x68] sm:$0xff] %vm1593_vm6, %v5226_v1 }
  0x20   :  { %4809 = vmatpush3.bf16.msra.mxu1 %v5312_v5  ;;  %4732 = vmatprep.mubr.msk.f32.mxu1 %vm5225_vm0, %v5226_v1  ;;  %3431 = vst.msk [vmem:[#allocation12 + $0x70] sm:$0xff] %vm1593_vm6, %v5226_v1  ;;  %3432 = vst.msk [vmem:[#allocation12 + $0x78] sm:$0xff] %vm1593_vm6, %v5226_v1 }
  0x21   :  { %4810 = vmatprep.subr.bf16.mxu1 %v5224_v0  ;;  %3433 = vst.msk [vmem:[#allocation5] sm:$0xff] %vm1593_vm6, %v5226_v1  ;;  %3434 = vst.msk [vmem:[#allocation5 + $0x8] sm:$0xff] %vm1593_vm6, %v5226_v1 }
  0x22   :  { %3435 = vst.msk [vmem:[#allocation5 + $0x10] sm:$0xff] %vm1593_vm6, %v5226_v1  ;;  %3436 = vst.msk [vmem:[#allocation5 + $0x18] sm:$0xff] %vm1593_vm6, %v5226_v1 }
  0x23   :  { %3437 = vst.msk [vmem:[#allocation5 + $0x20] sm:$0xff] %vm1593_vm6, %v5226_v1  ;;  %3438 = vst.msk [vmem:[#allocation5 + $0x28] sm:$0xff] %vm1593_vm6, %v5226_v1 }
  0x24   :  { %4812 = vmatpush3.bf16.msra.mxu1 %v5318_v7  ;;  %3439 = vst.msk [vmem:[#allocation5 + $0x30] sm:$0xff] %vm1593_vm6, %v5226_v1  ;;  %3440 = vst.msk [vmem:[#allocation5 + $0x38] sm:$0xff] %vm1593_vm6, %v5226_v1 }
  0x25   :  { %4813 = vmatprep.subr.bf16.mxu1 %v5224_v0  ;;  %3441 = vst.msk [vmem:[#allocation5 + $0x40] sm:$0xff] %vm1593_vm6, %v5226_v1  ;;  %3442 = vst.msk [vmem:[#allocation5 + $0x48] sm:$0xff] %vm1593_vm6, %v5226_v1 }
  0x26   :  { %3443 = vst.msk [vmem:[#allocation5 + $0x50] sm:$0xff] %vm1593_vm6, %v5226_v1  ;;  %3444 = vst.msk [vmem:[#allocation5 + $0x58] sm:$0xff] %vm1593_vm6, %v5226_v1 }
  0x27   :  { %3445 = vst.msk [vmem:[#allocation5 + $0x60] sm:$0xff] %vm1593_vm6, %v5226_v1  ;;  %3446 = vst.msk [vmem:[#allocation5 + $0x68] sm:$0xff] %vm1593_vm6, %v5226_v1 }
  0x28   :  { %3447 = vst.msk [vmem:[#allocation5 + $0x70] sm:$0xff] %vm1593_vm6, %v5226_v1  ;;  %3448 = vst.msk [vmem:[#allocation5 + $0x78] sm:$0xff] %vm1593_vm6, %v5226_v1 }
  0x29   :  { %3452 = vst.msk [vmem:[#allocation6 + $0x8] sm:$0xff] %vm1593_vm6, %v5226_v1  ;;  %3453 = vst.msk [vmem:[#allocation6 + $0x10] sm:$0xff] %vm1593_vm6, %v5226_v1 }
  0x2a   :  { %3454 = vst.msk [vmem:[#allocation6 + $0x18] sm:$0xff] %vm1593_vm6, %v5226_v1  ;;  %3455 = vst.msk [vmem:[#allocation6 + $0x20] sm:$0xff] %vm1593_vm6, %v5226_v1 }
  0x2b   :  { %3456 = vst.msk [vmem:[#allocation6 + $0x28] sm:$0xff] %vm1593_vm6, %v5226_v1  ;;  %3457 = vst.msk [vmem:[#allocation6 + $0x30] sm:$0xff] %vm1593_vm6, %v5226_v1 }
  0x2c   :  { %3458 = vst.msk [vmem:[#allocation6 + $0x38] sm:$0xff] %vm1593_vm6, %v5226_v1  ;;  %3459 = vst.msk [vmem:[#allocation6 + $0x40] sm:$0xff] %vm1593_vm6, %v5226_v1 }
  0x2d   :  { %3460 = vst.msk [vmem:[#allocation6 + $0x48] sm:$0xff] %vm1593_vm6, %v5226_v1  ;;  %3461 = vst.msk [vmem:[#allocation6 + $0x50] sm:$0xff] %vm1593_vm6, %v5226_v1 }
  0x2e   :  { %3462 = vst.msk [vmem:[#allocation6 + $0x58] sm:$0xff] %vm1593_vm6, %v5226_v1  ;;  %3463 = vst.msk [vmem:[#allocation6 + $0x60] sm:$0xff] %vm1593_vm6, %v5226_v1 }
  0x2f   :  { %3464 = vst.msk [vmem:[#allocation6 + $0x68] sm:$0xff] %vm1593_vm6, %v5226_v1  ;;  %3465 = vst.msk [vmem:[#allocation6 + $0x70] sm:$0xff] %vm1593_vm6, %v5226_v1 }
  0x30   :  { %3466 = vst.msk [vmem:[#allocation6 + $0x78] sm:$0xff] %vm1593_vm6, %v5226_v1  ;;  %3468 = vst.msk [vmem:[#allocation7 + $0x8] sm:$0xff] %vm1593_vm6, %v5226_v1 }
  0x31   :  { %3469 = vst.msk [vmem:[#allocation7 + $0x10] sm:$0xff] %vm1593_vm6, %v5226_v1  ;;  %3470 = vst.msk [vmem:[#allocation7 + $0x18] sm:$0xff] %vm1593_vm6, %v5226_v1 }
  0x32   :  { %3471 = vst.msk [vmem:[#allocation7 + $0x20] sm:$0xff] %vm1593_vm6, %v5226_v1  ;;  %3472 = vst.msk [vmem:[#allocation7 + $0x28] sm:$0xff] %vm1593_vm6, %v5226_v1 }
  0x33   :  { %3473 = vst.msk [vmem:[#allocation7 + $0x30] sm:$0xff] %vm1593_vm6, %v5226_v1  ;;  %3474 = vst.msk [vmem:[#allocation7 + $0x38] sm:$0xff] %vm1593_vm6, %v5226_v1 }
  0x34   :  { %3475 = vst.msk [vmem:[#allocation7 + $0x40] sm:$0xff] %vm1593_vm6, %v5226_v1  ;;  %3476 = vst.msk [vmem:[#allocation7 + $0x48] sm:$0xff] %vm1593_vm6, %v5226_v1 }
  0x35   :  { %3477 = vst.msk [vmem:[#allocation7 + $0x50] sm:$0xff] %vm1593_vm6, %v5226_v1  ;;  %3478 = vst.msk [vmem:[#allocation7 + $0x58] sm:$0xff] %vm1593_vm6, %v5226_v1 }
  0x36   :  { %3479 = vst.msk [vmem:[#allocation7 + $0x60] sm:$0xff] %vm1593_vm6, %v5226_v1  ;;  %3480 = vst.msk [vmem:[#allocation7 + $0x68] sm:$0xff] %vm1593_vm6, %v5226_v1 }
  0x37   :  { %3481 = vst.msk [vmem:[#allocation7 + $0x70] sm:$0xff] %vm1593_vm6, %v5226_v1  ;;  %3482 = vst.msk [vmem:[#allocation7 + $0x78] sm:$0xff] %vm1593_vm6, %v5226_v1 }
  0xf2   :  { %v122_v9 = vpop.f32.mrb[0].mxu1 }
  0xf3   :  { %v126_v10 = vadd.f32 %v122_v9, %v51_v8  ;;  %v4723_v11 = vpop.f32.mrb[1].mxu1 }
  0xf5   :  { %4951 = vtanh.f32 %v126_v10  ;;  %v4571_v13 = vmul.f32 -1.442695, %v126_v10 }
  0xf7   :  { %4953 = vpow2.f32 %v4571_v13 }
  0xff   :  { %v4952_v12 = vpop.eup %4951 }
 0x100   :  { %136 = vrot.lane.b32.xlu0 %v4952_v12, %s5227_s10 }
 0x101   :  { %v4954_v14 = vpop.eup %4953 }
 0x102   :  { %v130_v15 = vadd.f32 1.0, %v4954_v14 }
 0x104   :  { %4955 = vrcp.f32 %v130_v15 }
 0x10e   :  { %v4956_v16 = vpop.eup %4955 }
 0x10f   :  { %v134_v19 = vmul.f32 0.0, %v4956_v16 }
 0x172   :  { %v137_v17 = vpop.permute.xlu0 %136 }
 0x173   :  { %v139_v18 = vmul.f32 %v4956_v16, %v137_v17 }
 0x175   :  { %141 = vrot.lane.b32.xlu0 %v139_v18, %s5228_s11 }
 0x1e7   :  { %v142_v20 = vpop.permute.xlu0 %141 }
 0x1e8   :  { %v144_v21 = vadd.f32 %v142_v20, %v134_v19 }
 0x1ea   :  { %4957 = vtanh.f32 %v144_v21 }
 0x1f4   :  { %v4958_v22 = vpop.eup %4957 }
 0x1f5   :  { %147 = vrot.lane.b32.xlu1 %v4958_v22, %s5227_s10 }
 0x267   :  { %v148_v23 = vpop.permute.xlu1 %147 }
 0x268   :  { %v5340_v24 = vmul.f32 %v4956_v16, %v148_v23 }
 0x26a   :  { %154 = vrot.lane.b32.xlu1 %v5340_v24, %s5228_s11 }
 0x2dc   :  { %v155_v25 = vpop.permute.xlu1 %154 }
 0x2dd   :  { %4733 = vmatmul.mubr.msk.f32.vlgmr.msra.gmra.mrb[2].mxu1 %vm52_vm1, %v155_v25 }
 0x2de   :  { %4815 = vmatpush3.bf16.msra.mxu1 %v5312_v5  ;;  %4743 = vmatprep.mubr.msk.f32.mxu1 %vm5225_vm0, %v5226_v1 }
 0x2df   :  { %4816 = vmatprep.subr.bf16.mxu1 %v5224_v0 }
 0x2e2   :  { %4818 = vmatpush3.bf16.msra.mxu1 %v5318_v7 }
 0x2e3   :  { %4819 = vmatprep.subr.bf16.mxu1 %v5224_v0 }
 0x3b0   :  { %v224_v27 = vpop.f32.mrb[2].mxu1 }
 0x3b1   :  { %v228_v28 = vadd.f32 %v4572_v26, %v224_v27  ;;  %v4734_v29 = vpop.f32.mrb[3].mxu1  ;;  %v4581_v26 = vld [vmem:[%s7390_s0 + $0x8] sm:$0x3] }
 0x3b3   :  { %4959 = vtanh.f32 %v228_v28  ;;  %v4574_v31 = vmul.f32 -1.442695, %v228_v28 }
 0x3b5   :  { %4961 = vpow2.f32 %v4574_v31 }
 0x3bd   :  { %v4960_v30 = vpop.eup %4959 }
 0x3be   :  { %238 = vrot.lane.b32.xlu0 %v4960_v30, %s5227_s10 }
 0x3bf   :  { %v4962_v32 = vpop.eup %4961 }
 0x3c0   :  { %v232_v33 = vadd.f32 1.0, %v4962_v32 }
 0x3c2   :  { %4963 = vrcp.f32 %v232_v33 }
 0x3cc   :  { %v4964_v34 = vpop.eup %4963 }
 0x3cd   :  { %v236_v37 = vmul.f32 %v4964_v34, %v144_v21 }
 0x430   :  { %v239_v35 = vpop.permute.xlu0 %238 }
 0x431   :  { %v241_v36 = vmul.f32 %v4964_v34, %v239_v35 }
 0x433   :  { %243 = vrot.lane.b32.xlu1 %v241_v36, %s5228_s11 }
 0x4a5   :  { %v244_v38 = vpop.permute.xlu1 %243 }
 0x4a6   :  { %v246_v39 = vadd.f32 %v244_v38, %v236_v37 }
 0x4a8   :  { %4965 = vtanh.f32 %v246_v39 }
 0x4b2   :  { %v4966_v40 = vpop.eup %4965 }
 0x4b3   :  { %249 = vrot.lane.b32.xlu0 %v4966_v40, %s5227_s10 }
 0x525   :  { %v250_v41 = vpop.permute.xlu0 %249 }
 0x526   :  { %v252_v42 = vmul.f32 %v4964_v34, %v250_v41 }
 0x528   :  { %256 = vrot.lane.b32.xlu1 %v252_v42, %s5228_s11  ;;  %v865_v59 = vrot.slane %v252_v42, 6 }
 0x52a   :  { %v879_v63 = vsel %vm878_vm2, %v5340_v24, %v865_v59  ;;  %v4587_v59 = vld [vmem:[%s7390_s0 + $0xc] sm:$0x3] }
 0x59a   :  { %v257_v43 = vpop.permute.xlu1 %256 }
 0x59b   :  { %4744 = vmatmul.mubr.msk.f32.vlgmr.msra.gmra.mrb[4].mxu1 %vm52_vm1, %v257_v43 }
 0x59c   :  { %4821 = vmatpush3.bf16.msra.mxu1 %v5312_v5  ;;  %4754 = vmatprep.mubr.msk.f32.mxu1 %vm5225_vm0, %v5226_v1 }
 0x59d   :  { %4822 = vmatprep.subr.bf16.mxu1 %v5224_v0 }
 0x5a0   :  { %4824 = vmatpush3.bf16.msra.mxu1 %v5318_v7 }
 0x5a1   :  { %4831 = vmatprep.subr.bf16.mxu1 %v5224_v0 }
 0x66e   :  { %v326_v45 = vpop.f32.mrb[4].mxu1 }
 0x66f   :  { %v330_v46 = vadd.f32 %v4575_v44, %v326_v45  ;;  %v4745_v47 = vpop.f32.mrb[5].mxu1  ;;  %v4584_v44 = vld [vmem:[%s7390_s0 + $0xa] sm:$0x3] }
 0x671   :  { %4967 = vtanh.f32 %v330_v46  ;;  %v4577_v49 = vmul.f32 -1.442695, %v330_v46 }
 0x673   :  { %4969 = vpow2.f32 %v4577_v49 }
 0x67b   :  { %v4968_v48 = vpop.eup %4967 }
 0x67c   :  { %340 = vrot.lane.b32.xlu0 %v4968_v48, %s5227_s10 }
 0x67d   :  { %v4970_v50 = vpop.eup %4969 }
 0x67e   :  { %v334_v51 = vadd.f32 1.0, %v4970_v50 }
 0x680   :  { %4971 = vrcp.f32 %v334_v51 }
 0x68a   :  { %v4972_v52 = vpop.eup %4971 }
 0x68b   :  { %v338_v55 = vmul.f32 %v4972_v52, %v246_v39 }
 0x6ee   :  { %v341_v53 = vpop.permute.xlu0 %340 }
 0x6ef   :  { %v343_v54 = vmul.f32 %v4972_v52, %v341_v53 }
 0x6f1   :  { %345 = vrot.lane.b32.xlu1 %v343_v54, %s5228_s11 }
 0x763   :  { %v346_v56 = vpop.permute.xlu1 %345 }
 0x764   :  { %v348_v57 = vadd.f32 %v346_v56, %v338_v55 }
 0x766   :  { %4973 = vtanh.f32 %v348_v57 }
 0x770   :  { %v4974_v58 = vpop.eup %4973 }
 0x771   :  { %351 = vrot.lane.b32.xlu0 %v4974_v58, %s5227_s10 }
 0x7e3   :  { %v352_v60 = vpop.permute.xlu0 %351 }
 0x7e4   :  { %v354_v61 = vmul.f32 %v4972_v52, %v352_v60 }
 0x7e6   :  { %v867_v62 = vrot.slane %v354_v61, 4  ;;  %358 = vrot.lane.b32.xlu1 %v354_v61, %s5228_s11 }
 0x7e8   :  { %v881_v2 = vsel %vm880_vm3, %v879_v63, %v867_v62 }
 0x858   :  { %v359_v3 = vpop.permute.xlu1 %358 }
 0x859   :  { %4755 = vmatmul.mubr.msk.f32.vlgmr.msra.gmra.mrb[6].mxu1 %vm52_vm1, %v359_v3 }
 0x85a   :  { %4833 = vmatpush3.bf16.msra.mxu1 %v5312_v5  ;;  %4776 = vmatprep.mubr.msk.f32.mxu1 %vm5225_vm0, %v5226_v1 }
 0x85b   :  { %4834 = vmatprep.subr.bf16.mxu1 %v5224_v0 }
 0x85e   :  { %4836 = vmatpush3.bf16.msra.mxu1 %v5318_v7 }
 0x85f   :  { %4843 = vmatprep.subr.bf16.mxu1 %v5224_v0 }
 0x92c   :  { %v428_v6 = vpop.f32.mrb[6].mxu1 }
 0x92d   :  { %v432_v8 = vadd.f32 %v4578_v4, %v428_v6  ;;  %v4756_v9 = vpop.f32.mrb[7].mxu1 }
 0x92f   :  { %4975 = vtanh.f32 %v432_v8  ;;  %v4580_v11 = vmul.f32 -1.442695, %v432_v8 }
 0x931   :  { %4977 = vpow2.f32 %v4580_v11 }
 0x939   :  { %v4976_v10 = vpop.eup %4975 }
 0x93a   :  { %442 = vrot.lane.b32.xlu0 %v4976_v10, %s5227_s10 }
 0x93b   :  { %v4978_v12 = vpop.eup %4977 }
 0x93c   :  { %v436_v13 = vadd.f32 1.0, %v4978_v12 }
 0x93e   :  { %4979 = vrcp.f32 %v436_v13 }
 0x948   :  { %v4980_v14 = vpop.eup %4979 }
 0x949   :  { %v440_v17 = vmul.f32 %v4980_v14, %v348_v57 }
 0x9ac   :  { %v443_v15 = vpop.permute.xlu0 %442 }
 0x9ad   :  { %v445_v16 = vmul.f32 %v4980_v14, %v443_v15 }
 0x9af   :  { %447 = vrot.lane.b32.xlu1 %v445_v16, %s5228_s11 }
 0xa21   :  { %v448_v18 = vpop.permute.xlu1 %447 }
 0xa22   :  { %v450_v19 = vadd.f32 %v448_v18, %v440_v17 }
 0xa24   :  { %4981 = vtanh.f32 %v450_v19 }
 0xa2e   :  { %v4982_v20 = vpop.eup %4981 }
 0xa2f   :  { %453 = vrot.lane.b32.xlu0 %v4982_v20, %s5227_s10 }
 0xaa1   :  { %v454_v21 = vpop.permute.xlu0 %453 }
 0xaa2   :  { %v456_v22 = vmul.f32 %v4980_v14, %v454_v21  ;;  %v4590_v21 = vld [vmem:[%s7390_s0 + $0xe] sm:$0x3] }
 0xaa4   :  { %v869_v23 = vrot.slane %v456_v22, 2  ;;  %460 = vrot.lane.b32.xlu1 %v456_v22, %s5228_s11 }
 0xaa6   :  { %v5390_v24 = vsel %vm882_vm4, %v881_v2, %v869_v23 }
 0xb16   :  { %v461_v25 = vpop.permute.xlu1 %460 }
 0xb17   :  { %4766 = vmatmul.mubr.msk.f32.vlgmr.msra.gmra.mrb[0].mxu0 %vm52_vm1, %v461_v25 }
 0xb18   :  { %4839 = vmatpush3.bf16.msra.mxu0 %v5312_v5  ;;  %4787 = vmatprep.mubr.msk.f32.mxu0 %vm5225_vm0, %v5226_v1 }
 0xb19   :  { %4840 = vmatprep.subr.bf16.mxu0 %v5224_v0 }
 0xb1c   :  { %4842 = vmatpush3.bf16.msra.mxu0 %v5318_v7 }
 0xbea   :  { %v530_v27 = vpop.f32.mrb[0].mxu0 }
 0xbeb   :  { %v534_v28 = vadd.f32 %v4581_v26, %v530_v27  ;;  %v4767_v29 = vpop.f32.mrb[1].mxu0  ;;  %v888_v26 = vld [vmem:[#allocation8 + $0x8] sm:$0xff] }
 0xbec   :  { %v900_v27 = vld [vmem:[#allocation8 + $0x68] sm:$0xff] }
 0xbed   :  { %4983 = vtanh.f32 %v534_v28  ;;  %v4583_v31 = vmul.f32 -1.442695, %v534_v28  ;;  %v890_v28 = vld [vmem:[#allocation8 + $0x18] sm:$0xff]  ;;  %v4849_v29 = vpack.c.bf16 %v900_v27, %v888_v26  ;;  %v896_v26 = vld [vmem:[#allocation8 + $0x48] sm:$0xff] }
 0xbef   :  { %4985 = vpow2.f32 %v4583_v31  ;;  %v887_v31 = vld [vmem:[#allocation8] sm:$0xff]  ;;  %4850 = vmatprep.subr.bf16.mxu0 %v4849_v29 }
 0xbf7   :  { %v4984_v30 = vpop.eup %4983 }
 0xbf8   :  { %544 = vrot.lane.b32.xlu0 %v4984_v30, %s5227_s10  ;;  %v902_v30 = vld [vmem:[#allocation8 + $0x78] sm:$0xff] }
 0xbf9   :  { %v4986_v32 = vpop.eup %4985 }
 0xbfa   :  { %v538_v33 = vadd.f32 1.0, %v4986_v32  ;;  %v899_v32 = vld [vmem:[#allocation8 + $0x60] sm:$0xff] }
 0xbfc   :  { %4987 = vrcp.f32 %v538_v33  ;;  %v4857_v33 = vpack.c.bf16 %v902_v30, %v890_v28  ;;  %v908_v28 = vld [vmem:[#allocation8 + $0xa8] sm:$0xff] }
 0xbfd   :  { %v4881_v29 = vpack.c.bf16 %v908_v28, %v896_v26 }
 0xc06   :  { %v4988_v34 = vpop.eup %4987 }
 0xc07   :  { %v542_v37 = vmul.f32 %v4988_v34, %v450_v19 }
 0xc6a   :  { %v545_v35 = vpop.permute.xlu0 %544 }
 0xc6b   :  { %v547_v36 = vmul.f32 %v4988_v34, %v545_v35  ;;  %v889_v35 = vld [vmem:[#allocation8 + $0x10] sm:$0xff] }
 0xc6d   :  { %549 = vrot.lane.b32.xlu1 %v547_v36, %s5228_s11  ;;  %v901_v36 = vld [vmem:[#allocation8 + $0x70] sm:$0xff] }
 0xcdf   :  { %v550_v38 = vpop.permute.xlu1 %549 }
 0xce0   :  { %v552_v39 = vadd.f32 %v550_v38, %v542_v37  ;;  %v4859_v37 = vpack.c.bf16 %v901_v36, %v889_v35 }
 0xce2   :  { %4989 = vtanh.f32 %v552_v39 }
 0xcec   :  { %v4990_v40 = vpop.eup %4989 }
 0xced   :  { %555 = vrot.lane.b32.xlu0 %v4990_v40, %s5227_s10 }
 0xd5f   :  { %v556_v41 = vpop.permute.xlu0 %555 }
 0xd60   :  { %v5404_v42 = vmul.f32 %v4988_v34, %v556_v41  ;;  %v4851_v34 = vpack.c.bf16 %v899_v32, %v887_v31 }
 0xd62   :  { %562 = vrot.lane.b32.xlu1 %v5404_v42, %s5228_s11 }
 0xdd4   :  { %v563_v43 = vpop.permute.xlu1 %562 }
 0xdd5   :  { %4777 = vmatmul.mubr.msk.f32.vlgmr.msra.gmra.mrb[8].mxu1 %vm52_vm1, %v563_v43  ;;  %v924_v43 = vld [vmem:[#allocation8 + $0x128] sm:$0xff] }
 0xdd6   :  { %4845 = vmatpush3.bf16.msra.mxu1 %v5312_v5  ;;  %4798 = vmatprep.mubr.msk.f32.mxu1 %vm5225_vm0, %v5226_v1 }
 0xdd7   :  { %4846 = vmatprep.subr.bf16.mxu1 %v5224_v0 }
 0xdda   :  { %4848 = vmatpush3.bf16.msra.mxu1 %v5318_v7 }
 0xddb   :  { %4858 = vmatprep.subr.bf16.mxu1 %v4857_v33 }
 0xea8   :  { %v632_v45 = vpop.f32.mrb[8].mxu1 }
 0xea9   :  { %v636_v46 = vadd.f32 %v4584_v44, %v632_v45  ;;  %v4778_v47 = vpop.f32.mrb[9].mxu1  ;;  %v914_v44 = vld [vmem:[#allocation8 + $0xd8] sm:$0xff] }
 0xeaa   :  { %v911_v47 = vld [vmem:[#allocation8 + $0xc0] sm:$0xff] }
 0xeab   :  { %4991 = vtanh.f32 %v636_v46  ;;  %v4586_v49 = vmul.f32 -1.442695, %v636_v46  ;;  %v926_v46 = vld [vmem:[#allocation8 + $0x138] sm:$0xff] }
 0xead   :  { %4993 = vpow2.f32 %v4586_v49  ;;  %v4861_v49 = vpack.c.bf16 %v926_v46, %v914_v44 }
 0xeb5   :  { %v4992_v48 = vpop.eup %4991 }
 0xeb6   :  { %646 = vrot.lane.b32.xlu0 %v4992_v48, %s5227_s10  ;;  %v923_v48 = vld [vmem:[#allocation8 + $0x120] sm:$0xff] }
 0xeb7   :  { %v4994_v5 = vpop.eup %4993 }
 0xeb8   :  { %v640_v50 = vadd.f32 1.0, %v4994_v5  ;;  %v4855_v5 = vpack.c.bf16 %v923_v48, %v911_v47 }
 0xeba   :  { %4995 = vrcp.f32 %v640_v50  ;;  %v913_v50 = vld [vmem:[#allocation8 + $0xd0] sm:$0xff] }
 0xec4   :  { %v4996_v51 = vpop.eup %4995 }
 0xec5   :  { %v644_v7 = vmul.f32 %v4996_v51, %v552_v39 }
 0xf28   :  { %v647_v0 = vpop.permute.xlu0 %646 }
 0xf29   :  { %v649_v52 = vmul.f32 %v4996_v51, %v647_v0 }
 0xf2b   :  { %651 = vrot.lane.b32.xlu1 %v649_v52, %s5228_s11 }
 0xf9d   :  { %v652_v53 = vpop.permute.xlu1 %651 }
 0xf9e   :  { %v654_v54 = vadd.f32 %v652_v53, %v644_v7 }
 0xfa0   :  { %4997 = vtanh.f32 %v654_v54 }
 0xfaa   :  { %v4998_v55 = vpop.eup %4997 }
 0xfab   :  { %657 = vrot.lane.b32.xlu0 %v4998_v55, %s5227_s10 }
0x101d   :  { %v658_v56 = vpop.permute.xlu0 %657 }
0x101e   :  { %v660_v57 = vmul.f32 %v4996_v51, %v658_v56  ;;  %v925_v51 = vld [vmem:[#allocation8 + $0x130] sm:$0xff] }
0x101f   :  { %v4863_v0 = vpack.c.bf16 %v925_v51, %v913_v50 }
0x1020   :  { %664 = vrot.lane.b32.xlu1 %v660_v57, %s5228_s11  ;;  %v871_v14 = vrot.slane %v660_v57, 6 }
0x1022   :  { %v884_v18 = vsel %vm878_vm2, %v5404_v42, %v871_v14  ;;  %v912_v42 = vld [vmem:[#allocation8 + $0xc8] sm:$0xff] }
0x1023   :  { %v4853_v45 = vpack.c.bf16 %v924_v43, %v912_v42  ;;  %v928_v14 = vld [vmem:[#allocation8 + $0x148] sm:$0xff] }
0x1092   :  { %v665_v58 = vpop.permute.xlu1 %664 }
0x1093   :  { %4788 = vmatmul.mubr.msk.f32.vlgmr.msra.gmra.mrb[2].mxu0 %vm52_vm1, %v665_v58 }
0x1094   :  { %1073 = vmatprep.mubr.f32.mxu0 %v5226_v1  ;;  %4852 = vmatpush1.bf16.msra.mxu0 %v4851_v34  ;;  %v939_v34 = vlaneseq }
0x1095   :  { %4854 = vmatprep.subr.bf16.mxu0 %v4853_v45 }
0x1096   :  { %v5460_v35 = vshrl.u32 %v939_v34, 7 }
0x1098   :  { %4856 = vmatpush1.bf16.msra.mxu0 %v4855_v5  ;;  %v941_v36 = vsub.s32 0, %v5460_v35 }
0x1166   :  { %v734_v60 = vpop.f32.mrb[2].mxu0 }
0x1167   :  { %v738_v61 = vadd.f32 %v4587_v59, %v734_v60  ;;  %v4789_v62 = vpop.f32.mrb[3].mxu0  ;;  %v906_v59 = vld [vmem:[#allocation8 + $0x98] sm:$0xff]  ;;  %v892_v60 = vld [vmem:[#allocation8 + $0x28] sm:$0xff] }
0x1168   :  { %v904_v62 = vld [vmem:[#allocation8 + $0x88] sm:$0xff] }
0x1169   :  { %4999 = vtanh.f32 %v738_v61  ;;  %v4589_v2 = vmul.f32 -1.442695, %v738_v61 }
0x116b   :  { %5001 = vpow2.f32 %v4589_v2  ;;  %v905_v2 = vld [vmem:[#allocation8 + $0x90] sm:$0xff] }
0x1173   :  { %v5000_v63 = vpop.eup %4999 }
0x1174   :  { %748 = vrot.lane.b32.xlu0 %v5000_v63, %s5227_s10  ;;  %v893_v63 = vld [vmem:[#allocation8 + $0x30] sm:$0xff] }
0x1175   :  { %v5002_v3 = vpop.eup %5001 }
0x1176   :  { %v742_v4 = vadd.f32 1.0, %v5002_v3  ;;  %v4865_v3 = vpack.c.bf16 %v904_v62, %v892_v60 }
0x1178   :  { %5003 = vrcp.f32 %v742_v4  ;;  %v4875_v4 = vpack.c.bf16 %v905_v2, %v893_v63  ;;  %4866 = vmatprep.subr.bf16.mxu0 %v4865_v3 }
0x1182   :  { %v5004_v6 = vpop.eup %5003 }
0x1183   :  { %v746_v10 = vmul.f32 %v5004_v6, %v654_v54 }
0x11e6   :  { %v749_v8 = vpop.permute.xlu0 %748 }
0x11e7   :  { %v751_v9 = vmul.f32 %v5004_v6, %v749_v8  ;;  %v903_v8 = vld [vmem:[#allocation8 + $0x80] sm:$0xff] }
0x11e9   :  { %753 = vrot.lane.b32.xlu1 %v751_v9, %s5228_s11  ;;  %v918_v9 = vld [vmem:[#allocation8 + $0xf8] sm:$0xff] }
0x125b   :  { %v754_v11 = vpop.permute.xlu1 %753 }
0x125c   :  { %v5428_v12 = vadd.f32 %v754_v11, %v746_v10  ;;  %v930_v11 = vld [vmem:[#allocation8 + $0x158] sm:$0xff] }
0x125e   :  { %5005 = vtanh.f32 %v5428_v12 }
0x1268   :  { %v5006_v13 = vpop.eup %5005 }
0x1269   :  { %759 = vrot.lane.b32.xlu0 %v5006_v13, %s5227_s10  ;;  %v916_v13 = vld [vmem:[#allocation8 + $0xe8] sm:$0xff] }
0x12db   :  { %v760_v15 = vpop.permute.xlu0 %759 }
0x12dc   :  { %v762_v16 = vmul.f32 %v5004_v6, %v760_v15  ;;  %v891_v6 = vld [vmem:[#allocation8 + $0x20] sm:$0xff]  ;;  %v917_v15 = vld [vmem:[#allocation8 + $0xf0] sm:$0xff] }
0x12dd   :  { %v4867_v10 = vpack.c.bf16 %v903_v8, %v891_v6 }
0x12de   :  { %v873_v17 = vrot.slane %v762_v16, 4  ;;  %766 = vrot.lane.b32.xlu1 %v762_v16, %s5228_s11  ;;  %v4869_v16 = vpack.c.bf16 %v928_v14, %v916_v13 }
0x12e0   :  { %v5436_v19 = vsel %vm880_vm3, %v884_v18, %v873_v17  ;;  %v929_v17 = vld [vmem:[#allocation8 + $0x150] sm:$0xff]  ;;  %v915_v18 = vld [vmem:[#allocation8 + $0xe0] sm:$0xff] }
0x1350   :  { %v767_v20 = vpop.permute.xlu1 %766 }
0x1351   :  { %4799 = vmatmul.mubr.msk.f32.vlgmr.msra.gmra.mrb[10].mxu1 %vm52_vm1, %v767_v20  ;;  %v927_v20 = vld [vmem:[#allocation8 + $0x140] sm:$0xff] }
0x1352   :  { %1150 = vmatprep.mubr.f32.mxu1 %v5226_v1  ;;  %4860 = vmatpush1.bf16.msra.mxu1 %v4859_v37  ;;  %v949_v37 = vsub.s32 2, %v5460_v35 }
0x1353   :  { %4862 = vmatprep.subr.bf16.mxu1 %v4861_v49 }
0x1356   :  { %4864 = vmatpush1.bf16.msra.mxu1 %v4863_v0 }
0x1424   :  { %v836_v22 = vpop.f32.mrb[10].mxu1 }
0x1425   :  { %v840_v23 = vadd.f32 %v4590_v21, %v836_v22  ;;  %v4800_v25 = vpop.f32.mrb[11].mxu1  ;;  %v4879_v21 = vpack.c.bf16 %v929_v17, %v917_v15  ;;  %v4871_v22 = vpack.c.bf16 %v927_v20, %v915_v18  ;;  %v895_v15 = vld [vmem:[#allocation8 + $0x40] sm:$0xff]  ;;  %v897_v20 = vld [vmem:[#allocation8 + $0x50] sm:$0xff] }
0x1426   :  { %v910_v25 = vld [vmem:[#allocation8 + $0xb8] sm:$0xff] }
0x1427   :  { %5007 = vtanh.f32 %v840_v23  ;;  %v4592_v39 = vmul.f32 -1.442695, %v840_v23  ;;  %v898_v23 = vld [vmem:[#allocation8 + $0x58] sm:$0xff] }
0x1428   :  { %v4889_v27 = vpack.c.bf16 %v910_v25, %v898_v23 }
0x1429   :  { %5009 = vpow2.f32 %v4592_v39  ;;  %v945_v39 = vsub.s32 1, %v5460_v35 }
0x1431   :  { %v5008_v38 = vpop.eup %5007 }
0x1432   :  { %850 = vrot.lane.b32.xlu0 %v5008_v38, %s5227_s10  ;;  %v5467_v38 = vld [vmem:[%s7395_s5] sm:$0xff] }
0x1433   :  { %v5010_v40 = vpop.eup %5009  ;;  %v5484_v42 = vrot.slane %v5467_v38, %v945_v39 }
0x1434   :  { %v844_v41 = vadd.f32 1.0, %v5010_v40  ;;  %v953_v40 = vsub.s32 3, %v5460_v35 }
0x1436   :  { %5011 = vrcp.f32 %v844_v41  ;;  %v5479_v41 = vrot.slane %v5467_v38, %v949_v37  ;;  %v5489_v43 = vrot.slane %v5467_v38, %v953_v40 }
0x1440   :  { %v5012_v52 = vpop.eup %5011 }
0x1441   :  { %v848_v54 = vmul.f32 %v5012_v52, %v5428_v12  ;;  %v4877_v12 = vpack.c.bf16 %v930_v11, %v918_v9 }
0x14a4   :  { %v851_v7 = vpop.permute.xlu0 %850 }
0x14a5   :  { %v853_v53 = vmul.f32 %v5012_v52, %v851_v7 }
0x14a7   :  { %855 = vrot.lane.b32.xlu1 %v853_v53, %s5228_s11 }
0x14ab   :  { %1001 = vrot.lane.b32.xlu1 %v5390_v24, %s5228_s11  ;;  %v894_v24 = vld [vmem:[#allocation8 + $0x38] sm:$0xff] }
0x14ac   :  { %v4873_v61 = vpack.c.bf16 %v906_v59, %v894_v24 }
0x14ae   :  { %4874 = vmatprep.subr.bf16.mxu1 %v4873_v61 }
0x1519   :  { %v856_v55 = vpop.permute.xlu1 %855 }
0x151a   :  { %v858_v56 = vadd.f32 %v856_v55, %v848_v54 }
0x151c   :  { %5013 = vtanh.f32 %v858_v56 }
0x151d   :  { %v5448_v57 = vpop.permute.xlu1 %1001 }
0x151e   :  { %4593 = vmatmul.mubr.msk.f32.vlgmr.msra.gmra.mrb[4].mxu0 %vm52_vm1, %v5448_v57  ;;  %4595 = vmatmul.mubr.msk.f32.vlgmr.msra.gmra.mrb[12].mxu1 %vm52_vm1, %v5448_v57 }
0x151f   :  { %1079 = vmatprep.mubr.f32.mxu0 %v5226_v1  ;;  %1156 = vmatprep.mubr.f32.mxu1 %v5226_v1 }
0x1520   :  { %4876 = vmatpush1.bf16.msra.mxu1 %v4875_v4  ;;  %4868 = vmatpush1.bf16.msra.mxu0 %v4867_v10 }
0x1521   :  { %4878 = vmatprep.subr.bf16.mxu1 %v4877_v12  ;;  %4870 = vmatprep.subr.bf16.mxu0 %v4869_v16  ;;  %v907_v16 = vld [vmem:[#allocation8 + $0xa0] sm:$0xff] }
0x1524   :  { %4880 = vmatpush1.bf16.msra.mxu1 %v4879_v21  ;;  %4872 = vmatpush1.bf16.msra.mxu0 %v4871_v22  ;;  %v909_v21 = vld [vmem:[#allocation8 + $0xb0] sm:$0xff] }
0x1525   :  { %4890 = vmatprep.subr.bf16.mxu1 %v4889_v27  ;;  %4882 = vmatprep.subr.bf16.mxu0 %v4881_v29  ;;  %v4883_v29 = vpack.c.bf16 %v907_v16, %v895_v15  ;;  %v4891_v34 = vpack.c.bf16 %v909_v21, %v897_v20 }
0x1526   :  { %v5014_v58 = vpop.eup %5013 }
0x1527   :  { %861 = vrot.lane.b32.xlu0 %v5014_v58, %s5227_s10  ;;  %v5229_v58 = vmov 1983009808  }
0x1528   :  { %v1610_v24 = vunpack.c.l.s4 %v5229_v58 }
0x152a   :  { %v1611_v63 = vunpack.c.0.s8 %v1610_v24 }
0x152c   :  { %v5496_v2 = vsub.s32 %v1611_v63, %v5460_v35 }
0x152e   :  { %7431 = vst [vmem:[#allocation17_spill] sm:$0xff] %v5496_v2 }
0x1599   :  { %v862_v30 = vpop.permute.xlu0 %861 }
0x159a   :  { %v864_v31 = vmul.f32 %v5012_v52, %v862_v30  ;;  %v922_v30 = vld [vmem:[#allocation8 + $0x118] sm:$0xff] }
0x159c   :  { %v876_v32 = vrot.slane %v864_v31, 2  ;;  %v934_v31 = vld [vmem:[#allocation8 + $0x178] sm:$0xff] }
0x159e   :  { %v886_v33 = vsel %vm882_vm4, %v5436_v19, %v876_v32  ;;  %v5474_v19 = vrot.slane %v5467_v38, %v941_v36 }
0x159f   :  { %1003 = vrot.lane.b32.xlu0 %v886_v33, %s5228_s11 }
0x15f1   :  { %v1075_v44 = vpop.f32.mrb[4].mxu0  ;;  %v1152_v45 = vpop.f32.mrb[12].mxu1 }
0x15f2   :  { %v1076_v46 = vadd.f32 %v1075_v44, %v5474_v19  ;;  %v1153_v47 = vadd.f32 %v1152_v45, %v5479_v41  ;;  %v1077_v48 = vpop.f32.mrb[5].mxu0  ;;  %v1154_v49 = vpop.f32.mrb[13].mxu1  ;;  %v920_v44 = vld [vmem:[#allocation8 + $0x108] sm:$0xff] }
0x15f3   :  { %v1078_v5 = vadd.f32 %v1077_v48, %v5484_v42  ;;  %v1155_v50 = vadd.f32 %v1154_v49, %v5489_v43  ;;  %v932_v45 = vld [vmem:[#allocation8 + $0x168] sm:$0xff]  ;;  %v933_v48 = vld [vmem:[#allocation8 + $0x170] sm:$0xff] }
0x15f4   :  { %v4605_v51 = vmul.f32 -1.442695, %v1076_v46  ;;  %v4607_v0 = vmul.f32 -1.442695, %v1153_v47  ;;  %v921_v47 = vld [vmem:[#allocation8 + $0x110] sm:$0xff] }
0x15f5   :  { %v4606_v52 = vmul.f32 -1.442695, %v1078_v5  ;;  %v4608_v7 = vmul.f32 -1.442695, %v1155_v50 }
0x15f6   :  { %5015 = vpow2.f32 %v4605_v51 }
0x15f7   :  { %5017 = vpow2.f32 %v4607_v0  ;;  %v4893_v0 = vpack.c.bf16 %v934_v31, %v922_v30  ;;  %v957_v30 = vsub.s32 4, %v5460_v35  ;;  %v965_v31 = vsub.s32 6, %v5460_v35 }
0x15f8   :  { %5019 = vpow2.f32 %v4606_v52  ;;  %v919_v52 = vld [vmem:[#allocation8 + $0x100] sm:$0xff] }
0x15f9   :  { %5021 = vpow2.f32 %v4608_v7  ;;  %v931_v7 = vld [vmem:[#allocation8 + $0x160] sm:$0xff] }
0x15fa   :  { %v4887_v24 = vpack.c.bf16 %v931_v7, %v919_v52 }
0x1600   :  { %v5016_v53 = vpop.eup %5015 }
0x1601   :  { %v5018_v54 = vpop.eup %5017  ;;  %v1531_v55 = vadd.f32 1.0, %v5016_v53  ;;  %v4885_v53 = vpack.c.bf16 %v932_v45, %v920_v44 }
0x1602   :  { %v5020_v56 = vpop.eup %5019  ;;  %v1533_v59 = vadd.f32 1.0, %v5018_v54 }
0x1603   :  { %v5022_v60 = vpop.eup %5021  ;;  %5023 = vrcp.f32 %v1531_v55  ;;  %v1532_v61 = vadd.f32 1.0, %v5020_v56  ;;  %v4895_v55 = vpack.c.bf16 %v933_v48, %v921_v47  ;;  %v958_v47 = vrot.slane %v5467_v38, %v957_v30 }
0x1604   :  { %5025 = vrcp.f32 %v1533_v59  ;;  %v1534_v62 = vadd.f32 1.0, %v5022_v60 }
0x1605   :  { %5027 = vrcp.f32 %v1532_v61 }
0x1606   :  { %5029 = vrcp.f32 %v1534_v62 }
0x160d   :  { %v5024_v3 = vpop.eup %5023 }
0x160e   :  { %v5026_v4 = vpop.eup %5025  ;;  %v1668_v6 = vrot.slane %v5024_v3, %v5496_v2  ;;  %v1661_v8 = vcombine.high %v5024_v3, %v5024_v3 }
0x160f   :  { %v5028_v9 = vpop.eup %5027  ;;  %v5500_v10 = vrot.slane %v5026_v4, %v5496_v2  ;;  %v1713_v11 = vcombine.high %v5026_v4, %v5026_v4 }
0x1610   :  { %v2073_v12 = vrot.slane %v1668_v6, %v5496_v2  ;;  %1703 = vst.msk [vmem:[#allocation3] sm:$0x3] %vm1650_vm5, %v1668_v6  ;;  %v1676_v13 = vcombine.high %v1668_v6, %v1668_v6  ;;  %v1675_v14 = vrot.slane %v1661_v8, %v5496_v2  ;;  %v5506_v17 = vrot.slane %v5028_v9, %v5496_v2  ;;  %v5030_v26 = vpop.eup %5029 }
0x1611   :  { %v5508_v18 = vpop.permute.xlu0 %1003  ;;  %1756 = vst.msk [vmem:[#allocation3 + $0x40] sm:$0x3] %vm1650_vm5, %v5500_v10  ;;  %v5514_v22 = vcombine.high %v5500_v10, %v5500_v10  ;;  %v5517_v23 = vrot.slane %v1713_v11, %v5496_v2  ;;  %v2575_v25 = vcombine.high %v5028_v9, %v5028_v9  ;;  %v2634_v5 = vrot.slane %v5030_v26, %v5496_v2 }
0x1612   :  { %2123 = vrot.lane.b32.xlu1 %v2073_v12, %s5227_s10  ;;  %4594 = vmatmul.mubr.msk.f32.gmra.mrb[6].mxu0 %vm52_vm1, %v5508_v18  ;;  %1704 = vst.msk [vmem:[#allocation3 + $0x8] sm:$0x3] %vm1650_vm5, %v1676_v13  ;;  %v2080_v27 = vrot.slane %v1676_v13, %v5496_v2  ;;  %1705 = vst.msk [vmem:[#allocation3 + $0x10] sm:$0x3] %vm1650_vm5, %v1675_v14  ;;  %v1677_v28 = vcombine.high %v1675_v14, %v1675_v14 }
0x1613   :  { %2617 = vst.msk [vmem:[#allocation3 + $0x4] sm:$0x3] %vm1650_vm5, %v5506_v17  ;;  %4596 = vmatmul.mubr.msk.f32.gmra.mrb[14].mxu1 %vm52_vm1, %v5508_v18  ;;  %1227 = vmatprep.mubr.f32.mxu0 %v5226_v1  ;;  %1757 = vst.msk [vmem:[#allocation3 + $0x48] sm:$0x3] %vm1650_vm5, %v5514_v22  ;;  %v1729_v32 = vcombine.high %v5517_v23, %v5517_v23  ;;  %v2087_v33 = vrot.slane %v1675_v14, %v5496_v2 }
0x1614   :  { %1758 = vst.msk [vmem:[#allocation3 + $0x50] sm:$0x3] %vm1650_vm5, %v5517_v23  ;;  %2125 = vrot.lane.b32.xlu0 %v2080_v27, %s5227_s10  ;;  %1304 = vmatprep.mubr.f32.mxu1 %v5226_v1  ;;  %1706 = vst.msk [vmem:[#allocation3 + $0x18] sm:$0x3] %vm1650_vm5, %v1677_v28  ;;  %v2590_v46 = vcombine.high %v5506_v17, %v5506_v17  ;;  %v2589_v49 = vrot.slane %v2575_v25, %v5496_v2 }
0x1615   :  { %1759 = vst.msk [vmem:[#allocation3 + $0x58] sm:$0x3] %vm1650_vm5, %v1729_v32  ;;  %v2627_v50 = vcombine.high %v5030_v26, %v5030_v26  ;;  %v2094_v51 = vrot.slane %v1677_v28, %v5496_v2  ;;  %2669 = vst.msk [vmem:[#allocation3 + $0x44] sm:$0x3] %vm1650_vm5, %v2634_v5  ;;  %v2642_v56 = vcombine.high %v2634_v5, %v2634_v5  ;;  %v5230_v26 = vmov 1.0  }
0x1616   :  { %2127 = vrot.lane.b32.xlu1 %v2087_v33, %s5227_s10  ;;  %4597 = vmatmul.mubr.msk.f32.vlgmr.msra.gmra.mrb[8].mxu0 %vm52_vm1, %v5448_v57  ;;  %2618 = vst.msk [vmem:[#allocation3 + $0xc] sm:$0x3] %vm1650_vm5, %v2590_v46  ;;  %2619 = vst.msk [vmem:[#allocation3 + $0x14] sm:$0x3] %vm1650_vm5, %v2589_v49  ;;  %v2591_v54 = vcombine.high %v2589_v49, %v2589_v49  ;;  %v2161_v59 = vrot.slane %v5500_v10, %v5496_v2  ;;  %v969_v33 = vsub.s32 7, %v5460_v35 }
0x1617   :  { %4599 = vmatmul.mubr.msk.f32.vlgmr.msra.gmra.mrb[16].mxu1 %vm52_vm1, %v5448_v57  ;;  %4884 = vmatpush1.bf16.msra.mxu0 %v4883_v29  ;;  %v2641_v58 = vrot.slane %v2627_v50, %v5496_v2  ;;  %2670 = vst.msk [vmem:[#allocation3 + $0x4c] sm:$0x3] %vm1650_vm5, %v2642_v56  ;;  %v2168_v61 = vrot.slane %v5514_v22, %v5496_v2 }
0x1618   :  { %4892 = vmatpush1.bf16.msra.mxu1 %v4891_v34  ;;  %2129 = vrot.lane.b32.xlu0 %v2094_v51, %s5227_s10  ;;  %2620 = vst.msk [vmem:[#allocation3 + $0x1c] sm:$0x3] %vm1650_vm5, %v2591_v54  ;;  %v2175_v62 = vrot.slane %v5517_v23, %v5496_v2  ;;  %v2182_v63 = vrot.slane %v1729_v32, %v5496_v2  ;;  %v961_v32 = vsub.s32 5, %v5460_v35 }
0x1619   :  { %1233 = vmatprep.mubr.f32.mxu0 %v5226_v1  ;;  %1310 = vmatprep.mubr.f32.mxu1 %v5226_v1  ;;  %2671 = vst.msk [vmem:[#allocation3 + $0x54] sm:$0x3] %vm1650_vm5, %v2641_v58  ;;  %v2643_v60 = vcombine.high %v2641_v58, %v2641_v58  ;;  %v2983_v3 = vrot.slane %v5506_v17, %v5496_v2 }
0x161a   :  { %4894 = vmatprep.subr.bf16.mxu1 %v4893_v0  ;;  %4598 = vmatmul.mubr.msk.f32.gmra.mrb[10].mxu0 %vm52_vm1, %v5508_v18  ;;  %v2990_v4 = vrot.slane %v2590_v46, %v5496_v2  ;;  %v3004_v6 = vrot.slane %v2591_v54, %v5496_v2  ;;  %v3071_v8 = vrot.slane %v2634_v5, %v5496_v2 }
0x161b   :  { %4600 = vmatmul.mubr.msk.f32.gmra.mrb[18].mxu1 %vm52_vm1, %v5508_v18  ;;  %4886 = vmatprep.subr.bf16.mxu0 %v4885_v53  ;;  %2672 = vst.msk [vmem:[#allocation3 + $0x5c] sm:$0x3] %vm1650_vm5, %v2643_v60  ;;  %v3078_v9 = vrot.slane %v2642_v56, %v5496_v2  ;;  %v3085_v10 = vrot.slane %v2641_v58, %v5496_v2 }
0x161c   :  { %4896 = vmatpush1.bf16.msra.mxu1 %v4895_v55  ;;  %2211 = vrot.lane.b32.xlu1 %v2161_v59, %s5227_s10  ;;  %v3092_v11 = vrot.slane %v2643_v60, %v5496_v2  ;;  %3451 = vst.msk [vmem:[#allocation6] sm:$0xff] %vm1593_vm6, %v5230_v26  ;;  %3467 = vst.msk [vmem:[#allocation7] sm:$0xff] %vm1593_vm6, %v5230_v26  ;;  %v966_v50 = vrot.slane %v5467_v38, %v965_v31 }
0x161d   :  { %4888 = vmatpush1.bf16.msra.mxu0 %v4887_v24  ;;  %2213 = vrot.lane.b32.xlu0 %v2168_v61, %s5227_s10  ;;  %v962_v51 = vrot.slane %v5467_v38, %v961_v32  ;;  %v970_v7 = vrot.slane %v5467_v38, %v969_v33 }
0x161e   :  { %1381 = vmatprep.mubr.f32.mxu0 %v5226_v1  ;;  %1458 = vmatprep.mubr.f32.mxu1 %v5226_v1 }
0x161f   :  { %4603 = vmatmul.mubr.msk.f32.vlgmr.msra.gmra.mrb[20].mxu1 %vm52_vm1, %v5448_v57 }
0x1620   :  { %4601 = vmatmul.mubr.msk.f32.vlgmr.msra.gmra.mrb[12].mxu0 %vm52_vm1, %v5448_v57  ;;  %2215 = vrot.lane.b32.xlu1 %v2175_v62, %s5227_s10  ;;  %v2997_v57 = vrot.slane %v2589_v49, %v5496_v2 }
0x1621   :  { %2217 = vrot.lane.b32.xlu0 %v2182_v63, %s5227_s10  ;;  %1387 = vmatprep.mubr.f32.mxu0 %v5226_v1 }
0x1622   :  { %1464 = vmatprep.mubr.f32.mxu1 %v5226_v1 }
0x1623   :  { %4604 = vmatmul.mubr.msk.f32.gmra.mrb[22].mxu1 %vm52_vm1, %v5508_v18 }
0x1624   :  { %4602 = vmatmul.mubr.msk.f32.gmra.mrb[14].mxu0 %vm52_vm1, %v5508_v18  ;;  %3033 = vrot.lane.b32.xlu1 %v2983_v3, %s5227_s10 }
0x1625   :  { %3035 = vrot.lane.b32.xlu0 %v2990_v4, %s5227_s10 }
0x1628   :  { %3037 = vrot.lane.b32.xlu1 %v2997_v57, %s5227_s10 }
0x1629   :  { %3039 = vrot.lane.b32.xlu0 %v3004_v6, %s5227_s10 }
0x162c   :  { %3121 = vrot.lane.b32.xlu1 %v3071_v8, %s5227_s10 }
0x162d   :  { %3123 = vrot.lane.b32.xlu0 %v3078_v9, %s5227_s10 }
0x1630   :  { %3125 = vrot.lane.b32.xlu1 %v3085_v10, %s5227_s10 }
0x1631   :  { %3127 = vrot.lane.b32.xlu0 %v3092_v11, %s5227_s10 }
0x1684   :  { %v2124_v12 = vpop.permute.xlu1 %2123 }
0x1685   :  { %2147 = vst.msk [vmem:[#allocation3 + $0x2] sm:$0x3] %vm1650_vm5, %v2124_v12 }
0x1686   :  { %v2126_v13 = vpop.permute.xlu0 %2125 }
0x1687   :  { %2148 = vst.msk [vmem:[#allocation3 + $0xa] sm:$0x3] %vm1650_vm5, %v2126_v13 }
0x1688   :  { %v2128_v14 = vpop.permute.xlu1 %2127 }
0x1689   :  { %2149 = vst.msk [vmem:[#allocation3 + $0x12] sm:$0x3] %vm1650_vm5, %v2128_v14 }
0x168a   :  { %v2130_v15 = vpop.permute.xlu0 %2129 }
0x168b   :  { %2150 = vst.msk [vmem:[#allocation3 + $0x1a] sm:$0x3] %vm1650_vm5, %v2130_v15 }
0x168e   :  { %v2212_v16 = vpop.permute.xlu1 %2211 }
0x168f   :  { %2235 = vst.msk [vmem:[#allocation3 + $0x42] sm:$0x3] %vm1650_vm5, %v2212_v16  ;;  %v2214_v17 = vpop.permute.xlu0 %2213 }
0x1690   :  { %2236 = vst.msk [vmem:[#allocation3 + $0x4a] sm:$0x3] %vm1650_vm5, %v2214_v17 }
0x1692   :  { %v2216_v18 = vpop.permute.xlu1 %2215 }
0x1693   :  { %2237 = vst.msk [vmem:[#allocation3 + $0x52] sm:$0x3] %vm1650_vm5, %v2216_v18  ;;  %v2218_v1 = vpop.permute.xlu0 %2217 }
0x1694   :  { %2238 = vst.msk [vmem:[#allocation3 + $0x5a] sm:$0x3] %vm1650_vm5, %v2218_v1 }
0x1696   :  { %v3034_v20 = vpop.permute.xlu1 %3033 }
0x1697   :  { %3057 = vst.msk [vmem:[#allocation3 + $0x6] sm:$0x3] %vm1650_vm5, %v3034_v20  ;;  %v3036_v21 = vpop.permute.xlu0 %3035 }
0x1698   :  { %3058 = vst.msk [vmem:[#allocation3 + $0xe] sm:$0x3] %vm1650_vm5, %v3036_v21 }
0x169a   :  { %v3038_v22 = vpop.permute.xlu1 %3037 }
0x169b   :  { %3059 = vst.msk [vmem:[#allocation3 + $0x16] sm:$0x3] %vm1650_vm5, %v3038_v22  ;;  %v3040_v23 = vpop.permute.xlu0 %3039 }
0x169c   :  { %3060 = vst.msk [vmem:[#allocation3 + $0x1e] sm:$0x3] %vm1650_vm5, %v3040_v23 }
0x169e   :  { %v3122_v25 = vpop.permute.xlu1 %3121 }
0x169f   :  { %3145 = vst.msk [vmem:[#allocation3 + $0x46] sm:$0x3] %vm1650_vm5, %v3122_v25  ;;  %v3124_v27 = vpop.permute.xlu0 %3123 }
0x16a0   :  { %3146 = vst.msk [vmem:[#allocation3 + $0x4e] sm:$0x3] %vm1650_vm5, %v3124_v27 }
0x16a2   :  { %v3126_v28 = vpop.permute.xlu1 %3125 }
0x16a3   :  { %3147 = vst.msk [vmem:[#allocation3 + $0x56] sm:$0x3] %vm1650_vm5, %v3126_v28  ;;  %v3128_v29 = vpop.permute.xlu0 %3127 }
0x16a4   :  { %3148 = vst.msk [vmem:[#allocation3 + $0x5e] sm:$0x3] %vm1650_vm5, %v3128_v29 }
0x16e5   :  { %v1081_v34 = vpop.f32.mrb[6].mxu0 }
0x16e6   :  { %v1082_v44 = vadd.f32 %v1081_v34, %v5474_v19  ;;  %v1158_v45 = vpop.f32.mrb[14].mxu1  ;;  %v1083_v46 = vpop.f32.mrb[7].mxu0 }
0x16e7   :  { %v1159_v48 = vadd.f32 %v1158_v45, %v5479_v41  ;;  %v1084_v49 = vadd.f32 %v1083_v46, %v5484_v42  ;;  %v1160_v5 = vpop.f32.mrb[15].mxu1 }
0x16e8   :  { %v4615_v0 = vmul.f32 -1.442695, %v1082_v44  ;;  %v1161_v52 = vadd.f32 %v1160_v5, %v5489_v43  ;;  %v936_v43 = vld [vmem:[%s7395_s5 + $0x8] sm:$0xf]  ;;  %s6523_s5 = smov 0  }
0x16e9   :  { %v4617_v53 = vmul.f32 -1.442695, %v1159_v48  ;;  %v4616_v19 = vmul.f32 -1.442695, %v1084_v49  ;;  %v1229_v54 = vpop.f32.mrb[8].mxu0  ;;  %v5765_v10 = vrot.slane %v936_v43, %v949_v37  ;;  %v5769_v14 = vrot.slane %v936_v43, %v953_v40 }
0x16ea   :  { %5031 = vpow2.f32 %v4615_v0  ;;  %v4618_v55 = vmul.f32 -1.442695, %v1161_v52  ;;  %v1230_v56 = vadd.f32 %v1229_v54, %v958_v47  ;;  %v1306_v58 = vpop.f32.mrb[16].mxu1  ;;  %v1231_v41 = vpop.f32.mrb[9].mxu0  ;;  %v974_v32 = vrot.slane %v936_v43, %v941_v36 }
0x16eb   :  { %5033 = vpow2.f32 %v4617_v53  ;;  %v1307_v42 = vadd.f32 %v1306_v58, %v966_v50  ;;  %v1232_v24 = vadd.f32 %v1231_v41, %v962_v51  ;;  %v1308_v59 = vpop.f32.mrb[17].mxu1  ;;  %v978_v46 = vrot.slane %v936_v43, %v945_v39 }
0x16ec   :  { %5035 = vpow2.f32 %v4616_v19  ;;  %v4609_v60 = vmul.f32 -1.442695, %v1230_v56  ;;  %v1309_v61 = vadd.f32 %v1308_v59, %v970_v7 }
0x16ed   :  { %5037 = vpow2.f32 %v4618_v55  ;;  %v4611_v38 = vmul.f32 -1.442695, %v1307_v42  ;;  %v4610_v62 = vmul.f32 -1.442695, %v1232_v24  ;;  %v1235_v63 = vpop.f32.mrb[10].mxu0 }
0x16ee   :  { %5039 = vpow2.f32 %v4609_v60  ;;  %v1236_v3 = vadd.f32 %v1235_v63, %v958_v47  ;;  %v1312_v4 = vpop.f32.mrb[18].mxu1  ;;  %v1237_v57 = vpop.f32.mrb[11].mxu0  ;;  %v4612_v11 = vmul.f32 -1.442695, %v1309_v61 }
0x16ef   :  { %5041 = vpow2.f32 %v4611_v38  ;;  %v1313_v6 = vadd.f32 %v1312_v4, %v966_v50  ;;  %v1238_v8 = vadd.f32 %v1237_v57, %v962_v51  ;;  %v1314_v9 = vpop.f32.mrb[19].mxu1 }
0x16f0   :  { %5043 = vpow2.f32 %v4610_v62  ;;  %v4619_v12 = vmul.f32 -1.442695, %v1236_v3  ;;  %v1315_v17 = vadd.f32 %v1314_v9, %v970_v7 }
0x16f1   :  { %v4621_v13 = vmul.f32 -1.442695, %v1313_v6  ;;  %v4620_v15 = vmul.f32 -1.442695, %v1238_v8 }
0x16f2   :  { %5045 = vpow2.f32 %v4619_v12  ;;  %v1460_v16 = vpop.f32.mrb[20].mxu1  ;;  %v4622_v31 = vmul.f32 -1.442695, %v1315_v17 }
0x16f3   :  { %v1383_v18 = vpop.f32.mrb[12].mxu0  ;;  %v5772_v1 = vadd.f32 %v1460_v16, %v5765_v10  ;;  %v1462_v20 = vpop.f32.mrb[21].mxu1  ;;  %5047 = vpow2.f32 %v4612_v11 }
0x16f4   :  { %v5032_v21 = vpop.eup %5031  ;;  %v1385_v37 = vpop.f32.mrb[13].mxu0  ;;  %5049 = vpow2.f32 %v4621_v13  ;;  %v5775_v25 = vadd.f32 %v1462_v20, %v5769_v14  ;;  %v1384_v52 = vadd.f32 %v1383_v18, %v974_v32 }
0x16f5   :  { %v5034_v22 = vpop.eup %5033  ;;  %v1541_v23 = vadd.f32 1.0, %v5032_v21  ;;  %v1591_v40 = vmul.f32 %v5772_v1, %v5772_v1  ;;  %5051 = vpow2.f32 %v4620_v15  ;;  %v1386_v39 = vadd.f32 %v1385_v37, %v978_v46 }
0x16f6   :  { %v5036_v26 = vpop.eup %5035  ;;  %v1543_v27 = vadd.f32 1.0, %v5034_v22  ;;  %v5779_v28 = vpop.f32.mrb[22].mxu1  ;;  %v2507_v36 = vmul.f32 %v5775_v25, %v5775_v25  ;;  %v4613_v58 = vmul.f32 -1.442695, %v1384_v52 }
0x16f7   :  { %v5038_v29 = vpop.eup %5037  ;;  %5053 = vrcp.f32 %v1541_v23  ;;  %v1542_v30 = vadd.f32 1.0, %v5036_v26  ;;  %v1389_v33 = vpop.f32.mrb[14].mxu0  ;;  %1925 = vrot.lane.b32.xlu0 %v1591_v40, %s5227_s10  ;;  %v1594_v5 = vsel %vm1593_vm6, %v1591_v40, 0.0  ;;  %v4614_v42 = vmul.f32 -1.442695, %v1386_v39 }
0x16f8   :  { %v5783_v34 = vpop.f32.mrb[23].mxu1  ;;  %v5040_v44 = vpop.eup %5039  ;;  %5055 = vrcp.f32 %v1543_v27  ;;  %v1544_v45 = vadd.f32 1.0, %v5038_v29  ;;  %1595 = vadd.xlane.f32.xlu1 %v1594_v5  ;;  %v1390_v7 = vadd.f32 %v1389_v33, %v974_v32  ;;  %v2509_v19 = vsel %vm1593_vm6, %v2507_v36, 0.0 }
0x16f9   :  { %v1391_v47 = vpop.f32.mrb[15].mxu0  ;;  %v5042_v48 = vpop.eup %5041  ;;  %5057 = vrcp.f32 %v1542_v30  ;;  %v1535_v49 = vadd.f32 1.0, %v5040_v44  ;;  %v5859_v26 = vadd.f32 %v5779_v28, %v5765_v10 }
0x16fa   :  { %v5044_v50 = vpop.eup %5043  ;;  %5059 = vrcp.f32 %v1544_v45  ;;  %v1537_v51 = vadd.f32 1.0, %v5042_v48  ;;  %v1392_v53 = vadd.f32 %v1391_v47, %v978_v46  ;;  %v4623_v59 = vmul.f32 -1.442695, %v1390_v7 }
0x16fb   :  { %v1536_v0 = vadd.f32 1.0, %v5044_v50  ;;  %5061 = vpow2.f32 %v4622_v31  ;;  %2835 = vrot.lane.b32.xlu0 %v2507_v36, %s5227_s10  ;;  %v5885_v45 = vadd.f32 %v5783_v34, %v5769_v14 }
0x16fc   :  { %v5046_v35 = vpop.eup %5045  ;;  %5063 = vrcp.f32 %v1535_v49  ;;  %2510 = vadd.xlane.f32.xlu1 %v2509_v19  ;;  %v4624_v60 = vmul.f32 -1.442695, %v1392_v53  ;;  %v1592_v49 = vmul.f32 %v5859_v26, %v5859_v26 }
0x16fd   :  { %5065 = vrcp.f32 %v1537_v51  ;;  %v5048_v54 = vpop.eup %5047  ;;  %v1545_v55 = vadd.f32 1.0, %v5046_v35  ;;  %7432 = vst [vmem:[#allocation18_spill] sm:$0xff] %v5885_v45  ;;  %v5935_v19 = vmul.f32 %v5885_v45, %v5885_v45 }
0x16fe   :  { %5067 = vrcp.f32 %v1536_v0  ;;  %v5050_v56 = vpop.eup %5049  ;;  %v1538_v29 = vadd.f32 1.0, %v5048_v54 }
0x16ff   :  { %v5052_v41 = vpop.eup %5051  ;;  %5069 = vrcp.f32 %v1545_v55  ;;  %v1547_v43 = vadd.f32 1.0, %v5050_v56 }
0x1700   :  { %v1546_v3 = vadd.f32 1.0, %v5052_v41  ;;  %5071 = vpow2.f32 %v4613_v58 }
0x1701   :  { %v5054_v24 = vpop.eup %5053  ;;  %5073 = vpow2.f32 %v4614_v42 }
0x1702   :  { %v5056_v61 = vpop.eup %5055  ;;  %v5794_v38 = vrot.slane %v5054_v24, %v5496_v2  ;;  %v1678_v62 = vcombine.high %v5054_v24, %v5054_v24  ;;  %5075 = vpow2.f32 %v4623_v59 }
0x1703   :  { %v5058_v63 = vpop.eup %5057  ;;  %v5797_v4 = vrot.slane %v5056_v61, %v5496_v2  ;;  %v1730_v57 = vcombine.high %v5056_v61, %v5056_v61  ;;  %5077 = vrcp.f32 %v1547_v43 }
0x1704   :  { %v5060_v6 = vpop.eup %5059  ;;  %v5801_v8 = vcombine.high %v5794_v38, %v5794_v38  ;;  %1707 = vst.msk [vmem:[#allocation3 + $0x20] sm:$0x3] %vm1650_vm5, %v5794_v38  ;;  %v5806_v9 = vrot.slane %v5058_v63, %v5496_v2  ;;  %v5809_v11 = vrot.slane %v1678_v62, %v5496_v2  ;;  %5079 = vpow2.f32 %v4624_v60 }
0x1705   :  { %v5062_v12 = vpop.eup %5061  ;;  %v5813_v13 = vcombine.high %v5797_v4, %v5797_v4  ;;  %1760 = vst.msk [vmem:[#allocation3 + $0x60] sm:$0x3] %vm1650_vm5, %v5797_v4  ;;  %v5818_v15 = vrot.slane %v5060_v6, %v5496_v2  ;;  %v5821_v16 = vrot.slane %v1730_v57, %v5496_v2  ;;  %5081 = vrcp.f32 %v1546_v3 }
0x1706   :  { %v5064_v17 = vpop.eup %5063  ;;  %1708 = vst.msk [vmem:[#allocation3 + $0x28] sm:$0x3] %vm1650_vm5, %v5801_v8  ;;  %v5827_v18 = vcombine.high %v5806_v9, %v5806_v9  ;;  %2621 = vst.msk [vmem:[#allocation3 + $0x24] sm:$0x3] %vm1650_vm5, %v5806_v9  ;;  %v5833_v20 = vcombine.high %v5809_v11, %v5809_v11  ;;  %v2592_v40 = vcombine.high %v5058_v63, %v5058_v63  ;;  %v1548_v32 = vadd.f32 1.0, %v5062_v12 }
0x1707   :  { %1709 = vst.msk [vmem:[#allocation3 + $0x30] sm:$0x3] %vm1650_vm5, %v5809_v11  ;;  %v5837_v21 = vpop.eup %5065  ;;  %1761 = vst.msk [vmem:[#allocation3 + $0x68] sm:$0x3] %vm1650_vm5, %v5813_v13  ;;  %v5843_v37 = vcombine.high %v5818_v15, %v5818_v15  ;;  %v5849_v22 = vcombine.high %v5821_v16, %v5821_v16  ;;  %v2644_v27 = vcombine.high %v5060_v6, %v5060_v6  ;;  %5083 = vrcp.f32 %v1538_v29 }
0x1708   :  { %2673 = vst.msk [vmem:[#allocation3 + $0x64] sm:$0x3] %vm1650_vm5, %v5818_v15  ;;  %1762 = vst.msk [vmem:[#allocation3 + $0x70] sm:$0x3] %vm1650_vm5, %v5821_v16  ;;  %v5068_v23 = vpop.eup %5067  ;;  %v5866_v30 = vrot.slane %v2592_v40, %v5496_v2  ;;  %v5869_v31 = vrot.slane %v5064_v17, %v5496_v2  ;;  %v5876_v10 = vrot.slane %v5837_v21, %v5496_v2  ;;  %5085 = vrcp.f32 %v1548_v32 }
0x1709   :  { %2622 = vst.msk [vmem:[#allocation3 + $0x2c] sm:$0x3] %vm1650_vm5, %v5827_v18  ;;  %1710 = vst.msk [vmem:[#allocation3 + $0x38] sm:$0x3] %vm1650_vm5, %v5833_v20  ;;  %v5872_v33 = vrot.slane %v2644_v27, %v5496_v2  ;;  %v5879_v28 = vrot.slane %v5068_v23, %v5496_v2  ;;  %v5881_v44 = vpop.eup %5069  ;;  %v1766_v51 = vcombine.high %v5064_v17, %v5064_v17  ;;  %v1597_v27 = vsel %vm1593_vm6, %v1592_v49, 0.0 }
0x170a   :  { %2674 = vst.msk [vmem:[#allocation3 + $0x6c] sm:$0x3] %vm1650_vm5, %v5843_v37  ;;  %1763 = vst.msk [vmem:[#allocation3 + $0x78] sm:$0x3] %vm1650_vm5, %v5849_v22  ;;  %v5889_v46 = vcombine.high %v5866_v30, %v5866_v30  ;;  %v5895_v47 = vcombine.high %v5869_v31, %v5869_v31  ;;  %v5072_v48 = vpop.eup %5071  ;;  %v5909_v34 = vcombine.high %v5876_v10, %v5876_v10 }
0x170b   :  { %2623 = vst.msk [vmem:[#allocation3 + $0x34] sm:$0x3] %vm1650_vm5, %v5866_v30  ;;  %1809 = vst.msk [vmem:[#allocation3 + $0x80] sm:$0x3] %vm1650_vm5, %v5869_v31  ;;  %v5903_v14 = vcombine.high %v5872_v33, %v5872_v33  ;;  %v5915_v5 = vcombine.high %v5879_v28, %v5879_v28  ;;  %v5074_v36 = vpop.eup %5073  ;;  %v1539_v50 = vadd.f32 1.0, %v5072_v48  ;;  %v5931_v7 = vrot.slane %v1766_v51, %v5496_v2 }
0x170c   :  { %2675 = vst.msk [vmem:[#allocation3 + $0x74] sm:$0x3] %vm1650_vm5, %v5872_v33  ;;  %1862 = vst.msk [vmem:[#allocation3 + $0xc0] sm:$0x3] %vm1650_vm5, %v5876_v10  ;;  %v5076_v0 = vpop.eup %5075  ;;  %v1540_v52 = vadd.f32 1.0, %v5074_v36  ;;  %v1819_v54 = vcombine.high %v5837_v21, %v5837_v21  ;;  %v2679_v58 = vcombine.high %v5068_v23, %v5068_v23  ;;  %v5952_v42 = vrot.slane %v5881_v44, %v5496_v2 }
0x170d   :  { %2721 = vst.msk [vmem:[#allocation3 + $0x84] sm:$0x3] %vm1650_vm5, %v5879_v28  ;;  %2624 = vst.msk [vmem:[#allocation3 + $0x3c] sm:$0x3] %vm1650_vm5, %v5889_v46  ;;  %1927 = vrot.lane.b32.xlu1 %v1592_v49, %s5227_s10  ;;  %v5078_v35 = vpop.eup %5077  ;;  %5087 = vrcp.f32 %v1539_v50  ;;  %v1549_v39 = vadd.f32 1.0, %v5076_v0  ;;  %v5941_v56 = vcombine.high %v5931_v7, %v5931_v7  ;;  %v1783_v6 = vcombine.high %v5881_v44, %v5881_v44 }
0x170e   :  { %1810 = vst.msk [vmem:[#allocation3 + $0x88] sm:$0x3] %vm1650_vm5, %v5895_v47  ;;  %2676 = vst.msk [vmem:[#allocation3 + $0x7c] sm:$0x3] %vm1650_vm5, %v5903_v14  ;;  %v5080_v53 = vpop.eup %5079  ;;  %5089 = vrcp.f32 %v1540_v52  ;;  %v5948_v41 = vrot.slane %v1819_v54, %v5496_v2  ;;  %v5957_v59 = vrot.slane %v2679_v58, %v5496_v2  ;;  %v5960_v60 = vrot.slane %v5078_v35, %v5496_v2 }
0x170f   :  { %1863 = vst.msk [vmem:[#allocation3 + $0xc8] sm:$0x3] %vm1650_vm5, %v5909_v34  ;;  %2722 = vst.msk [vmem:[#allocation3 + $0x8c] sm:$0x3] %vm1650_vm5, %v5915_v5  ;;  %v5082_v55 = vpop.eup %5081  ;;  %5091 = vrcp.f32 %v1549_v39  ;;  %v1550_v24 = vadd.f32 1.0, %v5080_v53  ;;  %v5970_v43 = vcombine.high %v5952_v42, %v5952_v42  ;;  %v1836_v17 = vcombine.high %v5078_v35, %v5078_v35 }
0x1710   :  { %1811 = vst.msk [vmem:[#allocation3 + $0x90] sm:$0x3] %vm1650_vm5, %v5931_v7  ;;  %1812 = vst.msk [vmem:[#allocation3 + $0x98] sm:$0x3] %vm1650_vm5, %v5941_v56  ;;  %v5964_v61 = vcombine.high %v5948_v41, %v5948_v41  ;;  %v5975_v62 = vrot.slane %v5082_v55, %v5496_v2  ;;  %v2696_v63 = vcombine.high %v5082_v55, %v5082_v55 }
0x1711   :  { %2837 = vrot.lane.b32.xlu1 %v5935_v19, %s5227_s10  ;;  %1864 = vst.msk [vmem:[#allocation3 + $0xd0] sm:$0x3] %vm1650_vm5, %v5948_v41  ;;  %1813 = vst.msk [vmem:[#allocation3 + $0xa0] sm:$0x3] %vm1650_vm5, %v5952_v42  ;;  %v5979_v3 = vcombine.high %v5957_v59, %v5957_v59  ;;  %v5985_v57 = vcombine.high %v5960_v60, %v5960_v60  ;;  %v5084_v21 = vpop.eup %5083  ;;  %5093 = vrcp.f32 %v1550_v24 }
0x1712   :  { %2723 = vst.msk [vmem:[#allocation3 + $0x94] sm:$0x3] %vm1650_vm5, %v5957_v59  ;;  %1866 = vst.msk [vmem:[#allocation3 + $0xe0] sm:$0x3] %vm1650_vm5, %v5960_v60  ;;  %v5997_v12 = vcombine.high %v5975_v62, %v5975_v62  ;;  %v6006_v23 = vrot.slane %v1783_v6, %v5496_v2  ;;  %v5086_v40 = vpop.eup %5085  ;;  %v6012_v29 = vrot.slane %v1836_v17, %v5496_v2 }
0x1713   :  { %1865 = vst.msk [vmem:[#allocation3 + $0xd8] sm:$0x3] %vm1650_vm5, %v5964_v61  ;;  %1814 = vst.msk [vmem:[#allocation3 + $0xa8] sm:$0x3] %vm1650_vm5, %v5970_v43  ;;  %v6021_v48 = vrot.slane %v2696_v63, %v5496_v2  ;;  %v2731_v52 = vcombine.high %v5084_v21, %v5084_v21  ;;  %v6041_v39 = vrot.slane %v5084_v21, %v5496_v2 }
0x1714   :  { %2725 = vst.msk [vmem:[#allocation3 + $0xa4] sm:$0x3] %vm1650_vm5, %v5975_v62  ;;  %2724 = vst.msk [vmem:[#allocation3 + $0x9c] sm:$0x3] %vm1650_vm5, %v5979_v3  ;;  %v6016_v44 = vcombine.high %v6006_v23, %v6006_v23  ;;  %v6025_v49 = vcombine.high %v6012_v29, %v6012_v29  ;;  %v2748_v58 = vcombine.high %v5086_v40, %v5086_v40 }
0x1715   :  { %1867 = vst.msk [vmem:[#allocation3 + $0xe8] sm:$0x3] %vm1650_vm5, %v5985_v57  ;;  %2726 = vst.msk [vmem:[#allocation3 + $0xac] sm:$0x3] %vm1650_vm5, %v5997_v12  ;;  %v6036_v35 = vcombine.high %v6021_v48, %v6021_v48  ;;  %v6061_v63 = vcombine.high %v6041_v39, %v6041_v39 }
0x1716   :  { %1815 = vst.msk [vmem:[#allocation3 + $0xb0] sm:$0x3] %vm1650_vm5, %v6006_v23  ;;  %7433 = vst [vmem:[#allocation19_spill] sm:$0xff] %v6021_v48 }
0x1717   :  { %v5088_v32 = vpop.eup %5087  ;;  %1868 = vst.msk [vmem:[#allocation3 + $0xf0] sm:$0x3] %vm1650_vm5, %v6012_v29  ;;  %1816 = vst.msk [vmem:[#allocation3 + $0xb8] sm:$0x3] %vm1650_vm5, %v6016_v44 }
0x1718   :  { %v5090_v36 = vpop.eup %5089  ;;  %v6030_v50 = vrot.slane %v5088_v32, %v5496_v2  ;;  %v1872_v51 = vcombine.high %v5088_v32, %v5088_v32  ;;  %2727 = vst.msk [vmem:[#allocation3 + $0xb4] sm:$0x3] %vm1650_vm5, %v6021_v48  ;;  %7434 = vst [vmem:[#allocation20_spill] sm:$0xff] %v6041_v39  ;;  %v6085_v32 = vrot.slane %v2731_v52, %v5496_v2 }
0x1719   :  { %v5092_v0 = vpop.eup %5091  ;;  %1869 = vst.msk [vmem:[#allocation3 + $0xf8] sm:$0x3] %vm1650_vm5, %v6025_v49  ;;  %2728 = vst.msk [vmem:[#allocation3 + $0xbc] sm:$0x3] %vm1650_vm5, %v6036_v35  ;;  %v2783_v6 = vcombine.high %v5090_v36, %v5090_v36  ;;  %v6110_v48 = vrot.slane %v5090_v36, %v5496_v2 }
0x171a   :  { %1598 = vadd.xlane.f32.xlu0 %v1597_v27  ;;  %v1889_v53 = vcombine.high %v5092_v0, %v5092_v0  ;;  %v6047_v54 = vcombine.high %v6030_v50, %v6030_v50  ;;  %1915 = vst.msk [vmem:[#allocation3 + $0x100] sm:$0x3] %vm1650_vm5, %v6030_v50  ;;  %v6052_v55 = vrot.slane %v1872_v51, %v5496_v2  ;;  %2773 = vst.msk [vmem:[#allocation3 + $0xc4] sm:$0x3] %vm1650_vm5, %v6041_v39 }
0x171b   :  { %v6055_v24 = vrot.slane %v5092_v0, %v5496_v2  ;;  %2774 = vst.msk [vmem:[#allocation3 + $0xcc] sm:$0x3] %vm1650_vm5, %v6061_v63  ;;  %7435 = vst [vmem:[#allocation21_spill] sm:$0xff] %v6085_v32  ;;  %v6096_v0 = vrot.slane %v5086_v40, %v5496_v2  ;;  %v6102_v52 = vcombine.high %v6085_v32, %v6085_v32 }
0x171c   :  { %1916 = vst.msk [vmem:[#allocation3 + $0x108] sm:$0x3] %vm1650_vm5, %v6047_v54  ;;  %v6069_v17 = vcombine.high %v6052_v55, %v6052_v55  ;;  %1917 = vst.msk [vmem:[#allocation3 + $0x110] sm:$0x3] %vm1650_vm5, %v6052_v55  ;;  %v6074_v21 = vrot.slane %v1889_v53, %v5496_v2  ;;  %v5094_v53 = vpop.eup %5093  ;;  %v6107_v39 = vrot.slane %v2748_v58, %v5496_v2 }
0x171d   :  { %v6078_v27 = vcombine.high %v6055_v24, %v6055_v24  ;;  %1919 = vst.msk [vmem:[#allocation3 + $0x120] sm:$0x3] %vm1650_vm5, %v6055_v24  ;;  %7436 = vst [vmem:[#allocation22_spill] sm:$0xff] %v6096_v0  ;;  %v6116_v40 = vcombine.high %v6096_v0, %v6096_v0  ;;  %v6121_v45 = vrot.slane %v2783_v6, %v5496_v2 }
0x171e   :  { %1918 = vst.msk [vmem:[#allocation3 + $0x118] sm:$0x3] %vm1650_vm5, %v6069_v17  ;;  %v6091_v51 = vcombine.high %v6074_v21, %v6074_v21  ;;  %1921 = vst.msk [vmem:[#allocation3 + $0x130] sm:$0x3] %vm1650_vm5, %v6074_v21  ;;  %v6127_v36 = vcombine.high %v6107_v39, %v6107_v39  ;;  %v6133_v58 = vcombine.high %v6110_v48, %v6110_v48 }
0x171f   :  { %1920 = vst.msk [vmem:[#allocation3 + $0x128] sm:$0x3] %vm1650_vm5, %v6078_v27  ;;  %2775 = vst.msk [vmem:[#allocation3 + $0xd4] sm:$0x3] %vm1650_vm5, %v6085_v32  ;;  %v6141_v6 = vcombine.high %v6121_v45, %v6121_v45 }
0x1720   :  { %7437 = vst [vmem:[#allocation23_spill] sm:$0xff] %v6107_v39  ;;  %7438 = vst [vmem:[#allocation24_spill] sm:$0xff] %v6110_v48 }
0x1721   :  { %1922 = vst.msk [vmem:[#allocation3 + $0x138] sm:$0x3] %vm1650_vm5, %v6091_v51  ;;  %2777 = vst.msk [vmem:[#allocation3 + $0xe4] sm:$0x3] %vm1650_vm5, %v6096_v0  ;;  %v6146_v0 = vrot.slane %v5094_v53, %v5496_v2 }
0x1722   :  { %7439 = vst [vmem:[#allocation25_spill] sm:$0xff] %v6121_v45  ;;  %2776 = vst.msk [vmem:[#allocation3 + $0xdc] sm:$0x3] %vm1650_vm5, %v6102_v52 }
0x1723   :  { %2779 = vst.msk [vmem:[#allocation3 + $0xf4] sm:$0x3] %vm1650_vm5, %v6107_v39  ;;  %2825 = vst.msk [vmem:[#allocation3 + $0x104] sm:$0x3] %vm1650_vm5, %v6110_v48  ;;  %v6156_v48 = vcombine.high %v6146_v0, %v6146_v0 }
0x1724   :  { %2778 = vst.msk [vmem:[#allocation3 + $0xec] sm:$0x3] %vm1650_vm5, %v6116_v40  ;;  %7440 = vst [vmem:[#allocation26_spill] sm:$0xff] %v6141_v6 }
0x1725   :  { %2827 = vst.msk [vmem:[#allocation3 + $0x114] sm:$0x3] %vm1650_vm5, %v6121_v45  ;;  %2780 = vst.msk [vmem:[#allocation3 + $0xfc] sm:$0x3] %vm1650_vm5, %v6127_v36  ;;  %v2800_v45 = vcombine.high %v5094_v53, %v5094_v53  ;;  %v2196_v53 = vrot.slane %v5813_v13, %v5496_v2  ;;  %v2210_v13 = vrot.slane %v5849_v22, %v5496_v2 }
0x1726   :  { %2826 = vst.msk [vmem:[#allocation3 + $0x10c] sm:$0x3] %vm1650_vm5, %v6133_v58  ;;  %2828 = vst.msk [vmem:[#allocation3 + $0x11c] sm:$0x3] %vm1650_vm5, %v6141_v6  ;;  %v2108_v6 = vrot.slane %v5801_v8, %v5496_v2  ;;  %v3106_v8 = vrot.slane %v5843_v37, %v5496_v2  ;;  %v3120_v37 = vrot.slane %v5903_v14, %v5496_v2 }
0x1727   :  { %2829 = vst.msk [vmem:[#allocation3 + $0x124] sm:$0x3] %vm1650_vm5, %v6146_v0  ;;  %2830 = vst.msk [vmem:[#allocation3 + $0x12c] sm:$0x3] %vm1650_vm5, %v6156_v48  ;;  %v6163_v39 = vrot.slane %v2800_v45, %v5496_v2  ;;  %v2512_v45 = vsel %vm1593_vm6, %v5935_v19, 0.0  ;;  %v3032_v19 = vrot.slane %v5889_v46, %v5496_v2  ;;  %v2256_v22 = vrot.slane %v5895_v47, %v5496_v2 }
0x1728   :  { %v2344_v46 = vrot.slane %v5909_v34, %v5496_v2  ;;  %v3166_v47 = vrot.slane %v5915_v5, %v5496_v2  ;;  %v2270_v14 = vrot.slane %v5941_v56, %v5496_v2  ;;  %v2358_v34 = vrot.slane %v5964_v61, %v5496_v2 }
0x1729   :  { %7441 = vst [vmem:[#allocation27_spill] sm:$0xff] %v6163_v39  ;;  %2831 = vst.msk [vmem:[#allocation3 + $0x134] sm:$0x3] %vm1650_vm5, %v6163_v39  ;;  %v6169_v32 = vcombine.high %v6163_v39, %v6163_v39  ;;  %v3018_v39 = vrot.slane %v5827_v18, %v5496_v2  ;;  %v2101_v18 = vrot.slane %v5794_v38, %v5496_v2 }
0x172a   :  { %v3011_v38 = vrot.slane %v5806_v9, %v5496_v2  ;;  %v2115_v9 = vrot.slane %v5809_v11, %v5496_v2  ;;  %v3025_v11 = vrot.slane %v5866_v30, %v5496_v2  ;;  %v3180_v5 = vrot.slane %v5979_v3, %v5496_v2 }
0x172b   :  { %2832 = vst.msk [vmem:[#allocation3 + $0x13c] sm:$0x3] %vm1650_vm5, %v6169_v32  ;;  %v2249_v30 = vrot.slane %v5869_v31, %v5496_v2  ;;  %v2284_v56 = vrot.slane %v5970_v43, %v5496_v2  ;;  %v2372_v61 = vrot.slane %v5985_v57, %v5496_v2  ;;  %v3159_v31 = vrot.slane %v5879_v28, %v5496_v2 }
0x172c   :  { %v3194_v43 = vrot.slane %v5997_v12, %v5496_v2  ;;  %v2298_v3 = vrot.slane %v6016_v44, %v5496_v2  ;;  %v2351_v28 = vrot.slane %v5948_v41, %v5496_v2  ;;  %v2386_v57 = vrot.slane %v6025_v49, %v5496_v2 }
0x172d   :  { %v2432_v12 = vrot.slane %v6047_v54, %v5496_v2  ;;  %v2277_v41 = vrot.slane %v5952_v42, %v5496_v2  ;;  %v2446_v44 = vrot.slane %v6069_v17, %v5496_v2  ;;  %v2460_v49 = vrot.slane %v6078_v27, %v5496_v2 }
0x172e   :  { %v3187_v42 = vrot.slane %v5975_v62, %v5496_v2  ;;  %v2379_v62 = vrot.slane %v6012_v29, %v5496_v2 }
0x1730   :  { %2133 = vrot.lane.b32.xlu0 %v2108_v6, %s5227_s10  ;;  %v2122_v6 = vrot.slane %v5833_v20, %v5496_v2  ;;  %v2189_v20 = vrot.slane %v5797_v4, %v5496_v2  ;;  %v3099_v4 = vrot.slane %v5818_v15, %v5496_v2  ;;  %v2203_v15 = vrot.slane %v5821_v16, %v5496_v2 }
0x1731   :  { %v3113_v16 = vrot.slane %v5872_v33, %v5496_v2  ;;  %v2337_v33 = vrot.slane %v5876_v10, %v5496_v2  ;;  %v2263_v10 = vrot.slane %v5931_v7, %v5496_v2  ;;  %v3173_v7 = vrot.slane %v5957_v59, %v5496_v2 }
0x1732   :  { %v2365_v59 = vrot.slane %v5960_v60, %v5496_v2  ;;  %v2291_v60 = vrot.slane %v6006_v23, %v5496_v2  ;;  %v2439_v23 = vrot.slane %v6052_v55, %v5496_v2 }
0x1734   :  { %2221 = vrot.lane.b32.xlu0 %v2196_v53, %s5227_s10 }
0x1735   :  { %2513 = vadd.xlane.f32.xlu1 %v2512_v45 }
0x1738   :  { %3043 = vrot.lane.b32.xlu0 %v3018_v39, %s5227_s10  ;;  %v2474_v39 = vrot.slane %v6091_v51, %v5496_v2  ;;  %v2425_v51 = vrot.slane %v6030_v50, %v5496_v2 }
0x173c   :  { %3131 = vrot.lane.b32.xlu0 %v3106_v8, %s5227_s10 }
0x1740   :  { %2137 = vrot.lane.b32.xlu0 %v2122_v6, %s5227_s10 }
0x1744   :  { %2225 = vrot.lane.b32.xlu0 %v2210_v13, %s5227_s10 }
0x1746   :  { %2131 = vrot.lane.b32.xlu1 %v2101_v18, %s5227_s10 }
0x1748   :  { %3047 = vrot.lane.b32.xlu0 %v3032_v19, %s5227_s10 }
0x174a   :  { %2219 = vrot.lane.b32.xlu1 %v2189_v20, %s5227_s10  ;;  %v2453_v20 = vrot.slane %v6055_v24, %v5496_v2  ;;  %v2467_v24 = vrot.slane %v6074_v21, %v5496_v2 }
0x174c   :  { %3135 = vrot.lane.b32.xlu0 %v3120_v37, %s5227_s10 }
0x174e   :  { %3041 = vrot.lane.b32.xlu1 %v3011_v38, %s5227_s10 }
0x1750   :  { %2301 = vrot.lane.b32.xlu0 %v2256_v22, %s5227_s10 }
0x1752   :  { %3129 = vrot.lane.b32.xlu1 %v3099_v4, %s5227_s10 }
0x1754   :  { %2389 = vrot.lane.b32.xlu0 %v2344_v46, %s5227_s10 }
0x1756   :  { %2135 = vrot.lane.b32.xlu1 %v2115_v9, %s5227_s10 }
0x1758   :  { %3211 = vrot.lane.b32.xlu0 %v3166_v47, %s5227_s10 }
0x175a   :  { %2223 = vrot.lane.b32.xlu1 %v2203_v15, %s5227_s10 }
0x175c   :  { %2305 = vrot.lane.b32.xlu0 %v2270_v14, %s5227_s10 }
0x175e   :  { %3045 = vrot.lane.b32.xlu1 %v3025_v11, %s5227_s10 }
0x1760   :  { %2393 = vrot.lane.b32.xlu0 %v2358_v34, %s5227_s10 }
0x1762   :  { %3133 = vrot.lane.b32.xlu1 %v3113_v16, %s5227_s10 }
0x1764   :  { %3215 = vrot.lane.b32.xlu0 %v3180_v5, %s5227_s10 }
0x1766   :  { %2299 = vrot.lane.b32.xlu1 %v2249_v30, %s5227_s10 }
0x1768   :  { %2309 = vrot.lane.b32.xlu0 %v2284_v56, %s5227_s10 }
0x1769   :  { %v1926_v22 = vpop.permute.xlu0 %1925 }
0x176a   :  { %2387 = vrot.lane.b32.xlu1 %v2337_v33, %s5227_s10 }
0x176c   :  { %2397 = vrot.lane.b32.xlu0 %v2372_v61, %s5227_s10 }
0x176d   :  { %v2836_v47 = vpop.permute.xlu0 %2835 }
0x176e   :  { %3209 = vrot.lane.b32.xlu1 %v3159_v31, %s5227_s10  ;;  %v2841_v15 = vsel %vm1593_vm6, %v2836_v47, 0.0 }
0x1770   :  { %3219 = vrot.lane.b32.xlu0 %v3194_v43, %s5227_s10 }
0x1772   :  { %2303 = vrot.lane.b32.xlu1 %v2263_v10, %s5227_s10 }
0x1774   :  { %2313 = vrot.lane.b32.xlu0 %v2298_v3, %s5227_s10 }
0x1776   :  { %2391 = vrot.lane.b32.xlu1 %v2351_v28, %s5227_s10 }
0x1778   :  { %2401 = vrot.lane.b32.xlu0 %v2386_v57, %s5227_s10 }
0x177a   :  { %3213 = vrot.lane.b32.xlu1 %v3173_v7, %s5227_s10 }
0x177c   :  { %2477 = vrot.lane.b32.xlu0 %v2432_v12, %s5227_s10  ;;  %v3208_v12 = vrot.slane %v6036_v35, %v5496_v2 }
0x177e   :  { %2307 = vrot.lane.b32.xlu1 %v2277_v41, %s5227_s10 }
0x1780   :  { %2481 = vrot.lane.b32.xlu0 %v2446_v44, %s5227_s10  ;;  %v1931_v44 = vsel %vm1593_vm6, %v1926_v22, 0.0 }
0x1782   :  { %2395 = vrot.lane.b32.xlu1 %v2365_v59, %s5227_s10 }
0x1784   :  { %2485 = vrot.lane.b32.xlu0 %v2460_v49, %s5227_s10  ;;  %v3254_v49 = vrot.slane %v6061_v63, %v5496_v2 }
0x1785   :  { %v1596_v54 = vpop.xlane.xlu1 %1595 }
0x1786   :  { %v1600_v17 = vmax.f32 %v1596_v54, 1e-24  ;;  %3217 = vrot.lane.b32.xlu1 %v3187_v42, %s5227_s10 }
0x1788   :  { %2489 = vrot.lane.b32.xlu0 %v2474_v39, %s5227_s10  ;;  %5095 = vrsqrt.f32 %v1600_v17  ;;  %v3268_v17 = vrot.slane %v6102_v52, %v5496_v2 }
0x1789   :  { %v2511_v27 = vpop.xlane.xlu1 %2510 }
0x178a   :  { %v2515_v53 = vmax.f32 %v2511_v27, 1e-24  ;;  %2311 = vrot.lane.b32.xlu1 %v2291_v60, %s5227_s10  ;;  %v3282_v27 = vrot.slane %v6116_v40, %v5496_v2  ;;  %v7442_v40 = vld [vmem:[#allocation18_spill] sm:$0xff] }
0x178c   :  { %5097 = vrsqrt.f32 %v2515_v53 }
0x178d   :  { %v1928_v14 = vpop.permute.xlu1 %1927 }
0x178e   :  { %2399 = vrot.lane.b32.xlu1 %v2379_v62, %s5227_s10  ;;  %v1934_v16 = vsel %vm1593_vm6, %v1928_v14, 0.0  ;;  %v3296_v62 = vrot.slane %v6127_v36, %v5496_v2 }
0x1791   :  { %v2838_v41 = vpop.permute.xlu1 %2837 }
0x1792   :  { %v5096_v45 = vpop.eup %5095  ;;  %2475 = vrot.lane.b32.xlu1 %v2425_v51, %s5227_s10  ;;  %v2844_v35 = vsel %vm1593_vm6, %v2838_v41, 0.0  ;;  %v3363_v41 = vrot.slane %v6146_v0, %v5496_v2 }
0x1793   :  { %v1604_v8 = vmul.f32 %v5096_v45, %v5772_v1 }
0x1795   :  { %v1608_v6 = vcombine.high %v1604_v8, %v1604_v8  ;;  %v1615_v13 = vrot.slane %v1604_v8, %v5496_v2 }
0x1796   :  { %v5098_v18 = vpop.eup %5097  ;;  %2479 = vrot.lane.b32.xlu1 %v2439_v23, %s5227_s10 }
0x1797   :  { %v1622_v29 = vrot.slane %v1608_v6, %v5496_v2  ;;  %v1623_v19 = vcombine.high %v1615_v13, %v1615_v13  ;;  %1651 = vst.msk [vmem:[#allocation2] sm:$0x3] %vm1650_vm5, %v1615_v13  ;;  %v2519_v50 = vmul.f32 %v5098_v18, %v5775_v25  ;;  %v3342_v6 = vrot.slane %v6133_v58, %v5496_v2  ;;  %v7444_v58 = vld [vmem:[#allocation26_spill] sm:$0xff] }
0x1799   :  { %v1624_v37 = vcombine.high %v1622_v29, %v1622_v29  ;;  %1652 = vst.msk [vmem:[#allocation2 + $0x8] sm:$0x3] %vm1650_vm5, %v1623_v19  ;;  %1653 = vst.msk [vmem:[#allocation2 + $0x10] sm:$0x3] %vm1650_vm5, %v1622_v29  ;;  %v2523_v55 = vcombine.high %v2519_v50, %v2519_v50  ;;  %v2530_v38 = vrot.slane %v2519_v50, %v5496_v2  ;;  %v7443_v50 = vld [vmem:[#allocation19_spill] sm:$0xff] }
0x179a   :  { %2483 = vrot.lane.b32.xlu1 %v2453_v20, %s5227_s10  ;;  %v3201_v20 = vrot.slane %v7443_v50, %v5496_v2 }
0x179b   :  { %1654 = vst.msk [vmem:[#allocation2 + $0x18] sm:$0x3] %vm1650_vm5, %v1624_v37  ;;  %v2537_v4 = vrot.slane %v2523_v55, %v5496_v2  ;;  %v2538_v46 = vcombine.high %v2530_v38, %v2530_v38  ;;  %2565 = vst.msk [vmem:[#allocation2 + $0x4] sm:$0x3] %vm1650_vm5, %v2530_v38  ;;  %v3356_v55 = vrot.slane %v7444_v58, %v5496_v2 }
0x179d   :  { %v2539_v9 = vcombine.high %v2537_v4, %v2537_v4  ;;  %2566 = vst.msk [vmem:[#allocation2 + $0xc] sm:$0x3] %vm1650_vm5, %v2538_v46  ;;  %2567 = vst.msk [vmem:[#allocation2 + $0x14] sm:$0x3] %vm1650_vm5, %v2537_v4  ;;  %v7445_v4 = vld [vmem:[#allocation20_spill] sm:$0xff] }
0x179e   :  { %2487 = vrot.lane.b32.xlu1 %v2467_v24, %s5227_s10  ;;  %v3247_v46 = vrot.slane %v7445_v4, %v5496_v2 }
0x179f   :  { %2568 = vst.msk [vmem:[#allocation2 + $0x1c] sm:$0x3] %vm1650_vm5, %v2539_v9  ;;  %v3370_v9 = vrot.slane %v6156_v48, %v5496_v2  ;;  %v7447_v48 = vld [vmem:[#allocation22_spill] sm:$0xff] }
0x17a7   :  { %2842 = vadd.xlane.f32.xlu0 %v2841_v15  ;;  %v1599_v11 = vpop.xlane.xlu0 %1598  ;;  %v7446_v15 = vld [vmem:[#allocation21_spill] sm:$0xff] }
0x17a8   :  { %v1601_v34 = vmax.f32 %v1599_v11, 1e-24  ;;  %v3261_v14 = vrot.slane %v7446_v15, %v5496_v2 }
0x17aa   :  { %5099 = vrsqrt.f32 %v1601_v34 }
0x17ab   :  { %1935 = vadd.xlane.f32.xlu0 %v1934_v16  ;;  %v2134_v21 = vpop.permute.xlu0 %2133  ;;  %v3275_v16 = vrot.slane %v7447_v48, %v5496_v2 }
0x17ac   :  { %2152 = vst.msk [vmem:[#allocation3 + $0x2a] sm:$0x3] %vm1650_vm5, %v2134_v21 }
0x17af   :  { %v2222_v5 = vpop.permute.xlu0 %2221 }
0x17b0   :  { %2240 = vst.msk [vmem:[#allocation3 + $0x6a] sm:$0x3] %vm1650_vm5, %v2222_v5 }
0x17b3   :  { %v3044_v30 = vpop.permute.xlu0 %3043 }
0x17b4   :  { %v5100_v56 = vpop.eup %5099  ;;  %3062 = vst.msk [vmem:[#allocation3 + $0x2e] sm:$0x3] %vm1650_vm5, %v3044_v30  ;;  %v7448_v30 = vld [vmem:[#allocation23_spill] sm:$0xff] }
0x17b5   :  { %v1605_v33 = vmul.f32 %v5100_v56, %v5859_v26  ;;  %v3289_v56 = vrot.slane %v7448_v30, %v5496_v2 }
0x17b7   :  { %v1625_v61 = vcombine.high %v1605_v33, %v1605_v33  ;;  %v1632_v31 = vrot.slane %v1605_v33, %v5496_v2  ;;  %v3132_v43 = vpop.permute.xlu0 %3131 }
0x17b8   :  { %3150 = vst.msk [vmem:[#allocation3 + $0x6e] sm:$0x3] %vm1650_vm5, %v3132_v43 }
0x17b9   :  { %v1639_v10 = vrot.slane %v1625_v61, %v5496_v2  ;;  %v1640_v3 = vcombine.high %v1632_v31, %v1632_v31  ;;  %1655 = vst.msk [vmem:[#allocation2 + $0x20] sm:$0x3] %vm1650_vm5, %v1632_v31  ;;  %v7449_v31 = vld [vmem:[#allocation24_spill] sm:$0xff] }
0x17ba   :  { %v3335_v43 = vrot.slane %v7449_v31, %v5496_v2 }
0x17bb   :  { %v1641_v28 = vcombine.high %v1639_v10, %v1639_v10  ;;  %1656 = vst.msk [vmem:[#allocation2 + $0x28] sm:$0x3] %vm1650_vm5, %v1640_v3  ;;  %1657 = vst.msk [vmem:[#allocation2 + $0x30] sm:$0x3] %vm1650_vm5, %v1639_v10  ;;  %v2138_v57 = vpop.permute.xlu0 %2137 }
0x17bc   :  { %2154 = vst.msk [vmem:[#allocation3 + $0x3a] sm:$0x3] %vm1650_vm5, %v2138_v57 }
0x17bd   :  { %1658 = vst.msk [vmem:[#allocation2 + $0x38] sm:$0x3] %vm1650_vm5, %v1641_v28  ;;  %v7450_v28 = vld [vmem:[#allocation25_spill] sm:$0xff] }
0x17be   :  { %v3349_v57 = vrot.slane %v7450_v28, %v5496_v2 }
0x17bf   :  { %v2226_v7 = vpop.permute.xlu0 %2225 }
0x17c0   :  { %2242 = vst.msk [vmem:[#allocation3 + $0x7a] sm:$0x3] %vm1650_vm5, %v2226_v7 }
0x17c1   :  { %3223 = vrot.lane.b32.xlu0 %v3208_v12, %s5227_s10 }
0x17c2   :  { %v2514_v42 = vpop.xlane.xlu1 %2513  ;;  %1932 = vadd.xlane.f32.xlu1 %v1931_v44 }
0x17c3   :  { %v3048_v59 = vpop.permute.xlu0 %3047  ;;  %v2516_v39 = vmax.f32 %v2514_v42, 1e-24 }
0x17c4   :  { %3064 = vst.msk [vmem:[#allocation3 + $0x3e] sm:$0x3] %vm1650_vm5, %v3048_v59 }
0x17c5   :  { %3299 = vrot.lane.b32.xlu0 %v3254_v49, %s5227_s10  ;;  %5101 = vrsqrt.f32 %v2516_v39 }
0x17c6   :  { %v2132_v60 = vpop.permute.xlu1 %2131  ;;  %2845 = vadd.xlane.f32.xlu1 %v2844_v35 }
0x17c7   :  { %v3136_v54 = vpop.permute.xlu0 %3135  ;;  %2151 = vst.msk [vmem:[#allocation3 + $0x22] sm:$0x3] %vm1650_vm5, %v2132_v60 }
0x17c8   :  { %3152 = vst.msk [vmem:[#allocation3 + $0x7e] sm:$0x3] %vm1650_vm5, %v3136_v54 }
0x17c9   :  { %3303 = vrot.lane.b32.xlu0 %v3268_v17, %s5227_s10 }
0x17ca   :  { %v2220_v53 = vpop.permute.xlu1 %2219 }
0x17cb   :  { %v2302_v63 = vpop.permute.xlu0 %2301  ;;  %2239 = vst.msk [vmem:[#allocation3 + $0x62] sm:$0x3] %vm1650_vm5, %v2220_v53 }
0x17cc   :  { %2324 = vst.msk [vmem:[#allocation3 + $0x8a] sm:$0x3] %vm1650_vm5, %v2302_v63 }
0x17cd   :  { %3307 = vrot.lane.b32.xlu0 %v3282_v27, %s5227_s10 }
0x17ce   :  { %v3042_v51 = vpop.permute.xlu1 %3041 }
0x17cf   :  { %v2390_v52 = vpop.permute.xlu0 %2389  ;;  %v5102_v45 = vpop.eup %5101  ;;  %3061 = vst.msk [vmem:[#allocation3 + $0x26] sm:$0x3] %vm1650_vm5, %v3042_v51 }
0x17d0   :  { %2412 = vst.msk [vmem:[#allocation3 + $0xca] sm:$0x3] %vm1650_vm5, %v2390_v52  ;;  %v2520_v8 = vmul.f32 %v5102_v45, %v7442_v40 }
0x17d1   :  { %3311 = vrot.lane.b32.xlu0 %v3296_v62, %s5227_s10 }
0x17d2   :  { %v2540_v13 = vcombine.high %v2520_v8, %v2520_v8  ;;  %v2547_v18 = vrot.slane %v2520_v8, %v5496_v2  ;;  %v3130_v29 = vpop.permute.xlu1 %3129 }
0x17d3   :  { %v3212_v23 = vpop.permute.xlu0 %3211  ;;  %3149 = vst.msk [vmem:[#allocation3 + $0x66] sm:$0x3] %vm1650_vm5, %v3130_v29 }
0x17d4   :  { %3234 = vst.msk [vmem:[#allocation3 + $0x8e] sm:$0x3] %vm1650_vm5, %v3212_v23  ;;  %v2554_v36 = vrot.slane %v2540_v13, %v5496_v2  ;;  %v2555_v19 = vcombine.high %v2547_v18, %v2547_v18  ;;  %2569 = vst.msk [vmem:[#allocation2 + $0x24] sm:$0x3] %vm1650_vm5, %v2547_v18 }
0x17d5   :  { %3387 = vrot.lane.b32.xlu0 %v3342_v6, %s5227_s10 }
0x17d6   :  { %v2556_v38 = vcombine.high %v2554_v36, %v2554_v36  ;;  %2570 = vst.msk [vmem:[#allocation2 + $0x2c] sm:$0x3] %vm1650_vm5, %v2555_v19  ;;  %2571 = vst.msk [vmem:[#allocation2 + $0x34] sm:$0x3] %vm1650_vm5, %v2554_v36  ;;  %v2136_v22 = vpop.permute.xlu1 %2135 }
0x17d7   :  { %v2306_v37 = vpop.permute.xlu0 %2305  ;;  %2153 = vst.msk [vmem:[#allocation3 + $0x32] sm:$0x3] %vm1650_vm5, %v2136_v22  ;;  %3221 = vrot.lane.b32.xlu1 %v3201_v20, %s5227_s10 }
0x17d8   :  { %2326 = vst.msk [vmem:[#allocation3 + $0x9a] sm:$0x3] %vm1650_vm5, %v2306_v37  ;;  %2572 = vst.msk [vmem:[#allocation2 + $0x3c] sm:$0x3] %vm1650_vm5, %v2556_v38 }
0x17d9   :  { %3391 = vrot.lane.b32.xlu0 %v3356_v55, %s5227_s10 }
0x17da   :  { %v2224_v47 = vpop.permute.xlu1 %2223 }
0x17db   :  { %v2394_v24 = vpop.permute.xlu0 %2393  ;;  %2241 = vst.msk [vmem:[#allocation3 + $0x72] sm:$0x3] %vm1650_vm5, %v2224_v47  ;;  %3297 = vrot.lane.b32.xlu1 %v3247_v46, %s5227_s10 }
0x17dc   :  { %2414 = vst.msk [vmem:[#allocation3 + $0xda] sm:$0x3] %vm1650_vm5, %v2394_v24 }
0x17dd   :  { %3395 = vrot.lane.b32.xlu0 %v3370_v9, %s5227_s10 }
0x17de   :  { %v3046_v34 = vpop.permute.xlu1 %3045 }
0x17df   :  { %v3216_v11 = vpop.permute.xlu0 %3215  ;;  %3063 = vst.msk [vmem:[#allocation3 + $0x36] sm:$0x3] %vm1650_vm5, %v3046_v34  ;;  %3301 = vrot.lane.b32.xlu1 %v3261_v14, %s5227_s10 }
0x17e0   :  { %3236 = vst.msk [vmem:[#allocation3 + $0x9e] sm:$0x3] %vm1650_vm5, %v3216_v11 }
0x17e2   :  { %v3134_v5 = vpop.permute.xlu1 %3133 }
0x17e3   :  { %v2310_v21 = vpop.permute.xlu0 %2309  ;;  %3151 = vst.msk [vmem:[#allocation3 + $0x76] sm:$0x3] %vm1650_vm5, %v3134_v5  ;;  %3305 = vrot.lane.b32.xlu1 %v3275_v16, %s5227_s10 }
0x17e4   :  { %2328 = vst.msk [vmem:[#allocation3 + $0xaa] sm:$0x3] %vm1650_vm5, %v2310_v21 }
0x17e6   :  { %v2300_v61 = vpop.permute.xlu1 %2299 }
0x17e7   :  { %v2398_v33 = vpop.permute.xlu0 %2397  ;;  %2323 = vst.msk [vmem:[#allocation3 + $0x82] sm:$0x3] %vm1650_vm5, %v2300_v61  ;;  %3309 = vrot.lane.b32.xlu1 %v3289_v56, %s5227_s10 }
0x17e8   :  { %2416 = vst.msk [vmem:[#allocation3 + $0xea] sm:$0x3] %vm1650_vm5, %v2398_v33 }
0x17ea   :  { %v2388_v3 = vpop.permute.xlu1 %2387 }
0x17eb   :  { %v3220_v10 = vpop.permute.xlu0 %3219  ;;  %2411 = vst.msk [vmem:[#allocation3 + $0xc2] sm:$0x3] %vm1650_vm5, %v2388_v3  ;;  %3385 = vrot.lane.b32.xlu1 %v3335_v43, %s5227_s10 }
0x17ec   :  { %3238 = vst.msk [vmem:[#allocation3 + $0xae] sm:$0x3] %vm1650_vm5, %v3220_v10 }
0x17ee   :  { %v3210_v12 = vpop.permute.xlu1 %3209 }
0x17ef   :  { %v2314_v7 = vpop.permute.xlu0 %2313  ;;  %3233 = vst.msk [vmem:[#allocation3 + $0x86] sm:$0x3] %vm1650_vm5, %v3210_v12  ;;  %3389 = vrot.lane.b32.xlu1 %v3349_v57, %s5227_s10 }
0x17f0   :  { %2330 = vst.msk [vmem:[#allocation3 + $0xba] sm:$0x3] %vm1650_vm5, %v2314_v7 }
0x17f2   :  { %v2304_v59 = vpop.permute.xlu1 %2303 }
0x17f3   :  { %v2402_v44 = vpop.permute.xlu0 %2401  ;;  %2325 = vst.msk [vmem:[#allocation3 + $0x92] sm:$0x3] %vm1650_vm5, %v2304_v59  ;;  %3393 = vrot.lane.b32.xlu1 %v3363_v41, %s5227_s10 }
0x17f4   :  { %2418 = vst.msk [vmem:[#allocation3 + $0xfa] sm:$0x3] %vm1650_vm5, %v2402_v44 }
0x17f6   :  { %v2392_v42 = vpop.permute.xlu1 %2391 }
0x17f7   :  { %v2478_v49 = vpop.permute.xlu0 %2477  ;;  %2413 = vst.msk [vmem:[#allocation3 + $0xd2] sm:$0x3] %vm1650_vm5, %v2392_v42 }
0x17f8   :  { %2500 = vst.msk [vmem:[#allocation3 + $0x10a] sm:$0x3] %vm1650_vm5, %v2478_v49 }
0x17fa   :  { %v3214_v35 = vpop.permute.xlu1 %3213 }
0x17fb   :  { %v2482_v39 = vpop.permute.xlu0 %2481  ;;  %3235 = vst.msk [vmem:[#allocation3 + $0x96] sm:$0x3] %vm1650_vm5, %v3214_v35 }
0x17fc   :  { %2502 = vst.msk [vmem:[#allocation3 + $0x11a] sm:$0x3] %vm1650_vm5, %v2482_v39 }
0x17fe   :  { %v2308_v54 = vpop.permute.xlu1 %2307 }
0x17ff   :  { %v2486_v0 = vpop.permute.xlu0 %2485  ;;  %2327 = vst.msk [vmem:[#allocation3 + $0xa2] sm:$0x3] %vm1650_vm5, %v2308_v54 }
0x1800   :  { %2504 = vst.msk [vmem:[#allocation3 + $0x12a] sm:$0x3] %vm1650_vm5, %v2486_v0 }
0x1802   :  { %v2396_v60 = vpop.permute.xlu1 %2395 }
0x1803   :  { %v2490_v17 = vpop.permute.xlu0 %2489  ;;  %2415 = vst.msk [vmem:[#allocation3 + $0xe2] sm:$0x3] %vm1650_vm5, %v2396_v60 }
0x1804   :  { %2506 = vst.msk [vmem:[#allocation3 + $0x13a] sm:$0x3] %vm1650_vm5, %v2490_v17 }
0x1806   :  { %v3218_v63 = vpop.permute.xlu1 %3217 }
0x1807   :  { %3237 = vst.msk [vmem:[#allocation3 + $0xa6] sm:$0x3] %vm1650_vm5, %v3218_v63 }
0x180a   :  { %v2312_v27 = vpop.permute.xlu1 %2311 }
0x180b   :  { %2329 = vst.msk [vmem:[#allocation3 + $0xb2] sm:$0x3] %vm1650_vm5, %v2312_v27 }
0x180e   :  { %v2400_v53 = vpop.permute.xlu1 %2399 }
0x180f   :  { %2417 = vst.msk [vmem:[#allocation3 + $0xf2] sm:$0x3] %vm1650_vm5, %v2400_v53 }
0x1812   :  { %v2476_v52 = vpop.permute.xlu1 %2475 }
0x1813   :  { %2499 = vst.msk [vmem:[#allocation3 + $0x102] sm:$0x3] %vm1650_vm5, %v2476_v52 }
0x1816   :  { %v2480_v62 = vpop.permute.xlu1 %2479 }
0x1817   :  { %2501 = vst.msk [vmem:[#allocation3 + $0x112] sm:$0x3] %vm1650_vm5, %v2480_v62 }
0x181a   :  { %v2484_v51 = vpop.permute.xlu1 %2483 }
0x181b   :  { %2503 = vst.msk [vmem:[#allocation3 + $0x122] sm:$0x3] %vm1650_vm5, %v2484_v51 }
0x181e   :  { %v2488_v45 = vpop.permute.xlu1 %2487 }
0x181f   :  { %2505 = vst.msk [vmem:[#allocation3 + $0x132] sm:$0x3] %vm1650_vm5, %v2488_v45 }
0x1834   :  { %v2843_v8 = vpop.xlane.xlu0 %2842 }
0x1835   :  { %v2847_v23 = vmax.f32 %v2843_v8, 1e-24 }
0x1837   :  { %5103 = vrsqrt.f32 %v2847_v23 }
0x1838   :  { %v1936_v6 = vpop.xlane.xlu0 %1935 }
0x1839   :  { %v1938_v22 = vmax.f32 %v1936_v6, 1e-24 }
0x183c   :  { %v3224_v13 = vpop.permute.xlu0 %3223 }
0x183d   :  { %3240 = vst.msk [vmem:[#allocation3 + $0xbe] sm:$0x3] %vm1650_vm5, %v3224_v13  ;;  %v7451_v13 = vld [vmem:[#allocation27_spill] sm:$0xff] }
0x1840   :  { %v3300_v18 = vpop.permute.xlu0 %3299 }
0x1841   :  { %v5104_v29 = vpop.eup %5103  ;;  %3322 = vst.msk [vmem:[#allocation3 + $0xce] sm:$0x3] %vm1650_vm5, %v3300_v18  ;;  %v3377_v18 = vrot.slane %v7451_v13, %v5496_v2 }
0x1842   :  { %v2851_v36 = vmul.f32 %v5104_v29, %v5775_v25 }
0x1844   :  { %v3304_v19 = vpop.permute.xlu0 %3303  ;;  %v2862_v50 = vrot.slane %v2851_v36, %v5496_v2  ;;  %v2855_v33 = vcombine.high %v2851_v36, %v2851_v36 }
0x1845   :  { %3324 = vst.msk [vmem:[#allocation3 + $0xde] sm:$0x3] %vm1650_vm5, %v3304_v19 }
0x1846   :  { %v2895_v20 = vrot.slane %v2862_v50, %v5496_v2  ;;  %v2870_v56 = vcombine.high %v2862_v50, %v2862_v50  ;;  %v2869_v28 = vrot.slane %v2855_v33, %v5496_v2  ;;  %v3384_v50 = vrot.slane %v6169_v32, %v5496_v2 }
0x1848   :  { %2945 = vrot.lane.b32.xlu1 %v2895_v20, %s5227_s10  ;;  %v3308_v37 = vpop.permute.xlu0 %3307  ;;  %v2902_v3 = vrot.slane %v2870_v56, %v5496_v2  ;;  %v2871_v35 = vcombine.high %v2869_v28, %v2869_v28 }
0x1849   :  { %3326 = vst.msk [vmem:[#allocation3 + $0xee] sm:$0x3] %vm1650_vm5, %v3308_v37 }
0x184a   :  { %v2916_v63 = vrot.slane %v2871_v35, %v5496_v2 }
0x184c   :  { %v3312_v58 = vpop.permute.xlu0 %3311 }
0x184d   :  { %3328 = vst.msk [vmem:[#allocation3 + $0xfe] sm:$0x3] %vm1650_vm5, %v3312_v58 }
0x184f   :  { %v1933_v38 = vpop.xlane.xlu1 %1932 }
0x1850   :  { %v3388_v55 = vpop.permute.xlu0 %3387  ;;  %v1937_v25 = vmax.f32 %v1933_v38, 1e-24 }
0x1851   :  { %3410 = vst.msk [vmem:[#allocation3 + $0x10e] sm:$0x3] %vm1650_vm5, %v3388_v55 }
0x1852   :  { %5105 = vrsqrt.f32 %v1937_v25 }
0x1853   :  { %v2846_v46 = vpop.xlane.xlu1 %2845  ;;  %5107 = vrsqrt.f32 %v1938_v22 }
0x1854   :  { %v3392_v4 = vpop.permute.xlu0 %3391  ;;  %v2848_v24 = vmax.f32 %v2846_v46, 1e-24 }
0x1855   :  { %3412 = vst.msk [vmem:[#allocation3 + $0x11e] sm:$0x3] %vm1650_vm5, %v3392_v4 }
0x1856   :  { %5109 = vrsqrt.f32 %v2848_v24 }
0x1857   :  { %v3222_v47 = vpop.permute.xlu1 %3221 }
0x1858   :  { %v3396_v9 = vpop.permute.xlu0 %3395  ;;  %3239 = vst.msk [vmem:[#allocation3 + $0xb6] sm:$0x3] %vm1650_vm5, %v3222_v47 }
0x1859   :  { %3414 = vst.msk [vmem:[#allocation3 + $0x12e] sm:$0x3] %vm1650_vm5, %v3396_v9 }
0x185b   :  { %v3298_v15 = vpop.permute.xlu1 %3297 }
0x185c   :  { %v5106_v14 = vpop.eup %5105  ;;  %3321 = vst.msk [vmem:[#allocation3 + $0xc6] sm:$0x3] %vm1650_vm5, %v3298_v15 }
0x185d   :  { %v1941_v11 = vmul.f32 %v5106_v14, %v5772_v1  ;;  %v5108_v21 = vpop.eup %5107 }
0x185e   :  { %v1942_v1 = vmul.f32 %v5108_v21, %v5859_v26  ;;  %v2909_v26 = vrot.slane %v2869_v28, %v5496_v2 }
0x185f   :  { %v3302_v34 = vpop.permute.xlu1 %3301  ;;  %v1952_v48 = vrot.slane %v1941_v11, %v5496_v2  ;;  %v1945_v16 = vcombine.high %v1941_v11, %v1941_v11 }
0x1860   :  { %3323 = vst.msk [vmem:[#allocation3 + $0xd6] sm:$0x3] %vm1650_vm5, %v3302_v34  ;;  %v5110_v10 = vpop.eup %5109  ;;  %v1969_v12 = vrot.slane %v1942_v1, %v5496_v2  ;;  %v1962_v39 = vcombine.high %v1942_v1, %v1942_v1 }
0x1861   :  { %v1985_v5 = vrot.slane %v1952_v48, %v5496_v2  ;;  %v1960_v30 = vcombine.high %v1952_v48, %v1952_v48  ;;  %v1959_v43 = vrot.slane %v1945_v16, %v5496_v2  ;;  %v2852_v41 = vmul.f32 %v5110_v10, %v7442_v40 }
0x1862   :  { %v2013_v49 = vrot.slane %v1969_v12, %v5496_v2  ;;  %v1976_v17 = vrot.slane %v1962_v39, %v5496_v2  ;;  %v1977_v27 = vcombine.high %v1969_v12, %v1969_v12 }
0x1863   :  { %v3306_v61 = vpop.permute.xlu1 %3305  ;;  %2035 = vrot.lane.b32.xlu0 %v1985_v5, %s5227_s10  ;;  %v1992_v31 = vrot.slane %v1960_v30, %v5496_v2  ;;  %v1999_v7 = vrot.slane %v1959_v43, %v5496_v2  ;;  %v1961_v44 = vcombine.high %v1959_v43, %v1959_v43  ;;  %v2879_v42 = vrot.slane %v2852_v41, %v5496_v2 }
0x1864   :  { %3325 = vst.msk [vmem:[#allocation3 + $0xe6] sm:$0x3] %vm1650_vm5, %v3306_v61  ;;  %v2872_v60 = vcombine.high %v2852_v41, %v2852_v41  ;;  %v2027_v52 = vrot.slane %v1976_v17, %v5496_v2  ;;  %v2020_v51 = vrot.slane %v1977_v27, %v5496_v2  ;;  %v1978_v6 = vcombine.high %v1976_v17, %v1976_v17 }
0x1865   :  { %2037 = vrot.lane.b32.xlu1 %v1992_v31, %s5227_s10  ;;  %v2006_v40 = vrot.slane %v1961_v44, %v5496_v2  ;;  %v2923_v54 = vrot.slane %v2879_v42, %v5496_v2  ;;  %v2887_v45 = vcombine.high %v2879_v42, %v2879_v42 }
0x1866   :  { %v2886_v62 = vrot.slane %v2872_v60, %v5496_v2  ;;  %v2034_v29 = vrot.slane %v1978_v6, %v5496_v2 }
0x1867   :  { %v3310_v57 = vpop.permute.xlu1 %3309  ;;  %2947 = vrot.lane.b32.xlu0 %v2902_v3, %s5227_s10  ;;  %v2930_v23 = vrot.slane %v2887_v45, %v5496_v2 }
0x1868   :  { %3327 = vst.msk [vmem:[#allocation3 + $0xf6] sm:$0x3] %vm1650_vm5, %v3310_v57  ;;  %v2937_v8 = vrot.slane %v2886_v62, %v5496_v2  ;;  %v2888_v36 = vcombine.high %v2886_v62, %v2886_v62 }
0x1869   :  { %2039 = vrot.lane.b32.xlu1 %v1999_v7, %s5227_s10 }
0x186a   :  { %v2944_v19 = vrot.slane %v2888_v36, %v5496_v2 }
0x186b   :  { %v3386_v59 = vpop.permute.xlu1 %3385  ;;  %2949 = vrot.lane.b32.xlu0 %v2909_v26, %s5227_s10 }
0x186c   :  { %3409 = vst.msk [vmem:[#allocation3 + $0x106] sm:$0x3] %vm1650_vm5, %v3386_v59 }
0x186d   :  { %2043 = vrot.lane.b32.xlu1 %v2013_v49, %s5227_s10 }
0x186f   :  { %v3390_v0 = vpop.permute.xlu1 %3389  ;;  %2041 = vrot.lane.b32.xlu0 %v2006_v40, %s5227_s10 }
0x1870   :  { %3411 = vst.msk [vmem:[#allocation3 + $0x116] sm:$0x3] %vm1650_vm5, %v3390_v0 }
0x1871   :  { %2953 = vrot.lane.b32.xlu1 %v2923_v54, %s5227_s10 }
0x1873   :  { %v3394_v53 = vpop.permute.xlu1 %3393  ;;  %2951 = vrot.lane.b32.xlu0 %v2916_v63, %s5227_s10 }
0x1874   :  { %3413 = vst.msk [vmem:[#allocation3 + $0x126] sm:$0x3] %vm1650_vm5, %v3394_v53 }
0x1875   :  { %2047 = vrot.lane.b32.xlu1 %v2027_v52, %s5227_s10 }
0x1877   :  { %2045 = vrot.lane.b32.xlu0 %v2020_v51, %s5227_s10 }
0x1879   :  { %2957 = vrot.lane.b32.xlu1 %v2937_v8, %s5227_s10 }
0x187b   :  { %2955 = vrot.lane.b32.xlu0 %v2930_v23, %s5227_s10 }
0x187d   :  { %3397 = vrot.lane.b32.xlu1 %v3377_v18, %s5227_s10 }
0x187f   :  { %2049 = vrot.lane.b32.xlu0 %v2034_v29, %s5227_s10 }
0x1883   :  { %2959 = vrot.lane.b32.xlu0 %v2944_v19, %s5227_s10 }
0x1887   :  { %3399 = vrot.lane.b32.xlu0 %v3384_v50, %s5227_s10 }
0x18ba   :  { %v2946_v20 = vpop.permute.xlu1 %2945 }
0x18bb   :  { %2969 = vst.msk [vmem:[#allocation2 + $0x6] sm:$0x3] %vm1650_vm5, %v2946_v20 }
0x18d5   :  { %v2036_v37 = vpop.permute.xlu0 %2035 }
0x18d6   :  { %2059 = vst.msk [vmem:[#allocation2 + $0x2] sm:$0x3] %vm1650_vm5, %v2036_v37 }
0x18d7   :  { %v2038_v58 = vpop.permute.xlu1 %2037 }
0x18d8   :  { %2060 = vst.msk [vmem:[#allocation2 + $0xa] sm:$0x3] %vm1650_vm5, %v2038_v58 }
0x18d9   :  { %v2948_v55 = vpop.permute.xlu0 %2947 }
0x18da   :  { %2970 = vst.msk [vmem:[#allocation2 + $0xe] sm:$0x3] %vm1650_vm5, %v2948_v55 }
0x18db   :  { %v2040_v38 = vpop.permute.xlu1 %2039 }
0x18dc   :  { %2061 = vst.msk [vmem:[#allocation2 + $0x12] sm:$0x3] %vm1650_vm5, %v2040_v38 }
0x18dd   :  { %v2950_v25 = vpop.permute.xlu0 %2949 }
0x18de   :  { %2971 = vst.msk [vmem:[#allocation2 + $0x16] sm:$0x3] %vm1650_vm5, %v2950_v25 }
0x18df   :  { %v2044_v32 = vpop.permute.xlu1 %2043 }
0x18e0   :  { %2063 = vst.msk [vmem:[#allocation2 + $0x22] sm:$0x3] %vm1650_vm5, %v2044_v32 }
0x18e1   :  { %v2042_v22 = vpop.permute.xlu0 %2041 }
0x18e2   :  { %2062 = vst.msk [vmem:[#allocation2 + $0x1a] sm:$0x3] %vm1650_vm5, %v2042_v22 }
0x18e3   :  { %v2954_v4 = vpop.permute.xlu1 %2953 }
0x18e4   :  { %2973 = vst.msk [vmem:[#allocation2 + $0x26] sm:$0x3] %vm1650_vm5, %v2954_v4 }
0x18e5   :  { %v2952_v46 = vpop.permute.xlu0 %2951 }
0x18e6   :  { %2972 = vst.msk [vmem:[#allocation2 + $0x1e] sm:$0x3] %vm1650_vm5, %v2952_v46 }
0x18e7   :  { %v2048_v24 = vpop.permute.xlu1 %2047 }
0x18e8   :  { %2065 = vst.msk [vmem:[#allocation2 + $0x32] sm:$0x3] %vm1650_vm5, %v2048_v24 }
0x18e9   :  { %v2046_v9 = vpop.permute.xlu0 %2045 }
0x18ea   :  { %2064 = vst.msk [vmem:[#allocation2 + $0x2a] sm:$0x3] %vm1650_vm5, %v2046_v9 }
0x18eb   :  { %v2958_v47 = vpop.permute.xlu1 %2957 }
0x18ec   :  { %2975 = vst.msk [vmem:[#allocation2 + $0x36] sm:$0x3] %vm1650_vm5, %v2958_v47 }
0x18ed   :  { %v2956_v15 = vpop.permute.xlu0 %2955 }
0x18ee   :  { %2974 = vst.msk [vmem:[#allocation2 + $0x2e] sm:$0x3] %vm1650_vm5, %v2956_v15 }
0x18ef   :  { %v3398_v14 = vpop.permute.xlu1 %3397 }
0x18f0   :  { %3415 = vst.msk [vmem:[#allocation3 + $0x136] sm:$0x3] %vm1650_vm5, %v3398_v14 }
0x18f1   :  { %v2050_v11 = vpop.permute.xlu0 %2049 }
0x18f2   :  { %2066 = vst.msk [vmem:[#allocation2 + $0x3a] sm:$0x3] %vm1650_vm5, %v2050_v11 }
0x18f5   :  { %v2960_v34 = vpop.permute.xlu0 %2959 }
0x18f6   :  { %2976 = vst.msk [vmem:[#allocation2 + $0x3e] sm:$0x3] %vm1650_vm5, %v2960_v34 }
0x18f9   :  { %v3400_v48 = vpop.permute.xlu0 %3399 }
0x18fa   :  { %3416 = vst.msk [vmem:[#allocation3 + $0x13e] sm:$0x3] %vm1650_vm5, %v3400_v48 }
0x18fb LB: > { %v6528_v16 = vld [vmem:[#allocation5] sm:$0xff]  ;;  %s6531_s28 = sshll.u32 %s5219_s5, 3  ;;  %v6533_v21 = vld [vmem:[#allocation5 + $0x10] sm:$0xff]  ;;  %v6535_v5 = vld [vmem:[#allocation5 + $0x8] sm:$0xff]  ;;  %s3488_s5 = sadd.s32 1, %s5219_s5   ;;  %s5219_s5 = sphi %s6523_s5, %s3488_s5  }
0x18fc   : > { %v6537_v30 = vld [vmem:[#allocation5 + $0x18] sm:$0xff]  ;;  %s3492_s30 = scalar_lea.vmem %s7393_s3, %s6531_s28  ;;  %v6553_v1 = vld [vmem:[#allocation5 + $0x20] sm:$0xff]  ;;  %v6555_v10 = vld [vmem:[#allocation5 + $0x28] sm:$0xff]  ;;  %s6769_s11 = scalar_lea.vmem [#allocation3], %s6531_s28 }
0x18fd   : > { %v6543_v56 = vld [vmem:[%s3492_s30] sm:$0xff]  ;;  %v6565_v26 = vld [vmem:[#allocation5 + $0x30] sm:$0xff]  ;;  %v6567_v44 = vld [vmem:[#allocation5 + $0x38] sm:$0xff]  ;;  %s3494_s12 = scalar_lea.vmem [#allocation2], %s6531_s28  ;;  %s3490_s15 = scalar_lea.vmem %s7392_s2, %s6531_s28 }
0x18fe   : > { %v3823_v33 = vmul.f32 %v6528_v16, %v6543_v56  ;;  %v3825_v61 = vmul.f32 %v6533_v21, %v6543_v56  ;;  %v3824_v31 = vmul.f32 %v6535_v5, %v6543_v56  ;;  %v3826_v43 = vmul.f32 %v6537_v30, %v6543_v56  ;;  %v6575_v40 = vld [vmem:[#allocation5 + $0x40] sm:$0xff]  ;;  %v6577_v35 = vld [vmem:[#allocation5 + $0x48] sm:$0xff]  ;;  %v6585_v63 = vld [vmem:[#allocation5 + $0x50] sm:$0xff]  ;;  %s3805_s16 = scalar_lea.vmem [#allocation4], %s6531_s28  ;;  %p3485_p8 = scmp.ge.s32.totalorder %s3488_s5, 8  }
0x18ff   : > { %v3827_v12 = vmul.f32 %v6553_v1, %v6543_v56  ;;  %v3828_v41 = vmul.f32 %v6555_v10, %v6543_v56  ;;  %v3829_v42 = vmul.f32 %v6565_v26, %v6543_v56  ;;  %v3830_v39 = vmul.f32 %v6567_v44, %v6543_v56  ;;  %v6587_v27 = vld [vmem:[#allocation5 + $0x58] sm:$0xff]  ;;  %v6595_v45 = vld [vmem:[#allocation5 + $0x60] sm:$0xff]  ;;  %v6597_v8 = vld [vmem:[#allocation5 + $0x68] sm:$0xff] }
0x1900   : > { %v3839_v3 = vsel %vm1593_vm6, %v3823_v33, 0.0  ;;  %v3845_v28 = vsel %vm1593_vm6, %v3825_v61, 0.0  ;;  %v3842_v57 = vsel %vm1593_vm6, %v3824_v31, 0.0  ;;  %v3848_v7 = vsel %vm1593_vm6, %v3826_v43, 0.0  ;;  %v6605_v29 = vld [vmem:[#allocation5 + $0x70] sm:$0xff]  ;;  %v6607_v36 = vld [vmem:[#allocation5 + $0x78] sm:$0xff] }
0x1901   : > { %3840 = vadd.xlane.f32.xlu0 %v3839_v3  ;;  %3846 = vadd.xlane.f32.xlu1 %v3845_v28  ;;  %v3851_v59 = vsel %vm1593_vm6, %v3827_v12, 0.0  ;;  %v3854_v49 = vsel %vm1593_vm6, %v3828_v41, 0.0  ;;  %v3857_v0 = vsel %vm1593_vm6, %v3829_v42, 0.0  ;;  %v3860_v54 = vsel %vm1593_vm6, %v3830_v39, 0.0  ;;  %v6617_v38 = vld [vmem:[#allocation7] sm:$0xff]  ;;  %v6619_v25 = vld [vmem:[#allocation7 + $0x8] sm:$0xff] }
0x1902   : > { %v3831_v17 = vmul.f32 %v6575_v40, %v6543_v56  ;;  %v3832_v60 = vmul.f32 %v6577_v35, %v6543_v56  ;;  %v3833_v62 = vmul.f32 %v6585_v63, %v6543_v56  ;;  %v3834_v51 = vmul.f32 %v6587_v27, %v6543_v56  ;;  %v6625_v4 = vld [vmem:[#allocation7 + $0x10] sm:$0xff]  ;;  %v6631_v15 = vld [vmem:[#allocation7 + $0x18] sm:$0xff]  ;;  %v6636_v48 = vld [vmem:[#allocation7 + $0x20] sm:$0xff] }
0x1903   : > { %v3835_v13 = vmul.f32 %v6595_v45, %v6543_v56  ;;  %v3836_v18 = vmul.f32 %v6597_v8, %v6543_v56  ;;  %v3837_v20 = vmul.f32 %v6605_v29, %v6543_v56  ;;  %v3838_v37 = vmul.f32 %v6607_v36, %v6543_v56  ;;  %v6641_v31 = vld [vmem:[#allocation12] sm:$0xff]  ;;  %v6643_v43 = vld [vmem:[#allocation12 + $0x8] sm:$0xff]  ;;  %v6645_v28 = vld [vmem:[#allocation7 + $0x28] sm:$0xff] }
0x1904   : > { %v3863_v53 = vsel %vm1593_vm6, %v3831_v17, 0.0  ;;  %v3866_v52 = vsel %vm1593_vm6, %v3832_v60, 0.0  ;;  %v3869_v23 = vsel %vm1593_vm6, %v3833_v62, 0.0  ;;  %v3872_v6 = vsel %vm1593_vm6, %v3834_v51, 0.0  ;;  %v6656_v42 = vld [vmem:[#allocation7 + $0x30] sm:$0xff]  ;;  %v6667_v62 = vld [vmem:[#allocation7 + $0x38] sm:$0xff] }
0x1905   : > { %3843 = vadd.xlane.f32.xlu0 %v3842_v57  ;;  %3849 = vadd.xlane.f32.xlu1 %v3848_v7  ;;  %v3875_v19 = vsel %vm1593_vm6, %v3835_v13, 0.0  ;;  %v3878_v50 = vsel %vm1593_vm6, %v3836_v18, 0.0  ;;  %v3881_v58 = vsel %vm1593_vm6, %v3837_v20, 0.0  ;;  %v3884_v55 = vsel %vm1593_vm6, %v3838_v37, 0.0  ;;  %v6677_v20 = vld [vmem:[#allocation7 + $0x40] sm:$0xff] }
0x1906   : > { %v3526_v32 = vmul.f32 %v6617_v38, %v6617_v38  ;;  %v3527_v22 = vmul.f32 %v6619_v25, %v6619_v25  ;;  %v3528_v24 = vmul.f32 %v6625_v4, %v6625_v4  ;;  %v3529_v11 = vmul.f32 %v6631_v15, %v6631_v15  ;;  %7452 = vst [vmem:[#allocation28_spill] sm:$0xff] %v6677_v20 }
0x1907   : > { %v3530_v61 = vmul.f32 %v6636_v48, %v6636_v48  ;;  %v3531_v7 = vmul.f32 %v6645_v28, %v6645_v28  ;;  %v3591_v12 = vmul.f32 %v6641_v31, %v6617_v38  ;;  %v3592_v41 = vmul.f32 %v6643_v43, %v6619_v25 }
0x1908   : > { %v3542_v46 = vsel %vm1593_vm6, %v3526_v32, 0.0  ;;  %v3543_v9 = vsel %vm1593_vm6, %v3527_v22, 0.0  ;;  %v3545_v14 = vsel %vm1593_vm6, %v3528_v24, 0.0  ;;  %v3547_v33 = vsel %vm1593_vm6, %v3529_v11, 0.0 }
0x1909   : > { %3852 = vadd.xlane.f32.xlu0 %v3851_v59  ;;  %3855 = vadd.xlane.f32.xlu1 %v3854_v49  ;;  %v3544_v47 = vadd.f32 %v3543_v9, %v3542_v46  ;;  %v3549_v57 = vsel %vm1593_vm6, %v3530_v61, 0.0  ;;  %v6654_v59 = vld [vmem:[#allocation12 + $0x10] sm:$0xff]  ;;  %v3551_v39 = vsel %vm1593_vm6, %v3531_v7, 0.0  ;;  %v3607_v17 = vsel %vm1593_vm6, %v3591_v12, 0.0  ;;  %v6685_v46 = vld [vmem:[#allocation12 + $0x28] sm:$0xff]  ;;  %v6687_v9 = vld [vmem:[#allocation7 + $0x48] sm:$0xff] }
0x190a   : > { %v3608_v60 = vsel %vm1593_vm6, %v3592_v41, 0.0  ;;  %7453 = vst [vmem:[#allocation29_spill] sm:$0xff] %v6687_v9  ;;  %v6695_v61 = vld [vmem:[#allocation12 + $0x30] sm:$0xff] }
0x190b   : > { %v3546_v34 = vadd.f32 %v3545_v14, %v3544_v47  ;;  %v3535_v14 = vmul.f32 %v6687_v9, %v6687_v9 }
0x190d   : > { %3858 = vadd.xlane.f32.xlu0 %v3857_v0  ;;  %3861 = vadd.xlane.f32.xlu1 %v3860_v54  ;;  %v3548_v3 = vadd.f32 %v3547_v33, %v3546_v34  ;;  %v3532_v0 = vmul.f32 %v6656_v42, %v6656_v42  ;;  %v3593_v54 = vmul.f32 %v6654_v59, %v6625_v4  ;;  %v3559_v7 = vsel %vm1593_vm6, %v3535_v14, 0.0  ;;  %v6727_v14 = vld [vmem:[#allocation7 + $0x68] sm:$0xff] }
0x190e   : > { %v3596_v34 = vmul.f32 %v6685_v46, %v6645_v28 }
0x190f   : > { %v3550_v49 = vadd.f32 %v3549_v57, %v3548_v3  ;;  %v3553_v51 = vsel %vm1593_vm6, %v3532_v0, 0.0  ;;  %v3610_v18 = vsel %vm1593_vm6, %v3593_v54, 0.0  ;;  %v6697_v57 = vld [vmem:[#allocation7 + $0x50] sm:$0xff]  ;;  %v6705_v0 = vld [vmem:[#allocation12 + $0x38] sm:$0xff] }
0x1910   : > { %7454 = vst [vmem:[#allocation30_spill] sm:$0xff] %v6697_v57  ;;  %v3536_v12 = vmul.f32 %v6697_v57, %v6697_v57 }
0x1911   : > { %3864 = vadd.xlane.f32.xlu0 %v3863_v53  ;;  %3867 = vadd.xlane.f32.xlu1 %v3866_v52  ;;  %v6665_v53 = vld [vmem:[#allocation12 + $0x18] sm:$0xff]  ;;  %v3552_v52 = vadd.f32 %v3551_v39, %v3550_v49  ;;  %v3597_v49 = vmul.f32 %v6695_v61, %v6656_v42  ;;  %v3616_v39 = vsel %vm1593_vm6, %v3596_v34, 0.0  ;;  %v3539_v34 = vmul.f32 %v6727_v14, %v6727_v14 }
0x1912   : > { %v3594_v13 = vmul.f32 %v6665_v53, %v6631_v15 }
0x1914   : > { %v3612_v22 = vsel %vm1593_vm6, %v3594_v13, 0.0  ;;  %v6715_v13 = vld [vmem:[#allocation12 + $0x40] sm:$0xff] }
0x1915   : > { %3870 = vadd.xlane.f32.xlu0 %v3869_v23  ;;  %3873 = vadd.xlane.f32.xlu1 %v3872_v6  ;;  %v3533_v23 = vmul.f32 %v6667_v62, %v6667_v62  ;;  %v3609_v6 = vadd.f32 %v3608_v60, %v3607_v17  ;;  %v6707_v17 = vld [vmem:[#allocation7 + $0x58] sm:$0xff]  ;;  %v3561_v60 = vsel %vm1593_vm6, %v3536_v12, 0.0  ;;  %7455 = vst [vmem:[#allocation31_spill] sm:$0xff] %v6715_v13  ;;  %v6735_v12 = vld [vmem:[#allocation12 + $0x50] sm:$0xff] }
0x1916   : > { %7457 = vst [vmem:[#allocation33_spill] sm:$0xff] %v6735_v12 }
0x1917   : > { %v3555_v37 = vsel %vm1593_vm6, %v3533_v23, 0.0  ;;  %v3598_v23 = vmul.f32 %v6705_v0, %v6667_v62 }
0x1919   : > { %3876 = vadd.xlane.f32.xlu0 %v3875_v19  ;;  %3879 = vadd.xlane.f32.xlu1 %v3878_v50  ;;  %v6675_v19 = vld [vmem:[#allocation12 + $0x20] sm:$0xff]  ;;  %v3554_v50 = vadd.f32 %v3553_v51, %v3552_v52  ;;  %v3537_v52 = vmul.f32 %v6707_v17, %v6707_v17 }
0x191a   : > { %v3595_v32 = vmul.f32 %v6675_v19, %v6636_v48 }
0x191b   : > { %v3556_v24 = vadd.f32 %v3555_v37, %v3554_v50  ;;  %v6717_v50 = vld [vmem:[#allocation7 + $0x60] sm:$0xff]  ;;  %v3563_v37 = vsel %vm1593_vm6, %v3537_v52, 0.0  ;;  %v3601_v52 = vmul.f32 %v6735_v12, %v6697_v57 }
0x191c   : > { %v3614_v33 = vsel %vm1593_vm6, %v3595_v32, 0.0  ;;  %v3599_v32 = vmul.f32 %v6715_v13, %v6677_v20 }
0x191d   : > { %3882 = vadd.xlane.f32.xlu0 %v3881_v58  ;;  %3885 = vadd.xlane.f32.xlu1 %v3884_v55  ;;  %v3534_v58 = vmul.f32 %v6677_v20, %v6677_v20  ;;  %v3611_v55 = vadd.f32 %v3610_v18, %v3609_v6  ;;  %v3618_v6 = vsel %vm1593_vm6, %v3597_v49, 0.0  ;;  %v6737_v49 = vld [vmem:[#allocation7 + $0x70] sm:$0xff] }
0x191e   : > { %7458 = vst [vmem:[#allocation34_spill] sm:$0xff] %v6737_v49 }
0x191f   : > { %v3557_v47 = vsel %vm1593_vm6, %v3534_v58, 0.0  ;;  %v3613_v11 = vadd.f32 %v3612_v22, %v3611_v55  ;;  %v3538_v58 = vmul.f32 %v6717_v50, %v6717_v50  ;;  %v3620_v22 = vsel %vm1593_vm6, %v3598_v23, 0.0  ;;  %v6745_v23 = vld [vmem:[#allocation12 + $0x58] sm:$0xff] }
0x1920   : > { %v3558_v3 = vadd.f32 %v3557_v47, %v3556_v24  ;;  %v6725_v24 = vld [vmem:[#allocation12 + $0x48] sm:$0xff]  ;;  %7459 = vst [vmem:[#allocation35_spill] sm:$0xff] %v6745_v23 }
0x1921   : > { %v3615_v41 = vadd.f32 %v3614_v33, %v3613_v11  ;;  %7456 = vst [vmem:[#allocation32_spill] sm:$0xff] %v6725_v24  ;;  %v3565_v11 = vsel %vm1593_vm6, %v3538_v58, 0.0 }
0x1922   : > { %v3560_v54 = vadd.f32 %v3559_v7, %v3558_v3  ;;  %v3600_v3 = vmul.f32 %v6725_v24, %v6687_v9  ;;  %v3622_v7 = vsel %vm1593_vm6, %v3599_v32, 0.0  ;;  %v3602_v32 = vmul.f32 %v6745_v23, %v6707_v17 }
0x1923   : > { %v3617_v51 = vadd.f32 %v3616_v39, %v3615_v41  ;;  %v3567_v39 = vsel %vm1593_vm6, %v3539_v34, 0.0 }
0x1924   : > { %v3562_v18 = vadd.f32 %v3561_v60, %v3560_v54  ;;  %v3540_v54 = vmul.f32 %v6737_v49, %v6737_v49 }
0x1925   : > { %v3619_v55 = vadd.f32 %v3618_v6, %v3617_v51  ;;  %v3624_v51 = vsel %vm1593_vm6, %v3600_v3, 0.0 }
0x1926   : > { %v3564_v47 = vadd.f32 %v3563_v37, %v3562_v18  ;;  %v6747_v18 = vld [vmem:[#allocation7 + $0x78] sm:$0xff]  ;;  %v3569_v37 = vsel %vm1593_vm6, %v3540_v54, 0.0 }
0x1927   : > { %v3621_v33 = vadd.f32 %v3620_v22, %v3619_v55  ;;  %7460 = vst [vmem:[#allocation36_spill] sm:$0xff] %v6747_v18  ;;  %v3541_v58 = vmul.f32 %v6747_v18, %v6747_v18  ;;  %v3626_v22 = vsel %vm1593_vm6, %v3601_v52, 0.0 }
0x1928   : > { %v3566_v41 = vadd.f32 %v3565_v11, %v3564_v47  ;;  %v6755_v47 = vld [vmem:[#allocation12 + $0x60] sm:$0xff] }
0x1929   : > { %v3623_v60 = vadd.f32 %v3622_v7, %v3621_v33  ;;  %7461 = vst [vmem:[#allocation37_spill] sm:$0xff] %v6755_v47  ;;  %v3571_v34 = vsel %vm1593_vm6, %v3541_v58, 0.0  ;;  %v3603_v3 = vmul.f32 %v6755_v47, %v6717_v50  ;;  %v3628_v7 = vsel %vm1593_vm6, %v3602_v32, 0.0 }
0x192a   : > { %v3568_v6 = vadd.f32 %v3567_v39, %v3566_v41  ;;  %v6761_v41 = vld [vmem:[#allocation12 + $0x68] sm:$0xff] }
0x192b   : > { %v3625_v55 = vadd.f32 %v3624_v51, %v3623_v60  ;;  %7462 = vst [vmem:[#allocation38_spill] sm:$0xff] %v6761_v41  ;;  %v3604_v60 = vmul.f32 %v6761_v41, %v6727_v14  ;;  %v3630_v52 = vsel %vm1593_vm6, %v3603_v3, 0.0  ;;  %v6766_v51 = vld [vmem:[#allocation12 + $0x70] sm:$0xff] }
0x192c   : > { %v3570_v11 = vadd.f32 %v3569_v37, %v3568_v6  ;;  %7463 = vst [vmem:[#allocation39_spill] sm:$0xff] %v6766_v51  ;;  %v6772_v37 = vld [vmem:[%s6769_s11 + $0xc0] sm:$0xff]  ;;  %v3605_v32 = vmul.f32 %v6766_v51, %v6737_v49 }
0x192d   : > { %v3627_v33 = vadd.f32 %v3626_v22, %v3625_v55  ;;  %v6774_v55 = vld [vmem:[#allocation12 + $0x78] sm:$0xff]  ;;  %v3632_v22 = vsel %vm1593_vm6, %v3604_v60, 0.0  ;;  %v3888_v47 = vmul.f32 %v6772_v37, %v6619_v25 }
0x192e   : > { %v3572_v39 = vadd.f32 %v3571_v34, %v3570_v11  ;;  %7464 = vst [vmem:[#allocation40_spill] sm:$0xff] %v6774_v55  ;;  %v6780_v11 = vld [vmem:[%s6769_s11 + $0x100] sm:$0xff]  ;;  %v3887_v34 = vmul.f32 %v6772_v37, %v6617_v38  ;;  %v3634_v60 = vsel %vm1593_vm6, %v3605_v32, 0.0 }
0x192f   : > { %v3629_v54 = vadd.f32 %v3628_v7, %v3627_v33  ;;  %v3889_v33 = vmul.f32 %v6772_v37, %v6625_v4 }
0x1930   : > { %v3573_v6 = vmax.f32 %v3572_v39, 1e-24  ;;  %v3606_v39 = vmul.f32 %v6774_v55, %v6747_v18  ;;  %v6815_v55 = vmul.f32 %v6772_v37, %v6677_v20 }
0x1931   : > { %v3631_v58 = vadd.f32 %v3630_v52, %v3629_v54 }
0x1932   : > { %5111 = vrsqrt.f32 %v3573_v6  ;;  %v3890_v6 = vmul.f32 %v6772_v37, %v6631_v15 }
0x1933   : > { %v3633_v54 = vadd.f32 %v3632_v22, %v3631_v58  ;;  %v3636_v58 = vsel %vm1593_vm6, %v3606_v39, 0.0 }
0x1935   : > { %v3635_v24 = vadd.f32 %v3634_v60, %v3633_v54  ;;  %v6805_v54 = vld [vmem:[%s3494_s12] sm:$0xff] }
0x198e   : > { %v3841_v3 = vpop.xlane.xlu0 %3840  ;;  %v3847_v7 = vpop.xlane.xlu1 %3846 }
0x198f   : > { %v3903_v52 = vmul.f32 %v6780_v11, %v3841_v3  ;;  %v3905_v2 = vmul.f32 %v6780_v11, %v3847_v7 }
0x1991   : > { %v3919_v51 = vsub.f32 %v3887_v34, %v3903_v52  ;;  %v3921_v41 = vsub.f32 %v3889_v33, %v3905_v2  ;;  %v3891_v2 = vmul.f32 %v6772_v37, %v6636_v48  ;;  %v3892_v33 = vmul.f32 %v6772_v37, %v6645_v28 }
0x1992   : > { %v3844_v23 = vpop.xlane.xlu0 %3843  ;;  %v3850_v12 = vpop.xlane.xlu1 %3849 }
0x1993   : > { %v3935_v22 = vmul.f32 %v3919_v51, %v6543_v56  ;;  %v3937_v3 = vmul.f32 %v3921_v41, %v6543_v56  ;;  %v3904_v32 = vmul.f32 %v6780_v11, %v3844_v23  ;;  %v3906_v34 = vmul.f32 %v6780_v11, %v3850_v12 }
0x1994   : > { %v3893_v12 = vmul.f32 %v6772_v37, %v6656_v42  ;;  %v3894_v23 = vmul.f32 %v6772_v37, %v6667_v62 }
0x1995   : > { %v3920_v7 = vsub.f32 %v3888_v47, %v3904_v32  ;;  %v3922_v52 = vsub.f32 %v3890_v6, %v3906_v34  ;;  %v3951_v39 = vadd.f32 %v3935_v22, %v6528_v16  ;;  %v3953_v51 = vadd.f32 %v3937_v3, %v6533_v21  ;;  %v6817_v6 = vpop.eup %5111 }
0x1996   : > { %v3853_v41 = vpop.xlane.xlu0 %3852  ;;  %v3856_v60 = vpop.xlane.xlu1 %3855  ;;  %v3637_v47 = vadd.f32 %v3636_v58, %v3635_v24  ;;  %v6829_v24 = vmul.f32 %v6772_v37, %v6687_v9  ;;  %v6833_v58 = vmul.f32 %v6772_v37, %v6697_v57  ;;  %v6844_v9 = vmul.f32 %v6772_v37, %v6717_v50 }
0x1997   : > { %v3936_v32 = vmul.f32 %v3920_v7, %v6543_v56  ;;  %v3938_v16 = vmul.f32 %v3922_v52, %v6543_v56  ;;  %v3907_v21 = vmul.f32 %v6780_v11, %v3853_v41  ;;  %v3908_v22 = vmul.f32 %v6780_v11, %v3856_v60  ;;  %3967 = vst.msk [vmem:[#allocation5] sm:$0xff] %vm1593_vm6, %v3951_v39 }
0x1998   : > { %3969 = vst.msk [vmem:[#allocation5 + $0x10] sm:$0xff] %vm1593_vm6, %v3953_v51  ;;  %v3983_v3 = vmul.f32 %v3951_v39, %v6805_v54  ;;  %v3985_v34 = vmul.f32 %v3953_v51, %v6805_v54  ;;  %v6840_v51 = vmul.f32 %v6772_v37, %v6707_v17  ;;  %v3638_v57 = vmul.f32 %v6817_v6, %v3637_v47 }
0x1999   : > { %v3923_v7 = vsub.f32 %v3891_v2, %v3907_v21  ;;  %v3924_v52 = vsub.f32 %v3892_v33, %v3908_v22  ;;  %v3952_v41 = vadd.f32 %v3936_v32, %v6535_v5  ;;  %v3954_v60 = vadd.f32 %v3938_v16, %v6537_v30 }
0x199a   : > { %v3999_v13 = vsel %vm1593_vm6, %v3983_v3, 0.0  ;;  %v3859_v20 = vpop.xlane.xlu0 %3858  ;;  %v3862_v39 = vpop.xlane.xlu1 %3861  ;;  %v4005_v32 = vsel %vm1593_vm6, %v3985_v34, 0.0  ;;  %v6858_v21 = vmul.f32 %v6772_v37, %v6727_v14  ;;  %v6865_v34 = vmul.f32 %v6772_v37, %v6737_v49 }
0x199b   : > { %v3939_v2 = vmul.f32 %v3923_v7, %v6543_v56  ;;  %v3940_v5 = vmul.f32 %v3924_v52, %v6543_v56  ;;  %4000 = vadd.xlane.f32.xlu0 %v3999_v13  ;;  %v3909_v30 = vmul.f32 %v6780_v11, %v3859_v20  ;;  %v3910_v33 = vmul.f32 %v6780_v11, %v3862_v39 }
0x199c   : > { %3968 = vst.msk [vmem:[#allocation5 + $0x8] sm:$0xff] %vm1593_vm6, %v3952_v41  ;;  %3970 = vst.msk [vmem:[#allocation5 + $0x18] sm:$0xff] %vm1593_vm6, %v3954_v60  ;;  %v3984_v16 = vmul.f32 %v3952_v41, %v6805_v54  ;;  %v3986_v47 = vmul.f32 %v3954_v60, %v6805_v54  ;;  %v6869_v41 = vmul.f32 %v6772_v37, %v6747_v18 }
0x199d   : > { %v3925_v13 = vsub.f32 %v3893_v12, %v3909_v30  ;;  %v3926_v22 = vsub.f32 %v3894_v23, %v3910_v33  ;;  %v3955_v20 = vadd.f32 %v3939_v2, %v6553_v1  ;;  %v3956_v3 = vadd.f32 %v3940_v5, %v6555_v10  ;;  %v6872_v12 = vld [vmem:[#allocation6] sm:$0xff]  ;;  %v6884_v5 = vld [vmem:[#allocation6 + $0x8] sm:$0xff] }
0x199e   : > { %v4002_v7 = vsel %vm1593_vm6, %v3984_v16, 0.0  ;;  %v3865_v52 = vpop.xlane.xlu0 %3864  ;;  %v3868_v39 = vpop.xlane.xlu1 %3867  ;;  %v3640_v60 = vmul.f32 %v6780_v11, %v3638_v57  ;;  %v4008_v2 = vsel %vm1593_vm6, %v3986_v47, 0.0  ;;  %v3491_v57 = vld [vmem:[%s3490_s15] sm:$0xff] }
0x199f   : > { %v3941_v1 = vmul.f32 %v3925_v13, %v6543_v56  ;;  %v3942_v10 = vmul.f32 %v3926_v22, %v6543_v56  ;;  %4006 = vadd.xlane.f32.xlu0 %v4005_v32  ;;  %4003 = vadd.xlane.f32.xlu1 %v4002_v7  ;;  %v3911_v23 = vmul.f32 %v6780_v11, %v3865_v52 }
0x19a0   : > { %3971 = vst.msk [vmem:[#allocation5 + $0x20] sm:$0xff] %vm1593_vm6, %v3955_v20  ;;  %3972 = vst.msk [vmem:[#allocation5 + $0x28] sm:$0xff] %vm1593_vm6, %v3956_v3  ;;  %v3912_v30 = vmul.f32 %v6780_v11, %v3868_v39  ;;  %v3987_v33 = vmul.f32 %v3955_v20, %v6805_v54  ;;  %v3988_v16 = vmul.f32 %v3956_v3, %v6805_v54 }
0x19a1   : > { %v3639_v32 = vmul.f32 %v6772_v37, %v3491_v57  ;;  %v3927_v13 = vsub.f32 %v6815_v55, %v3911_v23  ;;  %v3957_v22 = vadd.f32 %v3941_v1, %v6565_v26  ;;  %v3958_v47 = vadd.f32 %v3942_v10, %v6567_v44 }
0x19a2   : > { %v3707_v7 = vmul.f32 %v6872_v12, %v6872_v12  ;;  %v3928_v52 = vsub.f32 %v6829_v24, %v3912_v30  ;;  %v4011_v18 = vsel %vm1593_vm6, %v3987_v33, 0.0  ;;  %v3871_v39 = vpop.xlane.xlu0 %3870  ;;  %v3874_v49 = vpop.xlane.xlu1 %3873  ;;  %v3708_v3 = vmul.f32 %v6884_v5, %v6884_v5 }
0x19a3   : > { %v3641_v20 = vsub.f32 %v3639_v32, %v3640_v60  ;;  %v3943_v37 = vmul.f32 %v3927_v13, %v6543_v56  ;;  %4009 = vadd.xlane.f32.xlu1 %v4008_v2  ;;  %4012 = vadd.xlane.f32.xlu0 %v4011_v18  ;;  %v3913_v26 = vmul.f32 %v6780_v11, %v3871_v39  ;;  %v4014_v55 = vsel %vm1593_vm6, %v3988_v16, 0.0 }
0x19a4   : > { %v3914_v44 = vmul.f32 %v6780_v11, %v3874_v49  ;;  %3973 = vst.msk [vmem:[#allocation5 + $0x30] sm:$0xff] %vm1593_vm6, %v3957_v22  ;;  %3974 = vst.msk [vmem:[#allocation5 + $0x38] sm:$0xff] %vm1593_vm6, %v3958_v47  ;;  %v3944_v24 = vmul.f32 %v3928_v52, %v6543_v56  ;;  %v3989_v60 = vmul.f32 %v3957_v22, %v6805_v54  ;;  %v3723_v2 = vsel %vm1593_vm6, %v3707_v7, 0.0 }
0x19a5   : > { %v3990_v1 = vmul.f32 %v3958_v47, %v6805_v54  ;;  %v6909_v10 = vmul.f32 %v6817_v6, %v3641_v20  ;;  %v3929_v18 = vsub.f32 %v6833_v58, %v3913_v26  ;;  %v3959_v49 = vadd.f32 %v3943_v37, %v6575_v40 }
0x19a6   : > { %v3930_v23 = vsub.f32 %v6840_v51, %v3914_v44  ;;  %v4017_v57 = vsel %vm1593_vm6, %v3989_v60, 0.0  ;;  %v3877_v30 = vpop.xlane.xlu0 %3876  ;;  %v3880_v33 = vpop.xlane.xlu1 %3879  ;;  %v3960_v16 = vadd.f32 %v3944_v24, %v6577_v35  ;;  %v3724_v6 = vsel %vm1593_vm6, %v3708_v3, 0.0 }
0x19a7   : > { %v3643_v32 = vmul.f32 %v6909_v10, %v6617_v38  ;;  %v3945_v13 = vmul.f32 %v3929_v18, %v6543_v56  ;;  %4015 = vadd.xlane.f32.xlu1 %v4014_v55  ;;  %4018 = vadd.xlane.f32.xlu0 %v4017_v57  ;;  %v3915_v40 = vmul.f32 %v6780_v11, %v3877_v30  ;;  %v4020_v51 = vsel %vm1593_vm6, %v3990_v1, 0.0 }
0x19a8   : > { %v3946_v58 = vmul.f32 %v3930_v23, %v6543_v56  ;;  %3975 = vst.msk [vmem:[#allocation5 + $0x40] sm:$0xff] %vm1593_vm6, %v3959_v49  ;;  %v3916_v22 = vmul.f32 %v6780_v11, %v3880_v33  ;;  %v3991_v35 = vmul.f32 %v3959_v49, %v6805_v54  ;;  %3976 = vst.msk [vmem:[#allocation5 + $0x48] sm:$0xff] %vm1593_vm6, %v3960_v16 }
0x19a9   : > { %v3992_v47 = vmul.f32 %v3960_v16, %v6805_v54  ;;  %v3659_v7 = vadd.f32 %v3643_v32, %v6641_v31  ;;  %v3931_v52 = vsub.f32 %v6844_v9, %v3915_v40  ;;  %v3961_v39 = vadd.f32 %v3945_v13, %v6585_v63 }
0x19aa   : > { %v3962_v20 = vadd.f32 %v3946_v58, %v6587_v27  ;;  %v3644_v3 = vmul.f32 %v6909_v10, %v6619_v25  ;;  %v3932_v37 = vsub.f32 %v6858_v21, %v3916_v22  ;;  %v4023_v26 = vsel %vm1593_vm6, %v3991_v35, 0.0  ;;  %v3883_v44 = vpop.xlane.xlu0 %3882  ;;  %v3886_v55 = vpop.xlane.xlu1 %3885  ;;  %v6944_v21 = vld [vmem:[#allocation6 + $0x10] sm:$0xff] }
0x19ab   : > { %3675 = vst.msk [vmem:[#allocation12] sm:$0xff] %vm1593_vm6, %v3659_v7  ;;  %v3756_v24 = vmul.f32 %v6872_v12, %v3659_v7  ;;  %v3725_v31 = vadd.f32 %v3724_v6, %v3723_v2  ;;  %v3947_v9 = vmul.f32 %v3931_v52, %v6543_v56  ;;  %4021 = vadd.xlane.f32.xlu1 %v4020_v51  ;;  %3977 = vst.msk [vmem:[#allocation5 + $0x50] sm:$0xff] %vm1593_vm6, %v3961_v39 }
0x19ac   : > { %4024 = vadd.xlane.f32.xlu0 %v4023_v26  ;;  %v3917_v63 = vmul.f32 %v6780_v11, %v3883_v44  ;;  %v3918_v27 = vmul.f32 %v6780_v11, %v3886_v55  ;;  %3978 = vst.msk [vmem:[#allocation5 + $0x58] sm:$0xff] %vm1593_vm6, %v3962_v20  ;;  %v3948_v60 = vmul.f32 %v3932_v37, %v6543_v56  ;;  %v4026_v1 = vsel %vm1593_vm6, %v3992_v47, 0.0  ;;  %v6976_v47 = vld [vmem:[#allocation6 + $0x20] sm:$0xff]  ;;  %v6987_v37 = vld [vmem:[#allocation6 + $0x28] sm:$0xff] }
0x19ad   : > { %v3993_v18 = vmul.f32 %v3961_v39, %v6805_v54  ;;  %v3994_v23 = vmul.f32 %v3962_v20, %v6805_v54  ;;  %v3963_v11 = vadd.f32 %v3947_v9, %v6595_v45  ;;  %v3660_v57 = vadd.f32 %v3644_v3, %v6643_v43  ;;  %v6999_v9 = vld [vmem:[#allocation6 + $0x30] sm:$0xff] }
0x19ae   : > { %v3933_v49 = vsub.f32 %v6865_v34, %v3917_v63  ;;  %v3934_v2 = vsub.f32 %v6869_v41, %v3918_v27  ;;  %v3964_v33 = vadd.f32 %v3948_v60, %v6597_v8  ;;  %v3772_v16 = vsel %vm1593_vm6, %v3756_v24, 0.0  ;;  %v6965_v8 = vld [vmem:[#allocation6 + $0x18] sm:$0xff] }
0x19af   : > { %v4029_v30 = vsel %vm1593_vm6, %v3993_v18, 0.0  ;;  %v3709_v32 = vmul.f32 %v6944_v21, %v6944_v21  ;;  %4027 = vadd.xlane.f32.xlu1 %v4026_v1  ;;  %v4032_v34 = vsel %vm1593_vm6, %v3994_v23, 0.0  ;;  %v3995_v45 = vmul.f32 %v3963_v11, %v6805_v54  ;;  %3979 = vst.msk [vmem:[#allocation5 + $0x60] sm:$0xff] %vm1593_vm6, %v3963_v11  ;;  %3676 = vst.msk [vmem:[#allocation12 + $0x8] sm:$0xff] %vm1593_vm6, %v3660_v57  ;;  %v7006_v18 = vld [vmem:[#allocation6 + $0x38] sm:$0xff] }
0x19b0   : > { %v3949_v6 = vmul.f32 %v3933_v49, %v6543_v56  ;;  %v3950_v13 = vmul.f32 %v3934_v2, %v6543_v56  ;;  %4030 = vadd.xlane.f32.xlu0 %v4029_v30  ;;  %3980 = vst.msk [vmem:[#allocation5 + $0x68] sm:$0xff] %vm1593_vm6, %v3964_v33  ;;  %v3996_v43 = vmul.f32 %v3964_v33, %v6805_v54 }
0x19b1   : > { %v3757_v41 = vmul.f32 %v6884_v5, %v3660_v57  ;;  %v3726_v56 = vsel %vm1593_vm6, %v3709_v32, 0.0  ;;  %v3645_v58 = vmul.f32 %v6909_v10, %v6625_v4  ;;  %v4035_v40 = vsel %vm1593_vm6, %v3995_v45, 0.0 }
0x19b2   : > { %v3965_v51 = vadd.f32 %v3949_v6, %v6605_v29  ;;  %v3966_v22 = vadd.f32 %v3950_v13, %v6607_v36  ;;  %v3727_v35 = vadd.f32 %v3726_v56, %v3725_v31  ;;  %v3710_v39 = vmul.f32 %v6965_v8, %v6965_v8  ;;  %v7023_v13 = vld [vmem:[#allocation6 + $0x40] sm:$0xff] }
0x19b3   : > { %v3773_v7 = vsel %vm1593_vm6, %v3757_v41, 0.0  ;;  %v3661_v52 = vadd.f32 %v3645_v58, %v6654_v59  ;;  %4033 = vadd.xlane.f32.xlu1 %v4032_v34  ;;  %v4038_v20 = vsel %vm1593_vm6, %v3996_v43, 0.0  ;;  %v3646_v44 = vmul.f32 %v6909_v10, %v6631_v15 }
0x19b4   : > { %4036 = vadd.xlane.f32.xlu0 %v4035_v40  ;;  %v3997_v3 = vmul.f32 %v3965_v51, %v6805_v54  ;;  %3981 = vst.msk [vmem:[#allocation5 + $0x70] sm:$0xff] %vm1593_vm6, %v3965_v51  ;;  %3982 = vst.msk [vmem:[#allocation5 + $0x78] sm:$0xff] %vm1593_vm6, %v3966_v22  ;;  %v3998_v29 = vmul.f32 %v3966_v22, %v6805_v54  ;;  %v3774_v36 = vadd.f32 %v3773_v7, %v3772_v16  ;;  %v7032_v22 = vld [vmem:[#allocation6 + $0x48] sm:$0xff] }
0x19b5   : > { %3677 = vst.msk [vmem:[#allocation12 + $0x10] sm:$0xff] %vm1593_vm6, %v3661_v52  ;;  %v3758_v59 = vmul.f32 %v6944_v21, %v3661_v52  ;;  %v3728_v26 = vsel %vm1593_vm6, %v3710_v39, 0.0  ;;  %v3711_v55 = vmul.f32 %v6976_v47, %v6976_v47  ;;  %v3647_v54 = vmul.f32 %v6909_v10, %v6636_v48 }
0x19b6   : > { %v4041_v24 = vsel %vm1593_vm6, %v3997_v3, 0.0  ;;  %v3729_v31 = vadd.f32 %v3728_v26, %v3727_v35  ;;  %v3662_v27 = vadd.f32 %v3646_v44, %v6665_v53  ;;  %v3712_v1 = vmul.f32 %v6987_v37, %v6987_v37 }
0x19b7   : > { %v3775_v63 = vsel %vm1593_vm6, %v3758_v59, 0.0  ;;  %v3730_v60 = vsel %vm1593_vm6, %v3711_v55, 0.0  ;;  %4039 = vadd.xlane.f32.xlu1 %v4038_v20  ;;  %v4044_v23 = vsel %vm1593_vm6, %v3998_v29, 0.0  ;;  %v3663_v11 = vadd.f32 %v3647_v54, %v6675_v19  ;;  %v7466_v54 = vld [vmem:[#allocation31_spill] sm:$0xff] }
0x19b8   : > { %4042 = vadd.xlane.f32.xlu0 %v4041_v24  ;;  %v3776_v49 = vadd.f32 %v3775_v63, %v3774_v36  ;;  %v3731_v2 = vadd.f32 %v3730_v60, %v3729_v31  ;;  %3678 = vst.msk [vmem:[#allocation12 + $0x18] sm:$0xff] %vm1593_vm6, %v3662_v27  ;;  %v3759_v57 = vmul.f32 %v6965_v8, %v3662_v27  ;;  %v3732_v53 = vsel %vm1593_vm6, %v3712_v1, 0.0  ;;  %v7044_v36 = vld [vmem:[#allocation6 + $0x50] sm:$0xff]  ;;  %v7054_v27 = vld [vmem:[#allocation6 + $0x58] sm:$0xff] }
0x19b9   : > { %v3648_v30 = vmul.f32 %v6909_v10, %v6645_v28  ;;  %v3713_v33 = vmul.f32 %v6999_v9, %v6999_v9  ;;  %3679 = vst.msk [vmem:[#allocation12 + $0x20] sm:$0xff] %vm1593_vm6, %v3663_v11  ;;  %v3760_v16 = vmul.f32 %v6976_v47, %v3663_v11  ;;  %v3649_v19 = vmul.f32 %v6909_v10, %v6656_v42 }
0x19ba   : > { %v3733_v32 = vadd.f32 %v3732_v53, %v3731_v2  ;;  %v3714_v6 = vmul.f32 %v7006_v18, %v7006_v18  ;;  %v3777_v34 = vsel %vm1593_vm6, %v3759_v57, 0.0  ;;  %v3650_v41 = vmul.f32 %v6909_v10, %v6667_v62 }
0x19bb   : > { %v3664_v45 = vadd.f32 %v3648_v30, %v6685_v46  ;;  %v3734_v43 = vsel %vm1593_vm6, %v3713_v33, 0.0  ;;  %4045 = vadd.xlane.f32.xlu1 %v4044_v23  ;;  %v3778_v56 = vadd.f32 %v3777_v34, %v3776_v49  ;;  %v3779_v58 = vsel %vm1593_vm6, %v3760_v16, 0.0  ;;  %v7467_v23 = vld [vmem:[#allocation29_spill] sm:$0xff]  ;;  %v7468_v30 = vld [vmem:[#allocation30_spill] sm:$0xff]  ;;  %v7066_v16 = vld [vmem:[#allocation6 + $0x60] sm:$0xff] }
0x19bc   : > { %v3735_v40 = vadd.f32 %v3734_v43, %v3733_v32  ;;  %v3665_v51 = vadd.f32 %v3649_v19, %v6695_v61  ;;  %v3736_v46 = vsel %vm1593_vm6, %v3714_v6, 0.0  ;;  %v3666_v7 = vadd.f32 %v3650_v41, %v6705_v0  ;;  %v7465_v61 = vld [vmem:[#allocation28_spill] sm:$0xff] }
0x19bd   : > { %3680 = vst.msk [vmem:[#allocation12 + $0x28] sm:$0xff] %vm1593_vm6, %v3664_v45  ;;  %v3761_v35 = vmul.f32 %v6987_v37, %v3664_v45  ;;  %v3715_v52 = vmul.f32 %v7023_v13, %v7023_v13  ;;  %v3780_v39 = vadd.f32 %v3779_v58, %v3778_v56  ;;  %v3651_v29 = vmul.f32 %v6909_v10, %v7465_v61  ;;  %v7469_v32 = vld [vmem:[#allocation32_spill] sm:$0xff]  ;;  %v7470_v58 = vld [vmem:[#allocation33_spill] sm:$0xff] }
0x19be   : > { %3681 = vst.msk [vmem:[#allocation12 + $0x30] sm:$0xff] %vm1593_vm6, %v3665_v51  ;;  %v3762_v20 = vmul.f32 %v6999_v9, %v3665_v51  ;;  %v3737_v3 = vadd.f32 %v3736_v46, %v3735_v40  ;;  %3682 = vst.msk [vmem:[#allocation12 + $0x38] sm:$0xff] %vm1593_vm6, %v3666_v7  ;;  %v3763_v0 = vmul.f32 %v7006_v18, %v3666_v7  ;;  %v7076_v51 = vld [vmem:[#allocation6 + $0x68] sm:$0xff]  ;;  %v7471_v7 = vld [vmem:[#allocation35_spill] sm:$0xff] }
0x19bf   : > { %v3781_v59 = vsel %vm1593_vm6, %v3761_v35, 0.0  ;;  %v3738_v26 = vsel %vm1593_vm6, %v3715_v52, 0.0  ;;  %v3716_v44 = vmul.f32 %v7032_v22, %v7032_v22  ;;  %v3667_v63 = vadd.f32 %v3651_v29, %v7466_v54 }
0x19c0   : > { %v3782_v55 = vadd.f32 %v3781_v59, %v3780_v39  ;;  %v3783_v24 = vsel %vm1593_vm6, %v3762_v20, 0.0  ;;  %v3739_v31 = vadd.f32 %v3738_v26, %v3737_v3  ;;  %v3785_v60 = vsel %vm1593_vm6, %v3763_v0, 0.0  ;;  %v7088_v0 = vld [vmem:[#allocation6 + $0x70] sm:$0xff] }
0x19c1   : > { %v3740_v1 = vsel %vm1593_vm6, %v3716_v44, 0.0  ;;  %v3652_v49 = vmul.f32 %v6909_v10, %v7467_v23  ;;  %v3717_v2 = vmul.f32 %v7044_v36, %v7044_v36  ;;  %3683 = vst.msk [vmem:[#allocation12 + $0x40] sm:$0xff] %vm1593_vm6, %v3667_v63  ;;  %v3764_v57 = vmul.f32 %v7023_v13, %v3667_v63 }
0x19c2   : > { %v3784_v11 = vadd.f32 %v3783_v24, %v3782_v55  ;;  %v3741_v53 = vadd.f32 %v3740_v1, %v3739_v31  ;;  %v3653_v33 = vmul.f32 %v6909_v10, %v7468_v30  ;;  %v3718_v34 = vmul.f32 %v7054_v27, %v7054_v27 }
0x19c3   : > { %v3668_v19 = vadd.f32 %v3652_v49, %v7469_v32  ;;  %v3742_v6 = vsel %vm1593_vm6, %v3717_v2, 0.0  ;;  %v3654_v45 = vmul.f32 %v6909_v10, %v6707_v17  ;;  %v3787_v41 = vsel %vm1593_vm6, %v3764_v57, 0.0  ;;  %v7098_v49 = vld [vmem:[#allocation6 + $0x78] sm:$0xff] }
0x19c4   : > { %v3786_v43 = vadd.f32 %v3785_v60, %v3784_v11  ;;  %v3743_v56 = vadd.f32 %v3742_v6, %v3741_v53  ;;  %v3669_v40 = vadd.f32 %v3653_v33, %v7470_v58  ;;  %v3744_v46 = vsel %vm1593_vm6, %v3718_v34, 0.0  ;;  %v7472_v60 = vld [vmem:[#allocation37_spill] sm:$0xff]  ;;  %v7473_v6 = vld [vmem:[#allocation34_spill] sm:$0xff]  ;;  %v7475_v58 = vld [vmem:[#allocation36_spill] sm:$0xff] }
0x19c5   : > { %3684 = vst.msk [vmem:[#allocation12 + $0x48] sm:$0xff] %vm1593_vm6, %v3668_v19  ;;  %v3765_v35 = vmul.f32 %v7032_v22, %v3668_v19  ;;  %v3670_v52 = vadd.f32 %v3654_v45, %v7471_v7  ;;  %v3719_v39 = vmul.f32 %v7066_v16, %v7066_v16  ;;  %v3655_v59 = vmul.f32 %v6909_v10, %v6717_v50  ;;  %v7474_v45 = vld [vmem:[#allocation38_spill] sm:$0xff] }
0x19c6   : > { %v3788_v20 = vadd.f32 %v3787_v41, %v3786_v43  ;;  %3685 = vst.msk [vmem:[#allocation12 + $0x50] sm:$0xff] %vm1593_vm6, %v3669_v40  ;;  %v3766_v3 = vmul.f32 %v7044_v36, %v3669_v40  ;;  %v3745_v29 = vadd.f32 %v3744_v46, %v3743_v56  ;;  %v3720_v24 = vmul.f32 %v7076_v51, %v7076_v51 }
0x19c7   : > { %v3789_v26 = vsel %vm1593_vm6, %v3765_v35, 0.0  ;;  %3686 = vst.msk [vmem:[#allocation12 + $0x58] sm:$0xff] %vm1593_vm6, %v3670_v52  ;;  %v3767_v44 = vmul.f32 %v7054_v27, %v3670_v52  ;;  %v3746_v55 = vsel %vm1593_vm6, %v3719_v39, 0.0  ;;  %v3671_v1 = vadd.f32 %v3655_v59, %v7472_v60  ;;  %v7476_v52 = vld [vmem:[#allocation39_spill] sm:$0xff] }
0x19c8   : > { %v3790_v31 = vadd.f32 %v3789_v26, %v3788_v20  ;;  %v3791_v54 = vsel %vm1593_vm6, %v3766_v3, 0.0  ;;  %v3747_v63 = vadd.f32 %v3746_v55, %v3745_v29  ;;  %v3748_v11 = vsel %vm1593_vm6, %v3720_v24, 0.0  ;;  %v7477_v29 = vld [vmem:[#allocation40_spill] sm:$0xff] }
0x19c9   : > { %v3793_v2 = vsel %vm1593_vm6, %v3767_v44, 0.0  ;;  %v3656_v57 = vmul.f32 %v6909_v10, %v6727_v14  ;;  %v3721_v53 = vmul.f32 %v7088_v0, %v7088_v0  ;;  %3687 = vst.msk [vmem:[#allocation12 + $0x60] sm:$0xff] %vm1593_vm6, %v3671_v1  ;;  %v3768_v32 = vmul.f32 %v7066_v16, %v3671_v1 }
0x19ca   : > { %v3792_v33 = vadd.f32 %v3791_v54, %v3790_v31  ;;  %v3749_v19 = vadd.f32 %v3748_v11, %v3747_v63  ;;  %v3657_v34 = vmul.f32 %v6909_v10, %v7473_v6  ;;  %v3722_v56 = vmul.f32 %v7098_v49, %v7098_v49 }
0x19cb   : > { %v3672_v43 = vadd.f32 %v3656_v57, %v7474_v45  ;;  %v3750_v41 = vsel %vm1593_vm6, %v3721_v53, 0.0  ;;  %v3658_v40 = vmul.f32 %v6909_v10, %v7475_v58  ;;  %v3795_v46 = vsel %vm1593_vm6, %v3768_v32, 0.0  ;;  %v4629_v57 = vld [vmem:[%s6769_s11 + $0x80] sm:$0xff] }
0x19cc   : > { %v3794_v35 = vadd.f32 %v3793_v2, %v3792_v33  ;;  %v3751_v7 = vadd.f32 %v3750_v41, %v3749_v19  ;;  %v3673_v39 = vadd.f32 %v3657_v34, %v7476_v52  ;;  %v3752_v3 = vsel %vm1593_vm6, %v3722_v56, 0.0  ;;  %v7133_v32 = vld [vmem:[%s6769_s11] sm:$0xff] }
0x19cd   : > { %3688 = vst.msk [vmem:[#allocation12 + $0x68] sm:$0xff] %vm1593_vm6, %v3672_v43  ;;  %v3769_v20 = vmul.f32 %v7076_v51, %v3672_v43  ;;  %v3674_v59 = vadd.f32 %v3658_v40, %v7477_v29  ;;  %v7136_v19 = vld [vmem:[%s6769_s11 + $0x40] sm:$0xff] }
0x19ce   : > { %v3796_v26 = vadd.f32 %v3795_v46, %v3794_v35  ;;  %3689 = vst.msk [vmem:[#allocation12 + $0x70] sm:$0xff] %vm1593_vm6, %v3673_v39  ;;  %v3770_v10 = vmul.f32 %v7088_v0, %v3673_v39  ;;  %v3753_v44 = vadd.f32 %v3752_v3, %v3751_v7 }
0x19cf   : > { %v3797_v55 = vsel %vm1593_vm6, %v3769_v20, 0.0  ;;  %3690 = vst.msk [vmem:[#allocation12 + $0x78] sm:$0xff] %vm1593_vm6, %v3674_v59  ;;  %v3771_v63 = vmul.f32 %v7098_v49, %v3674_v59 }
0x19d0   : > { %v3754_v24 = vmax.f32 %v3753_v44, 1e-24  ;;  %v3798_v31 = vadd.f32 %v3797_v55, %v3796_v26  ;;  %v3799_v54 = vsel %vm1593_vm6, %v3770_v10, 0.0 }
0x19d1   : > { %v3801_v1 = vsel %vm1593_vm6, %v3771_v63, 0.0 }
0x19d2   : > { %5113 = vrsqrt.f32 %v3754_v24  ;;  %v3800_v60 = vadd.f32 %v3799_v54, %v3798_v31 }
0x19d4   : > { %v3802_v2 = vadd.f32 %v3801_v1, %v3800_v60 }
0x19dc   : > { %v5114_v11 = vpop.eup %5113 }
0x19dd   : > { %v3803_v53 = vmul.f32 %v5114_v11, %v3802_v2 }
0x19df   : > { %v3804_v33 = vmul.f32 %v4629_v57, %v3803_v53 }
0x19e1   : > { %3806 = vst.msk [vmem:[%s3805_s16] sm:$0xff] %vm1593_vm6, %v3804_v33 }
0x1a28   : > { %v4001_v34 = vpop.xlane.xlu0 %4000 }
0x1a29   : > { %v4047_v45 = vsub.f32 %v6617_v38, %v4001_v34  ;;  %v4111_v43 = vsub.f32 %v6872_v12, %v4001_v34 }
0x1a2b   : > { %v4063_v41 = vmul.f32 %v7136_v19, %v4047_v45  ;;  %v4127_v56 = vmul.f32 %v4111_v43, %v7133_v32 }
0x1a2c   : > { %v4004_v40 = vpop.xlane.xlu1 %4003  ;;  %v4007_v35 = vpop.xlane.xlu0 %4006 }
0x1a2d   : > { %v4079_v46 = vadd.f32 %v4063_v41, %v4001_v34  ;;  %v4143_v7 = vadd.f32 %v4127_v56, %v4001_v34  ;;  %v4048_v52 = vsub.f32 %v6619_v25, %v4004_v40  ;;  %v4112_v39 = vsub.f32 %v6884_v5, %v4004_v40 }
0x1a2e   : > { %v4049_v20 = vsub.f32 %v6625_v4, %v4007_v35  ;;  %v4113_v3 = vsub.f32 %v6944_v21, %v4007_v35 }
0x1a2f   : > { %4095 = vst.msk [vmem:[#allocation7] sm:$0xff] %vm1593_vm6, %v4079_v46  ;;  %4159 = vst.msk [vmem:[#allocation6] sm:$0xff] %vm1593_vm6, %v4143_v7  ;;  %v4064_v38 = vmul.f32 %v7136_v19, %v4048_v52  ;;  %v4128_v12 = vmul.f32 %v4112_v39, %v7133_v32 }
0x1a30   : > { %v4065_v29 = vmul.f32 %v7136_v19, %v4049_v20  ;;  %v4129_v59 = vmul.f32 %v4113_v3, %v7133_v32  ;;  %v4010_v26 = vpop.xlane.xlu1 %4009  ;;  %v4013_v25 = vpop.xlane.xlu0 %4012 }
0x1a31   : > { %v4080_v10 = vadd.f32 %v4064_v38, %v4004_v40  ;;  %v4144_v5 = vadd.f32 %v4128_v12, %v4004_v40  ;;  %v4050_v4 = vsub.f32 %v6631_v15, %v4010_v26  ;;  %v4114_v21 = vsub.f32 %v6965_v8, %v4010_v26 }
0x1a32   : > { %v4081_v44 = vadd.f32 %v4065_v29, %v4007_v35  ;;  %v4145_v55 = vadd.f32 %v4129_v59, %v4007_v35  ;;  %v4051_v24 = vsub.f32 %v6636_v48, %v4013_v25  ;;  %v4115_v31 = vsub.f32 %v6976_v47, %v4013_v25 }
0x1a33   : > { %4096 = vst.msk [vmem:[#allocation7 + $0x8] sm:$0xff] %vm1593_vm6, %v4080_v10  ;;  %4160 = vst.msk [vmem:[#allocation6 + $0x8] sm:$0xff] %vm1593_vm6, %v4144_v5  ;;  %v4066_v54 = vmul.f32 %v7136_v19, %v4050_v4  ;;  %v4130_v63 = vmul.f32 %v4114_v21, %v7133_v32 }
0x1a34   : > { %4097 = vst.msk [vmem:[#allocation7 + $0x10] sm:$0xff] %vm1593_vm6, %v4081_v44  ;;  %4161 = vst.msk [vmem:[#allocation6 + $0x10] sm:$0xff] %vm1593_vm6, %v4145_v55  ;;  %v4067_v15 = vmul.f32 %v7136_v19, %v4051_v24  ;;  %v4131_v8 = vmul.f32 %v4115_v31, %v7133_v32  ;;  %v4016_v60 = vpop.xlane.xlu1 %4015  ;;  %v4019_v48 = vpop.xlane.xlu0 %4018 }
0x1a35   : > { %v4082_v1 = vadd.f32 %v4066_v54, %v4010_v26  ;;  %v4146_v47 = vadd.f32 %v4130_v63, %v4010_v26  ;;  %v4052_v2 = vsub.f32 %v6645_v28, %v4016_v60  ;;  %v4116_v11 = vsub.f32 %v6987_v37, %v4016_v60 }
0x1a36   : > { %v4083_v57 = vadd.f32 %v4067_v15, %v4013_v25  ;;  %v4147_v53 = vadd.f32 %v4131_v8, %v4013_v25  ;;  %v4053_v33 = vsub.f32 %v6656_v42, %v4019_v48  ;;  %v4117_v34 = vsub.f32 %v6999_v9, %v4019_v48 }
0x1a37   : > { %4098 = vst.msk [vmem:[#allocation7 + $0x18] sm:$0xff] %vm1593_vm6, %v4082_v1  ;;  %4162 = vst.msk [vmem:[#allocation6 + $0x18] sm:$0xff] %vm1593_vm6, %v4146_v47  ;;  %v4068_v45 = vmul.f32 %v7136_v19, %v4052_v2  ;;  %v4132_v43 = vmul.f32 %v4116_v11, %v7133_v32 }
0x1a38   : > { %4099 = vst.msk [vmem:[#allocation7 + $0x20] sm:$0xff] %vm1593_vm6, %v4083_v57  ;;  %4163 = vst.msk [vmem:[#allocation6 + $0x20] sm:$0xff] %vm1593_vm6, %v4147_v53  ;;  %v4069_v28 = vmul.f32 %v7136_v19, %v4053_v33  ;;  %v4133_v37 = vmul.f32 %v4117_v34, %v7133_v32  ;;  %v4022_v41 = vpop.xlane.xlu1 %4021 }
0x1a39   : > { %v4025_v42 = vpop.xlane.xlu0 %4024  ;;  %v4084_v56 = vadd.f32 %v4068_v45, %v4016_v60  ;;  %v4148_v9 = vadd.f32 %v4132_v43, %v4016_v60  ;;  %v4054_v40 = vsub.f32 %v6667_v62, %v4022_v41  ;;  %v4118_v35 = vsub.f32 %v7006_v18, %v4022_v41 }
0x1a3a   : > { %v4085_v46 = vadd.f32 %v4069_v28, %v4019_v48  ;;  %v4149_v7 = vadd.f32 %v4133_v37, %v4019_v48  ;;  %v4055_v52 = vsub.f32 %v7465_v61, %v4025_v42  ;;  %v4119_v39 = vsub.f32 %v7023_v13, %v4025_v42 }
0x1a3b   : > { %4100 = vst.msk [vmem:[#allocation7 + $0x28] sm:$0xff] %vm1593_vm6, %v4084_v56  ;;  %4164 = vst.msk [vmem:[#allocation6 + $0x28] sm:$0xff] %vm1593_vm6, %v4148_v9  ;;  %v4070_v20 = vmul.f32 %v7136_v19, %v4054_v40  ;;  %v4134_v3 = vmul.f32 %v4118_v35, %v7133_v32 }
0x1a3c   : > { %4101 = vst.msk [vmem:[#allocation7 + $0x30] sm:$0xff] %vm1593_vm6, %v4085_v46  ;;  %4165 = vst.msk [vmem:[#allocation6 + $0x30] sm:$0xff] %vm1593_vm6, %v4149_v7  ;;  %v4071_v62 = vmul.f32 %v7136_v19, %v4055_v52  ;;  %v4135_v18 = vmul.f32 %v4119_v39, %v7133_v32  ;;  %v4028_v38 = vpop.xlane.xlu1 %4027  ;;  %v7478_v7 = vld [vmem:[#allocation17_spill] sm:$0xff] (%p3485_p8) }
0x1a3d   : > { %v4031_v61 = vpop.xlane.xlu0 %4030  ;;  %v4086_v12 = vadd.f32 %v4070_v20, %v4022_v41  ;;  %v4150_v13 = vadd.f32 %v4134_v3, %v4022_v41  ;;  %v4056_v29 = vsub.f32 %v7467_v23, %v4028_v38  ;;  %v4120_v59 = vsub.f32 %v7032_v22, %v4028_v38 }
0x1a3e   : > { %v4087_v26 = vadd.f32 %v4071_v62, %v4025_v42  ;;  %v4151_v25 = vadd.f32 %v4135_v18, %v4025_v42  ;;  %v4057_v10 = vsub.f32 %v7468_v30, %v4031_v61  ;;  %v4121_v5 = vsub.f32 %v7044_v36, %v4031_v61  ;;  %v5129_v18 = vld [vmem:[#allocation4 + $0x22] ss:$8 sps:$4 sm:$0x33] (%p3485_p8)  }
0x1a3f   : > { %4102 = vst.msk [vmem:[#allocation7 + $0x38] sm:$0xff] %vm1593_vm6, %v4086_v12  ;;  %4166 = vst.msk [vmem:[#allocation6 + $0x38] sm:$0xff] %vm1593_vm6, %v4150_v13  ;;  %v4072_v4 = vmul.f32 %v7136_v19, %v4056_v29  ;;  %v4136_v21 = vmul.f32 %v4120_v59, %v7133_v32  ;;  %v5130_v12 = vld [vmem:[#allocation4 + $0x32] ss:$8 sps:$4 sm:$0x33] (%p3485_p8)   ;;  %v4284_v29 = vrot.slane (%p3485_p8), %v5129_v18, %v7478_v7 }
0x1a40   : > { %4103 = vst.msk [vmem:[#allocation7 + $0x40] sm:$0xff] %vm1593_vm6, %v4087_v26  ;;  %4167 = vst.msk [vmem:[#allocation6 + $0x40] sm:$0xff] %vm1593_vm6, %v4151_v25  ;;  %v4073_v22 = vmul.f32 %v7136_v19, %v4057_v10  ;;  %v4137_v23 = vmul.f32 %v4121_v5, %v7133_v32  ;;  %v4034_v44 = vpop.xlane.xlu1 %4033  ;;  %v5131_v13 = vld [vmem:[#allocation4 + $0x26] ss:$8 sps:$4 sm:$0x33] (%p3485_p8)   ;;  %v4291_v5 = vrot.slane (%p3485_p8), %v5130_v12, %v7478_v7 }
0x1a41   : > { %v4037_v30 = vpop.xlane.xlu0 %4036  ;;  %v4088_v55 = vadd.f32 %v4072_v4, %v4028_v38  ;;  %v4152_v36 = vadd.f32 %v4136_v21, %v4028_v38  ;;  %v4058_v24 = vsub.f32 %v6707_v17, %v4034_v44  ;;  %v4122_v31 = vsub.f32 %v7054_v27, %v4034_v44  ;;  %v4411_v38 = vld [vmem:[%s7396_s6 + $0x80] sm:$0xff] (%p3485_p8)  ;;  %v5132_v59 = vld [vmem:[#allocation4 + $0x36] ss:$8 sps:$4 sm:$0x33] (%p3485_p8)   ;;  %v4412_v26 = vld [vmem:[%s7396_s6 + $0x88] sm:$0xff] (%p3485_p8) }
0x1a42   : > { %v4089_v54 = vadd.f32 %v4073_v22, %v4031_v61  ;;  %v4153_v63 = vadd.f32 %v4137_v23, %v4031_v61  ;;  %v4059_v15 = vsub.f32 %v6717_v50, %v4037_v30  ;;  %v4123_v8 = vsub.f32 %v7066_v16, %v4037_v30  ;;  %v4395_v25 = vld [vmem:[%s7396_s6] sm:$0xff] (%p3485_p8)  ;;  %v4396_v22 = vld [vmem:[%s7396_s6 + $0x8] sm:$0xff] (%p3485_p8)  ;;  %v4413_v23 = vld [vmem:[%s7396_s6 + $0x90] sm:$0xff] (%p3485_p8) }
0x1a43   : > { %4104 = vst.msk [vmem:[#allocation7 + $0x48] sm:$0xff] %vm1593_vm6, %v4088_v55  ;;  %4168 = vst.msk [vmem:[#allocation6 + $0x48] sm:$0xff] %vm1593_vm6, %v4152_v36  ;;  %v4074_v60 = vmul.f32 %v7136_v19, %v4058_v24  ;;  %v4138_v48 = vmul.f32 %v4122_v31, %v7133_v32  ;;  %v4376_v4 = vrot.slane (%p3485_p8), %v5131_v13, %v7478_v7  ;;  %v4397_v24 = vld [vmem:[%s7396_s6 + $0x10] sm:$0xff] (%p3485_p8)  ;;  %v4398_v31 = vld [vmem:[%s7396_s6 + $0x18] sm:$0xff] (%p3485_p8) }
0x1a44   : > { %4105 = vst.msk [vmem:[#allocation7 + $0x50] sm:$0xff] %vm1593_vm6, %v4089_v54  ;;  %4169 = vst.msk [vmem:[#allocation6 + $0x50] sm:$0xff] %vm1593_vm6, %v4153_v63  ;;  %v4075_v17 = vmul.f32 %v7136_v19, %v4059_v15  ;;  %v4139_v27 = vmul.f32 %v4123_v8, %v7133_v32  ;;  %v4040_v1 = vpop.xlane.xlu1 %4039  ;;  %v4897_v21 = vpack.c.bf16 (%p3485_p8), %v4412_v26, %v4411_v38  ;;  %v4415_v54 = vld [vmem:[%s7396_s6 + $0xa0] sm:$0xff] (%p3485_p8)  ;;  %v4416_v15 = vld [vmem:[%s7396_s6 + $0xa8] sm:$0xff] (%p3485_p8) }
0x1a45   : > { %v4043_v50 = vpop.xlane.xlu0 %4042  ;;  %v4090_v47 = vadd.f32 %v4074_v60, %v4034_v44  ;;  %v4154_v16 = vadd.f32 %v4138_v48, %v4034_v44  ;;  %v4060_v2 = vsub.f32 %v6727_v14, %v4040_v1  ;;  %v4124_v11 = vsub.f32 %v7076_v51, %v4040_v1  ;;  %v4414_v44 = vld [vmem:[%s7396_s6 + $0x98] sm:$0xff] (%p3485_p8)  ;;  %v5135_v18 = vld [vmem:[#allocation4] ss:$8 sps:$4 sm:$0x33] (%p3485_p8)  }
0x1a46   : > { %v4091_v57 = vadd.f32 %v4075_v17, %v4037_v30  ;;  %v4155_v53 = vadd.f32 %v4139_v27, %v4037_v30  ;;  %v4061_v33 = vsub.f32 %v7473_v6, %v4043_v50  ;;  %v4125_v34 = vsub.f32 %v7088_v0, %v4043_v50  ;;  %4898 = vmatprep.subr.bf16.mxu0 (%p3485_p8), %v4897_v21  ;;  %v4399_v17 = vld [vmem:[%s7396_s6 + $0x20] sm:$0xff] (%p3485_p8)  ;;  %v4400_v27 = vld [vmem:[%s7396_s6 + $0x28] sm:$0xff] (%p3485_p8)  ;;  %v5136_v38 = vld [vmem:[#allocation4 + $0x10] ss:$8 sps:$4 sm:$0x33] (%p3485_p8)  }
0x1a47   : > { %4106 = vst.msk [vmem:[#allocation7 + $0x58] sm:$0xff] %vm1593_vm6, %v4090_v47  ;;  %4170 = vst.msk [vmem:[#allocation6 + $0x58] sm:$0xff] %vm1593_vm6, %v4154_v16  ;;  %v4076_v45 = vmul.f32 %v7136_v19, %v4060_v2  ;;  %v4140_v43 = vmul.f32 %v4124_v11, %v7133_v32  ;;  %v4383_v30 = vrot.slane (%p3485_p8), %v5132_v59, %v7478_v7  ;;  %v4418_v47 = vld [vmem:[%s7396_s6 + $0xb8] sm:$0xff] (%p3485_p8)  ;;  %v4401_v11 = vld [vmem:[%s7396_s6 + $0x30] sm:$0xff] (%p3485_p8) }
0x1a48   : > { %4107 = vst.msk [vmem:[#allocation7 + $0x60] sm:$0xff] %vm1593_vm6, %v4091_v57  ;;  %4171 = vst.msk [vmem:[#allocation6 + $0x60] sm:$0xff] %vm1593_vm6, %v4155_v53  ;;  %v4077_v14 = vmul.f32 %v7136_v19, %v4061_v33  ;;  %v4141_v51 = vmul.f32 %v4125_v34, %v7133_v32  ;;  %v4046_v28 = vpop.xlane.xlu1 %4045  ;;  %v4899_v55 = vpack.c.bf16 (%p3485_p8), %v4396_v22, %v4395_v25  ;;  %v4402_v57 = vld [vmem:[%s7396_s6 + $0x38] sm:$0xff] (%p3485_p8)  ;;  %v4419_v53 = vld [vmem:[%s7396_s6 + $0xc0] sm:$0xff] (%p3485_p8) }
0x1a49   : > { %v4092_v6 = vadd.f32 %v4076_v45, %v4040_v1  ;;  %v4156_v37 = vadd.f32 %v4140_v43, %v4040_v1  ;;  %v4062_v0 = vsub.f32 %v7475_v58, %v4046_v28  ;;  %v4126_v41 = vsub.f32 %v7098_v49, %v4046_v28  ;;  %3487 = sbr.rel (!%p3485_p8) target bundleno = 6395 (0x18fb), region = 91  ;;  %v5125_v49 = vld [vmem:[#allocation4 + $0x2] ss:$8 sps:$4 sm:$0x33] (%p3485_p8)  }
0x1a4a   : > { %v4093_v42 = vadd.f32 %v4077_v14, %v4043_v50  ;;  %v4157_v56 = vadd.f32 %v4141_v51, %v4043_v50  ;;  %v5126_v58 = vld [vmem:[#allocation4 + $0x12] ss:$8 sps:$4 sm:$0x33] (%p3485_p8)   ;;  %v4267_v52 = vrot.slane (%p3485_p8), %v5125_v49, %v7478_v7  ;;  %v4901_v36 = vpack.c.bf16 (%p3485_p8), %v4414_v44, %v4413_v23  ;;  %4900 = vmatpush3.bf16.msra.mxu0 (%p3485_p8), %v4899_v55  ;;  %v4420_v33 = vld [vmem:[%s7396_s6 + $0xc8] sm:$0xff] (%p3485_p8)  ;;  %v4403_v45 = vld [vmem:[%s7396_s6 + $0x40] sm:$0xff] (%p3485_p8) }
0x1a4b   : > { %4108 = vst.msk [vmem:[#allocation7 + $0x68] sm:$0xff] %vm1593_vm6, %v4092_v6  ;;  %4172 = vst.msk [vmem:[#allocation6 + $0x68] sm:$0xff] %vm1593_vm6, %v4156_v37  ;;  %v4078_v9 = vmul.f32 %v7136_v19, %v4062_v0  ;;  %v4142_v40 = vmul.f32 %v4126_v41, %v7133_v32  ;;  %v5127_v19 = vld [vmem:[#allocation4 + $0x6] ss:$8 sps:$4 sm:$0x33] (%p3485_p8)   ;;  %v4274_v39 = vrot.slane (%p3485_p8), %v5126_v58, %v7478_v7  ;;  %v4417_v50 = vld [vmem:[%s7396_s6 + $0xb0] sm:$0xff] (%p3485_p8) }
0x1a4c   : > { %4109 = vst.msk [vmem:[#allocation7 + $0x70] sm:$0xff] %vm1593_vm6, %v4093_v42  ;;  %4173 = vst.msk [vmem:[#allocation6 + $0x70] sm:$0xff] %vm1593_vm6, %v4157_v56  ;;  %v5128_v32 = vld [vmem:[#allocation4 + $0x16] ss:$8 sps:$4 sm:$0x33] (%p3485_p8)   ;;  %v4359_v20 = vrot.slane (%p3485_p8), %v5127_v19, %v7478_v7  ;;  %v4292_v63 = vcombine.low (%p3485_p8), %v4284_v29, %v4291_v5  ;;  %v4384_v8 = vcombine.low (%p3485_p8), %v4376_v4, %v4383_v30  ;;  %4902 = vmatprep.subr.bf16.mxu0 (%p3485_p8), %v4901_v36  ;;  %v4404_v43 = vld [vmem:[%s7396_s6 + $0x48] sm:$0xff] (%p3485_p8) }
0x1a4d   : > { %v4094_v35 = vadd.f32 %v4078_v9, %v4046_v28  ;;  %v4158_v46 = vadd.f32 %v4142_v40, %v4046_v28  ;;  %v4366_v3 = vrot.slane (%p3485_p8), %v5128_v32, %v7478_v7  ;;  %v4275_v62 = vcombine.low (%p3485_p8), %v4267_v52, %v4274_v39  ;;  %v4421_v51 = vld [vmem:[%s7396_s6 + $0xd0] sm:$0xff] (%p3485_p8)  ;;  %v4422_v28 = vld [vmem:[%s7396_s6 + $0xd8] sm:$0xff] (%p3485_p8)  ;;  %v4423_v42 = vld [vmem:[%s7396_s6 + $0xe0] sm:$0xff] (%p3485_p8) }
0x1a4e   :  { %v4903_v60 = vpack.c.bf16 (%p3485_p8), %v4398_v31, %v4397_v24  ;;  %v4905_v48 = vpack.c.bf16 (%p3485_p8), %v4416_v15, %v4415_v54  ;;  %v5120_v1 = vpack.i.bf16 (%p3485_p8), %v4292_v63, %v4384_v8  ;;  %v4907_v16 = vpack.c.bf16 (%p3485_p8), %v4400_v27, %v4399_v17  ;;  %v4405_v6 = vld [vmem:[%s7396_s6 + $0x50] sm:$0xff] (%p3485_p8)  ;;  %v4406_v41 = vld [vmem:[%s7396_s6 + $0x58] sm:$0xff] (%p3485_p8)  ;;  %v4424_v56 = vld [vmem:[%s7396_s6 + $0xe8] sm:$0xff] (%p3485_p8) }
0x1a4f   : > { %4110 = vst.msk [vmem:[#allocation7 + $0x78] sm:$0xff] %vm1593_vm6, %v4094_v35  ;;  %4174 = vst.msk [vmem:[#allocation6 + $0x78] sm:$0xff] %vm1593_vm6, %v4158_v46  ;;  %v4367_v61 = vcombine.low (%p3485_p8), %v4359_v20, %v4366_v3  ;;  %v4909_v2 = vpack.c.bf16 (%p3485_p8), %v4418_v47, %v4417_v50  ;;  %v4911_v34 = vpack.c.bf16 (%p3485_p8), %v4402_v57, %v4401_v11  ;;  %v4407_v35 = vld [vmem:[%s7396_s6 + $0x60] sm:$0xff] (%p3485_p8)  ;;  %v4408_v46 = vld [vmem:[%s7396_s6 + $0x68] sm:$0xff] (%p3485_p8) }
0x1a50   :  { %4904 = vmatpush3.bf16.msra.mxu0 %v4903_v60  ;;  %v4913_v14 = vpack.c.bf16 %v4420_v33, %v4419_v53  ;;  %v4915_v37 = vpack.c.bf16 %v4404_v43, %v4403_v45  ;;  %v4917_v0 = vpack.c.bf16 %v4422_v28, %v4421_v51  ;;  %v4919_v9 = vpack.c.bf16 %v4406_v41, %v4405_v6  ;;  %v4425_v49 = vld [vmem:[%s7396_s6 + $0xf0] sm:$0xff]  ;;  %v4426_v58 = vld [vmem:[%s7396_s6 + $0xf8] sm:$0xff]  ;;  %v5133_v3 = vld [vmem:[#allocation4 + $0x4] ss:$8 sps:$4 sm:$0x33]  }
0x1a51   :  { %v5115_v10 = vpack.i.bf16 %v4275_v62, %v4367_v61  ;;  %4906 = vmatprep.subr.bf16.mxu0 %v4905_v48  ;;  %v4921_v40 = vpack.c.bf16 %v4424_v56, %v4423_v42  ;;  %v4923_v19 = vpack.c.bf16 %v4408_v46, %v4407_v35  ;;  %v4925_v32 = vpack.c.bf16 %v4426_v58, %v4425_v49  ;;  %v4409_v52 = vld [vmem:[%s7396_s6 + $0x70] sm:$0xff]  ;;  %v4410_v39 = vld [vmem:[%s7396_s6 + $0x78] sm:$0xff]  ;;  %v5137_v59 = vld [vmem:[#allocation4 + $0x24] ss:$8 sps:$4 sm:$0x33]   ;;  %s5231_s6 = smov [#allocation12]  }
0x1a52   :  { %v4927_v20 = vpack.c.bf16 %v4410_v39, %v4409_v52  ;;  %v5134_v62 = vld [vmem:[#allocation4 + $0x14] ss:$8 sps:$4 sm:$0x33]   ;;  %v4315_v61 = vrot.slane %v5133_v3, %v7478_v7  ;;  %v4223_v13 = vrot.slane %v5135_v18, %v7478_v7  ;;  %v4230_v29 = vrot.slane %v5136_v38, %v7478_v7  ;;  %v5139_v25 = vld [vmem:[#allocation4 + $0x20] ss:$8 sps:$4 sm:$0x33]  }
0x1a53   :  { %5116 = vrot.lane.b32.xlu0 %v5115_v10, %s5227_s10  ;;  %v4322_v12 = vrot.slane %v5134_v62, %v7478_v7  ;;  %v5138_v26 = vld [vmem:[#allocation4 + $0x34] ss:$8 sps:$4 sm:$0x33]   ;;  %v5140_v10 = vld [vmem:[#allocation4 + $0x30] ss:$8 sps:$4 sm:$0x33]   ;;  %v4332_v22 = vrot.slane %v5137_v59, %v7478_v7  ;;  %v4240_v44 = vrot.slane %v5139_v25, %v7478_v7 }
0x1a54   :  { %4908 = vmatpush3.bf16.msra.mxu0 %v4907_v16  ;;  %v4231_v4 = vcombine.low %v4223_v13, %v4230_v29  ;;  %v4339_v23 = vrot.slane %v5138_v26, %v7478_v7  ;;  %v4247_v30 = vrot.slane %v5140_v10, %v7478_v7  ;;  %s4528_s4 = sshll.u32 %s5231_s6, 4  ;;  %s4529_s4 = int_to_ptr.vmem [resolvable:$true] %s4528_s4 }
0x1a55   :  { %4910 = vmatprep.subr.bf16.mxu0 %v4909_v2  ;;  %v4323_v5 = vcombine.low %v4315_v61, %v4322_v12  ;;  %s5163_s0 = scalar_lea.vmem %s4529_s4, 2048  ;;  %p5168_p10 = scmp.lt.s32.totalorder %s4529_s4, %s4529_s4 }
0x1a56   :  { %v4340_v54 = vcombine.low %v4332_v22, %v4339_v23  ;;  %v4248_v63 = vcombine.low %v4240_v44, %v4247_v30  ;;  %p5164_p9 = scmp.ne.s32.totalorder %s4529_s4, %s5163_s0  ;;  %p5169_p11 = scmp.lt.s32.totalorder %s5163_s0, %s5163_s0 }
0x1a57   :  { %5121 = vrot.lane.b32.xlu0 %v5120_v1, %s5227_s10 }
0x1a58   :  { %4912 = vmatpush3.bf16.msra.mxu0 %v4911_v34  ;;  %p5170_p12 = por %p5169_p11, %p5168_p10 }
0x1a59   :  { %4914 = vmatprep.subr.bf16.mxu0 %v4913_v14 }
0x1a5a   :  { %p5171_p13 = pnand %p5170_p12, %p5164_p9 }
0x1a5c   :  { %4916 = vmatpush3.bf16.msra.mxu0 %v4915_v37 }
0x1a5d   :  { %4918 = vmatprep.subr.bf16.mxu0 %v4917_v0 }
0x1a60   :  { %4920 = vmatpush3.bf16.msra.mxu0 %v4919_v9 }
0x1a61   :  { %4922 = vmatprep.subr.bf16.mxu0 %v4921_v40 }
0x1a64   :  { %4924 = vmatpush3.bf16.msra.mxu0 %v4923_v19 }
0x1a65   :  { %4926 = vmatprep.subr.bf16.mxu0 %v4925_v32 }
0x1a68   :  { %4928 = vmatpush3.bf16.msra.mxu0 %v4927_v20 }
0x1ac5   :  { %v5117_v21 = vpop.permute.xlu0 %5116 }
0x1ac6   :  { %v5119_v55 = vunpack.i.h.bf16 %v5117_v21  ;;  %v5118_v36 = vunpack.i.l.bf16 %v5117_v21 }
0x1ac8   :  { %v4393_v24 = vsel %vm1593_vm6, %v4323_v5, %v5118_v36  ;;  %v4391_v31 = vsel %vm1593_vm6, %v4231_v4, %v5119_v55 }
0x1ac9   :  { %4498 = vmatprep.mubr.f32.mxu0 %v4393_v24  ;;  %v5122_v15 = vpop.permute.xlu0 %5121 }
0x1aca   :  { %4499 = vmatmul.mubr.f32.vlgmr.msra.gmra.mrb[16].mxu0 %v4391_v31  ;;  %v5124_v8 = vunpack.i.h.bf16 %v5122_v15  ;;  %v5123_v60 = vunpack.i.l.bf16 %v5122_v15 }
0x1acc   :  { %v4394_v48 = vsel %vm1593_vm6, %v4340_v54, %v5123_v60  ;;  %v4392_v17 = vsel %vm1593_vm6, %v4248_v63, %v5124_v8 }
0x1acd   :  { %4503 = vmatprep.mubr.f32.mxu0 %v4394_v48 }
0x1ace   :  { %4504 = vmatmul.mubr.f32.gmra.mrb[18].mxu0 %v4392_v17 }
0x1acf   :  { %5174 = shalt.err (!%p5171_p13)
}
0x1ad0   :  { %s5175_s27 = scalar_lea.hbm %s7399_s9, 2048 }
0x1ad1   :  { %p5176_p0 = scmp.ne.s32.totalorder %s7399_s9, %s5175_s27  ;;  %p5179_p1 = scmp.lt.u32.totalorder %s5175_s27, %s7399_s9 }
0x1ad3   :  { %p5181_p2 = pnand %p5179_p1, %p5176_p0 }
0x1ad5   :  { %5184 = shalt.err (!%p5181_p2)
}
0x1ad6   :  { %s5232_s30 = smov 128   ;;  %s5233_s11 = smov 8   ;;  %v4634_v27 = vld [vmem:[%s7397_s7] ss:$0 sm:$0xff] }
0x1ad7   :  { %4534 = dma.vmem_to_hbm [thread:$0]  %s4529_s4, 2048, %s7399_s9, [#allocation13], %s5232_s30, %s5232_s30, %s5233_s11  }
0x1ad8   :  { %s5234_s16 = smov [#allocation11]  }
0x1ad9   :  { %s4516_s17 = sshll.u32 %s5234_s16, 4  ;;  %s4517_s17 = int_to_ptr.vmem [resolvable:$true] %s4516_s17 }
0x1ada   :  { %s5185_s9 = scalar_lea.vmem %s4517_s17, 256  ;;  %p5190_p4 = scmp.lt.s32.totalorder %s4517_s17, %s4517_s17 }
0x1adb   :  { %p5186_p3 = scmp.ne.s32.totalorder %s4517_s17, %s5185_s9  ;;  %p5191_p5 = scmp.lt.s32.totalorder %s5185_s9, %s5185_s9 }
0x1add   :  { %p5192_p6 = por %p5191_p5, %p5190_p4 }
0x1adf   :  { %p5193_p7 = pnand %p5192_p6, %p5186_p3 }
0x1b9d   :  { %v4707_v7 = vpop.f32.mrb[16].mxu0 }
0x1b9e   :  { %v4708_v1 = vpop.f32.mrb[17].mxu0 }
0x1b9f   :  { %v4709_v50 = vadd.f32 %v4708_v1, %v4707_v7 }
0x1ba1   :  { %v4501_v47 = vadd.f32 %v4709_v50, %v4634_v27  ;;  %v4710_v16 = vpop.f32.mrb[18].mxu0 }
0x1ba2   :  { %v4711_v2 = vpop.f32.mrb[19].mxu0 }
0x1ba3   :  { %4509 = vst.msk [vmem:[#allocation11] sm:$0xff] %vm52_vm1, %v4501_v47  ;;  %v4712_v11 = vadd.f32 %v4711_v2, %v4710_v16 }
0x1ba5   :  { %v4506_v57 = vadd.f32 %v4712_v11, %v4634_v27 }
0x1ba7   :  { %4510 = vst.msk [vmem:[#allocation11 + $0x8] sm:$0xff] %vm52_vm1, %v4506_v57 }
0x1ba8   :  { %5196 = shalt.err (!%p5193_p7)
}
0x1ba9   :  { %s5197_s2 = scalar_lea.hbm %s7398_s8, 256 }
0x1baa   :  { %p5198_p8 = scmp.ne.s32.totalorder %s7398_s8, %s5197_s2  ;;  %p5201_p9 = scmp.lt.u32.totalorder %s5197_s2, %s7398_s8 }
0x1bac   :  { %p5203_p10 = pnand %p5201_p9, %p5198_p8 }
0x1bae   :  { %5206 = shalt.err (!%p5203_p10)
}
0x1baf   :  { %4522 = dma.vmem_to_hbm [thread:$0]  %s4517_s17, 256, %s7398_s8, [#allocation10], %s5232_s30, %s5232_s30, %s5233_s11  }
0x1bb0   :  { %5213 = dma.done.wait [#allocation10], 256  }
0x1bb1   :  { %5214 = vsyncadd [#allocation10], 4294967040 }
0x1bb2   :  { %5215 = dma.done.wait [#allocation13], 2048  }
0x1bb3   :  { %5216 = vsyncadd [#allocation13], 4294965248 }
0x1bb4   :  { %4541 = vsyncpa [#allocation9], 1 }
0x1bb5   :  { %4542 = vsyncpa [#allocation10], 1 }
0x1bb6   :  { %4543 = vsyncpa [#allocation13], 1 }

</bundles_post_ra>
